<compile_context>
chip_gen: v7x
topology: tpu7x:2x2x1
jax: 0.10.0
libtpu: 0.0.40
codegen_flags: <defaults>
</compile_context>

<pallas_src>
import functools

import jax
import jax.numpy as jnp
from jax.experimental import pallas as pl
from jax.experimental.pallas import tpu as pltpu

# Module architecture (fixed by the PyTorch spec).
_CONV_DIMS = ((42, 100), (100, 400), (400, 200), (200, 100))
F4_OUT = 100   # conv4 output features (final_conv_acts feature dim)
OUT_DIM = 1    # out2 output features


def _round_up(v, m):
    return ((v + m - 1) // m) * m


@functools.lru_cache(maxsize=None)
def _vmem_capacity_bytes():
    try:
        return int(pltpu.get_tpu_info().vmem_capacity_bytes)
    except Exception:
        return 64 << 20   # conservative fallback (v7x physical VMEM per TC)


def _vmem_limit_bytes():
    # Lift v5e's 16 MiB scoped default; stay well under v7x's 64 MiB physical.
    return min(int(0.75 * _vmem_capacity_bytes()), 100 << 20)


def _fused_resident_estimate(n_p, f0_p):
    # Rough VMEM resident set of the fully-fused kernel (bf16 A + intermediates).
    a_bytes = 2 * n_p * n_p
    feat_bytes = 2 * n_p * (f0_p + 128 + 512 + 256 + 128 + 128)
    return a_bytes + feat_bytes + (2 << 20)


def _choose_mode(n_p, f0_p):
    return "fused" if _fused_resident_estimate(n_p, f0_p) <= int(
        0.45 * _vmem_capacity_bytes()) else "tiled"


def _pick_bm(n_p, target=512):
    """Row-block size for the tiled path: multiple of 128 dividing n_p."""
    bm = max(128, (min(target, n_p) // 128) * 128)
    while n_p % bm:
        bm -= 128
    return bm


# ----------------------------------------------------------------------------
# Path A: fully fused single pallas_call (small graphs)
# ----------------------------------------------------------------------------
def _fused_gnn_kernel(a_ref, x_ref, p_ref,
                      w1_ref, b1_ref, w2_ref, b2_ref,
                      w3_ref, b3_ref, w4_ref, b4_ref,
                      ow1_ref, ob1_ref, ow2_ref, ob2_ref,
                      acts_ref, y_ref):
    a = a_ref[...]          # [Np, Np]  bf16 normalized adjacency
    h = x_ref[...]          # [Np, F0p] bf16 node features

    def gcn(h_bf16, w_ref, b_ref):
        w = w_ref[...]      # [Fin_p, Fout_p] bf16
        b = b_ref[...]      # [1, Fout_p]     f32
        f_in, f_out = w.shape
        if f_in <= f_out:
            # Aggregate first: the O(N^2) term contracts the (smaller) input dim.
            agg = jnp.dot(a, h_bf16, preferred_element_type=jnp.float32)
            out = jnp.dot(agg.astype(jnp.bfloat16), w,
                          preferred_element_type=jnp.float32)
        else:
            # Transform first: the O(N^2) term contracts the (smaller) output dim.
            xw = jnp.dot(h_bf16, w, preferred_element_type=jnp.float32)
            out = jnp.dot(a, xw.astype(jnp.bfloat16),
                          preferred_element_type=jnp.float32)
        return out + b

    h = jnp.maximum(gcn(h, w1_ref, b1_ref), 0.0).astype(jnp.bfloat16)
    h = jnp.maximum(gcn(h, w2_ref, b2_ref), 0.0).astype(jnp.bfloat16)
    h = jnp.maximum(gcn(h, w3_ref, b3_ref), 0.0).astype(jnp.bfloat16)
    # dropout: eval-mode identity (see TODO at top)

    acts = gcn(h, w4_ref, b4_ref)                 # pre-ReLU hook point (f32 acc)
    acts_ref[...] = acts.astype(acts_ref.dtype)   # bf16 writeback

    # Head: ReLU -> mean pool -> Linear -> ReLU -> Linear  (bf16 MXU, f32 acc)
    h4 = jnp.maximum(acts, 0.0).astype(jnp.bfloat16)
    pooled = jnp.dot(p_ref[...], h4, preferred_element_type=jnp.float32)
    y1 = jnp.dot(pooled.astype(jnp.bfloat16), ow1_ref[...],
                 preferred_element_type=jnp.float32) + ob1_ref[...]
    y1 = jnp.maximum(y1, 0.0).astype(jnp.bfloat16)
    y2 = jnp.dot(y1, ow2_ref[...], preferred_element_type=jnp.float32) + ob2_ref[...]
    y_ref[...] = y2          # [Bp, 128] lane-dense slab; column 0 is the answer


def _full_spec(arr):
    nd = arr.ndim
    return pl.BlockSpec(arr.shape, lambda *args, _nd=nd: (0,) * _nd)


def _fused_forward_call(a_hat_p, x_p, pool_p, pp):
    n_p = x_p.shape[0]
    f4_p = pp["conv4_w"].shape[1]
    b_p = pool_p.shape[0]

    inputs = (a_hat_p, x_p, pool_p,
              pp["conv1_w"], pp["conv1_b"], pp["conv2_w"], pp["conv2_b"],
              pp["conv3_w"], pp["conv3_b"], pp["conv4_w"], pp["conv4_b"],
              pp["out_w"], pp["out_b"], pp["out2_w"], pp["out2_b"])

    return pl.pallas_call(
        _fused_gnn_kernel,
        out_shape=(jax.ShapeDtypeStruct((n_p, f4_p), jnp.bfloat16),
                   jax.ShapeDtypeStruct((b_p, 128), jnp.float32)),
        in_specs=[_full_spec(t) for t in inputs],
        out_specs=(pl.BlockSpec((n_p, f4_p), lambda *args: (0, 0)),
                   pl.BlockSpec((b_p, 128), lambda *args: (0, 0))),
        compiler_params=pltpu.CompilerParams(
            vmem_limit_bytes=_vmem_limit_bytes()),
    )(*inputs)


# ----------------------------------------------------------------------------
# Path B: row-tiled per-layer kernels (large graphs / v7x megacore)
# ----------------------------------------------------------------------------
def _gcn_rowblock_agg_first_kernel(a_ref, h_ref, w_ref, b_ref, out_ref, *, relu):
    # out[rows] = act( (A[rows,:] @ h) @ W + b )
    agg = jnp.dot(a_ref[...], h_ref[...], preferred_element_type=jnp.float32)
    out = jnp.dot(agg.astype(jnp.bfloat16), w_ref[...],
                  preferred_element_type=jnp.float32) + b_ref[...]
    if relu:
        out = jnp.maximum(out, 0.0)
    out_ref[...] = out.astype(out_ref.dtype)


def _agg_rowblock_kernel(a_ref, z_ref, b_ref, out_ref, *, relu):
    # out[rows] = act( A[rows,:] @ z + b )
    out = jnp.dot(a_ref[...], z_ref[...], preferred_element_type=jnp.float32) + b_ref[...]
    if relu:
        out = jnp.maximum(out, 0.0)
    out_ref[...] = out.astype(out_ref.dtype)


def _xw_rowblock_kernel(h_ref, w_ref, out_ref):
    # out[rows] = h[rows] @ W   (purely row-local -> fully parallel)
    out_ref[...] = jnp.dot(h_ref[...], w_ref[...],
                           preferred_element_type=jnp.float32).astype(out_ref.dtype)


def _final_agg_head_kernel(a_ref, z_ref, b4_ref, p_ref,
                           ow1_ref, ob1_ref, ow2_ref, ob2_ref,
                           acts_ref, y_ref, pooled_acc):
    i = pl.program_id(0)

    acts = jnp.dot(a_ref[...], z_ref[...], preferred_element_type=jnp.float32) + b4_ref[...]
    acts_ref[...] = acts.astype(acts_ref.dtype)
    h4 = jnp.maximum(acts, 0.0).astype(jnp.bfloat16)

    @pl.when(i == 0)
    def _():
        pooled_acc[...] = jnp.zeros_like(pooled_acc)

    # global mean pool accumulated over node-row blocks (P columns sliced per block)
    pooled_acc[...] += jnp.dot(p_ref[...], h4, preferred_element_type=jnp.float32)

    @pl.when(i == pl.num_programs(0) - 1)
    def _():
        y1 = jnp.dot(pooled_acc[...].astype(jnp.bfloat16), ow1_ref[...],
                     preferred_element_type=jnp.float32) + ob1_ref[...]
        y1 = jnp.maximum(y1, 0.0).astype(jnp.bfloat16)
        y_ref[...] = jnp.dot(y1, ow2_ref[...],
                             preferred_element_type=jnp.float32) + ob2_ref[...]


def _transform_rows(h, w, *, bm, vmem_limit):
    n_p, f_in = h.shape
    f_out = w.shape[1]
    return pl.pallas_call(
        _xw_rowblock_kernel,
        out_shape=jax.ShapeDtypeStruct((n_p, f_out), jnp.bfloat16),
        grid=(n_p // bm,),
        in_specs=[pl.BlockSpec((bm, f_in), lambda i: (i, 0)),
                  pl.BlockSpec((f_in, f_out), lambda i: (0, 0))],
        out_specs=pl.BlockSpec((bm, f_out), lambda i: (i, 0)),
        compiler_params=pltpu.CompilerParams(
            dimension_semantics=("parallel",), vmem_limit_bytes=vmem_limit),
    )(h, w)


def _gcn_layer_rowtiled(a_hat_p, h, w, b, *, relu, bm, vmem_limit):
    n_p = a_hat_p.shape[0]
    f_in, f_out = w.shape
    grid = (n_p // bm,)
    cparams = pltpu.CompilerParams(dimension_semantics=("parallel",),
                                   vmem_limit_bytes=vmem_limit)
    if f_in <= f_out:
        # Aggregate-first fuses cleanly per row block.
        return pl.pallas_call(
            functools.partial(_gcn_rowblock_agg_first_kernel, relu=relu),
            out_shape=jax.ShapeDtypeStruct((n_p, f_out), jnp.bfloat16),
            grid=grid,
            in_specs=[pl.BlockSpec((bm, n_p), lambda i: (i, 0)),
                      pl.BlockSpec((n_p, f_in), lambda i: (0, 0)),
                      pl.BlockSpec((f_in, f_out), lambda i: (0, 0)),
                      pl.BlockSpec((1, f_out), lambda i: (0, 0))],
            out_specs=pl.BlockSpec((bm, f_out), lambda i: (i, 0)),
            compiler_params=cparams,
        )(a_hat_p, h, w, b)

    # Transform-first (F_in > F_out): z = h @ W row-parallel, then aggregate.
    z = _transform_rows(h, w, bm=bm, vmem_limit=vmem_limit)
    return pl.pallas_call(
        functools.partial(_agg_rowblock_kernel, relu=relu),
        out_shape=jax.ShapeDtypeStruct((n_p, f_out), jnp.bfloat16),
        grid=grid,
        in_specs=[pl.BlockSpec((bm, n_p), lambda i: (i, 0)),
                  pl.BlockSpec((n_p, f_out), lambda i: (0, 0)),
                  pl.BlockSpec((1, f_out), lambda i: (0, 0))],
        out_specs=pl.BlockSpec((bm, f_out), lambda i: (i, 0)),
        compiler_params=cparams,
    )(a_hat_p, z, b)


def _final_layer_head_call(a_hat_p, z4, b4, pool_p, ow1, ob1, ow2, ob2, *, bm, vmem_limit):
    n_p = a_hat_p.shape[0]
    f4 = z4.shape[1]
    b_p = pool_p.shape[0]
    return pl.pallas_call(
        _final_agg_head_kernel,
        out_shape=(jax.ShapeDtypeStruct((n_p, f4), jnp.bfloat16),
                   jax.ShapeDtypeStruct((b_p, 128), jnp.float32)),
        grid=(n_p // bm,),
        in_specs=[pl.BlockSpec((bm, n_p), lambda i: (i, 0)),   # A row block
                  pl.BlockSpec((n_p, f4), lambda i: (0, 0)),   # z4 full
                  pl.BlockSpec((1, f4), lambda i: (0, 0)),     # b4
                  pl.BlockSpec((b_p, bm), lambda i: (0, i)),   # pool column block
                  pl.BlockSpec(ow1.shape, lambda i: (0, 0)),
                  pl.BlockSpec(ob1.shape, lambda i: (0, 0)),
                  pl.BlockSpec(ow2.shape, lambda i: (0, 0)),
                  pl.BlockSpec(ob2.shape, lambda i: (0, 0))],
        out_specs=(pl.BlockSpec((bm, f4), lambda i: (i, 0)),
                   pl.BlockSpec((b_p, 128), lambda i: (0, 0))),
        scratch_shapes=[pltpu.VMEM((b_p, 128), jnp.float32)],
        compiler_params=pltpu.CompilerParams(
            dimension_semantics=("arbitrary",), vmem_limit_bytes=vmem_limit),
    )(a_hat_p, z4, b4, pool_p, ow1, ob1, ow2, ob2)


def _forward_tiled(a_hat_p, x_p, pool_p, pp, *, bm, vmem_limit):
    h = _gcn_layer_rowtiled(a_hat_p, x_p, pp["conv1_w"], pp["conv1_b"],
                            relu=True, bm=bm, vmem_limit=vmem_limit)
    h = _gcn_layer_rowtiled(a_hat_p, h, pp["conv2_w"], pp["conv2_b"],
                            relu=True, bm=bm, vmem_limit=vmem_limit)
    h = _gcn_layer_rowtiled(a_hat_p, h, pp["conv3_w"], pp["conv3_b"],
                            relu=True, bm=bm, vmem_limit=vmem_limit)
    # dropout: eval-mode identity (see TODO at top)
    z4 = _transform_rows(h, pp["conv4_w"], bm=bm, vmem_limit=vmem_limit)
    return _final_layer_head_call(a_hat_p, z4, pp["conv4_b"], pool_p,
                                  pp["out_w"], pp["out_b"],
                                  pp["out2_w"], pp["out2_b"],
                                  bm=bm, vmem_limit=vmem_limit)


# ----------------------------------------------------------------------------
# Glue: normalized adjacency, pooling matrix, parameter init / padding
# ----------------------------------------------------------------------------
def build_normalized_adjacency(edge_index, num_nodes):
    """A_hat = D^-1/2 (A + I_remaining) D^-1/2 (torch_geometric gcn_norm with
    add_remaining_self_loops: existing self-loops are not double-counted)."""
    src = edge_index[0]
    dst = edge_index[1]
    a = jnp.zeros((num_nodes, num_nodes), jnp.float32)
    a = a.at[dst, src].add(1.0)                      # A[i, j] = #edges j -> i
    diag = jnp.diagonal(a)
    a = a + jnp.diag(jnp.where(diag > 0, 0.0, 1.0))  # only add missing self-loops
    deg = jnp.sum(a, axis=1)
    d_inv_sqrt = jnp.where(deg > 0, jax.lax.rsqrt(jnp.maximum(deg, 1e-12)), 0.0)
    return d_inv_sqrt[:, None] * a * d_inv_sqrt[None, :]


def build_pool_matrix(batch_index, num_graphs, num_nodes):
    """P[b, i] = 1/count_b if batch_index[i] == b, so P @ H is global_mean_pool."""
    one_hot = (batch_index[None, :] == jnp.arange(num_graphs)[:, None]).astype(jnp.float32)
    counts = jnp.maximum(jnp.sum(one_hot, axis=1, keepdims=True), 1.0)
    return one_hot / counts


def glorot(key, shape):
    fan_in, fan_out = shape[0], shape[1]
    limit = jnp.sqrt(6.0 / (fan_in + fan_out))
    return jax.random.uniform(key, shape, jnp.float32, -limit, limit)


def init_params(seed=42):
    key = jax.random.PRNGKey(seed)
    keys = jax.random.split(key, 8)
    (c1, c2, c3, c4) = _CONV_DIMS
    return {
        "conv1_w": glorot(keys[0], c1), "conv1_b": jnp.zeros((c1[1],), jnp.float32),
        "conv2_w": glorot(keys[1], c2), "conv2_b": jnp.zeros((c2[1],), jnp.float32),
        "conv3_w": glorot(keys[2], c3), "conv3_b": jnp.zeros((c3[1],), jnp.float32),
        "conv4_w": glorot(keys[3], c4), "conv4_b": jnp.zeros((c4[1],), jnp.float32),
        # nn.Linear(in, out) stored as [in, out] for X @ W
        "out_w":  glorot(keys[4], (100, 50)),
        "out_b":  jax.random.uniform(keys[5], (50,), jnp.float32, -0.1, 0.1),
        "out2_w": glorot(keys[6], (50, 1)),
        "out2_b": jax.random.uniform(keys[7], (1,), jnp.float32, -0.1, 0.1),
    }


def prepare_padded_params(params):
    """One-time (hoisted out of the forward): zero-pad every weight/bias so all
    feature dims are multiples of 128, cast weights to bf16 (MXU-native),
    keep biases f32. Zero pads are mathematically inert through matmul+bias+ReLU."""
    def pw(w):
        r = _round_up(w.shape[0], 128)
        c = _round_up(w.shape[1], 128)
        return jnp.pad(w, ((0, r - w.shape[0]), (0, c - w.shape[1]))).astype(jnp.bfloat16)

    def pb(b):
        c = _round_up(b.shape[0], 128)
        return jnp.pad(b, (0, c - b.shape[0])).reshape(1, c).astype(jnp.float32)

    out = {}
    for name in ("conv1", "conv2", "conv3", "conv4"):
        out[name + "_w"] = pw(params[name + "_w"])
        out[name + "_b"] = pb(params[name + "_b"])
    out["out_w"] = pw(params["out_w"]);   out["out_b"] = pb(params["out_b"])
    out["out2_w"] = pw(params["out2_w"]); out["out2_b"] = pb(params["out2_b"])
    return jax.device_put(out)


# ----------------------------------------------------------------------------
# Forward (jitted; Pallas kernels inside)
# ----------------------------------------------------------------------------
@functools.partial(jax.jit, static_argnums=(4,), static_argnames=("force_mode", "row_block"))
def graph_neural_network_forward(padded_params, x, edge_index, batch_index, num_graphs,
                                 *, force_mode=None, row_block=None):
    n, f_in = x.shape
    n_p = _round_up(n, 128)            # lane-dense node count (A_hat last dim)
    b_p = _round_up(num_graphs, 8)     # sublane-aligned batch count
    f_in_p = _round_up(f_in, 128)

    a_hat = build_normalized_adjacency(edge_index, n)
    a_hat_p = jnp.pad(a_hat, ((0, n_p - n), (0, n_p - n))).astype(jnp.bfloat16)

    pool = build_pool_matrix(batch_index, num_graphs, n)
    pool_p = jnp.pad(pool, ((0, b_p - num_graphs), (0, n_p - n))).astype(jnp.bfloat16)

    x_p = jnp.pad(x, ((0, n_p - n), (0, f_in_p - f_in))).astype(jnp.bfloat16)

    mode = force_mode if force_mode is not None else _choose_mode(n_p, f_in_p)
    vmem_limit = _vmem_limit_bytes()

    if mode == "fused":
        acts_p, y_p = _fused_forward_call(a_hat_p, x_p, pool_p, padded_params)
    else:
        bm = row_block if row_block is not None else _pick_bm(n_p)
        if n_p % bm:
            bm = _pick_bm(n_p, bm)
        acts_p, y_p = _forward_tiled(a_hat_p, x_p, pool_p, padded_params,
                                     bm=bm, vmem_limit=vmem_limit)

    final_conv_acts = acts_p[:n, :F4_OUT].astype(jnp.float32)
    out = y_p[:num_graphs, :OUT_DIM]
    return out, final_conv_acts


# ----------------------------------------------------------------------------
# Pure-JAX f32 reference (for validation)
# ----------------------------------------------------------------------------
def reference_forward(params, x, edge_index, batch_index, num_graphs):
    n = x.shape[0]
    a_hat = build_normalized_adjacency(edge_index, n)
    pool = build_pool_matrix(batch_index, num_graphs, n)

    def gcn(h, w, b):
        return a_hat @ (h @ w) + b

    h = jax.nn.relu(gcn(x, params["conv1_w"], params["conv1_b"]))
    h = jax.nn.relu(gcn(h, params["conv2_w"], params["conv2_b"]))
    h = jax.nn.relu(gcn(h, params["conv3_w"], params["conv3_b"]))
    acts = gcn(h, params["conv4_w"], params["conv4_b"])
    h = jax.nn.relu(acts)
    pooled = pool @ h
    y = jax.nn.relu(pooled @ params["out_w"] + params["out_b"])
    y = y @ params["out2_w"] + params["out2_b"]
    return y, acts


# ----------------------------------------------------------------------------
# Main
# ----------------------------------------------------------------------------
if __name__ == "__main__":
    key = jax.random.PRNGKey(0)
    k_x, _ = jax.random.split(key)

    nodes_per_graph = 96
    num_graphs = 2
    num_nodes = nodes_per_graph * num_graphs     # 192 -> padded to 256
    in_features = 42

    # node features [N, 42]
    x = jax.random.normal(k_x, (num_nodes, in_features), jnp.float32)

    # edges: ring within each graph (both directions) -> edge_index [2, E]
    src_list, dst_list = [], []
    for g in range(num_graphs):
        base = g * nodes_per_graph
        for i in range(nodes_per_graph):
            u = base + i
            v = base + (i + 1) % nodes_per_graph
            src_list += [u, v]
            dst_list += [v, u]
    edge_index = jnp.array([src_list, dst_list], dtype=jnp.int32)

    # batch assignment [N]
    batch_index = jnp.repeat(jnp.arange(num_graphs, dtype=jnp.int32), nodes_per_graph)

    params = init_params(seed=42)
    padded_params = prepare_padded_params(params)   # hoisted: padded/bf16 once

    # Fully-fused single-kernel path (what the heuristic picks at this size).
    out_f, acts_f = graph_neural_network_forward(
        padded_params, x, edge_index, batch_index, num_graphs, force_mode="fused")
    # Row-tiled multi-kernel path (forced, with a 128-row grid -> 2 grid steps).
    out_t, acts_t = graph_neural_network_forward(
        padded_params, x, edge_index, batch_index, num_graphs,
        force_mode="tiled", row_block=128)
    jax.block_until_ready((out_f, acts_f, out_t, acts_t))

    assert out_f.shape == (num_graphs, 1) and out_t.shape == (num_graphs, 1)
    assert acts_f.shape == (num_nodes, F4_OUT) and acts_t.shape == (num_nodes, F4_OUT)
    for t in (out_f, acts_f, out_t, acts_t):
        assert bool(jnp.all(jnp.isfinite(t)))

    def nmax_err(a, b):
        den = jnp.maximum(1.0, jnp.max(jnp.abs(b)))
        return float(jnp.max(jnp.abs(a - b)) / den)

    # The two kernel paths must agree closely (same bf16 quantization points).
    assert nmax_err(out_t, out_f) < 1e-2
    assert nmax_err(acts_t, acts_f) < 1e-2

    # Loose check against the pure-JAX f32 reference (bf16 MXU inputs, f32 acc).
    out_ref, acts_ref = reference_forward(params, x, edge_index, batch_index, num_graphs)
    assert nmax_err(out_f, out_ref) < 0.08
    assert nmax_err(acts_f, acts_ref) < 0.08

    print("KERNEL_OK")
</pallas_src>

<mosaic_0001>
module attributes {stable_mosaic.version = 11 : i64} {
  func.func private @main(%arg0: i32) attributes {dimension_semantics = [#tpu.dimension_semantics<core_parallel>], iteration_bounds = array<i64: 2>, tpu.core_type = #tpu.core_type<sc_scalar_subcore>, window_params = []} {
    return
  }
}

module attributes {stable_mosaic.version = 11 : i64} {
  func.func private @main(%arg0: i32) attributes {dimension_semantics = [#tpu.dimension_semantics<core_parallel>], iteration_bounds = array<i64: 2>, tpu.core_type = #tpu.core_type<sc_scalar_subcore>, window_params = []} {
    return
  }
}

module attributes {stable_mosaic.version = 11 : i64} {
  func.func @_fused_gnn_kernel(%arg0: memref<256x256xbf16, #tpu.memory_space<vmem>>, %arg1: memref<256x128xbf16, #tpu.memory_space<vmem>>, %arg2: memref<8x256xbf16, #tpu.memory_space<vmem>>, %arg3: memref<128x128xbf16, #tpu.memory_space<vmem>>, %arg4: memref<1x128xf32, #tpu.memory_space<vmem>>, %arg5: memref<128x512xbf16, #tpu.memory_space<vmem>>, %arg6: memref<1x512xf32, #tpu.memory_space<vmem>>, %arg7: memref<512x256xbf16, #tpu.memory_space<vmem>>, %arg8: memref<1x256xf32, #tpu.memory_space<vmem>>, %arg9: memref<256x128xbf16, #tpu.memory_space<vmem>>, %arg10: memref<1x128xf32, #tpu.memory_space<vmem>>, %arg11: memref<128x128xbf16, #tpu.memory_space<vmem>>, %arg12: memref<1x128xf32, #tpu.memory_space<vmem>>, %arg13: memref<128x128xbf16, #tpu.memory_space<vmem>>, %arg14: memref<1x128xf32, #tpu.memory_space<vmem>>, %arg15: memref<256x128xbf16, #tpu.memory_space<vmem>>, %arg16: memref<8x128xf32, #tpu.memory_space<vmem>>) attributes {dimension_semantics = [], scalar_prefetch = 0 : i64, scratch_operands = 0 : i64, tpu.core_type = #tpu.core_type<tc>} {
    %c0 = arith.constant 0 : index
    %c0_0 = arith.constant 0 : index
    %0 = vector.load %arg0[%c0, %c0_0] : memref<256x256xbf16, #tpu.memory_space<vmem>>, vector<256x256xbf16>
    %c0_1 = arith.constant 0 : index
    %c0_2 = arith.constant 0 : index
    %1 = vector.load %arg1[%c0_1, %c0_2] : memref<256x128xbf16, #tpu.memory_space<vmem>>, vector<256x128xbf16>
    %c0_3 = arith.constant 0 : index
    %c0_4 = arith.constant 0 : index
    %2 = vector.load %arg3[%c0_3, %c0_4] : memref<128x128xbf16, #tpu.memory_space<vmem>>, vector<128x128xbf16>
    %c0_5 = arith.constant 0 : index
    %c0_6 = arith.constant 0 : index
    %3 = vector.load %arg4[%c0_5, %c0_6] : memref<1x128xf32, #tpu.memory_space<vmem>>, vector<1x128xf32>
    %cst = arith.constant dense<0.000000e+00> : vector<256x128xf32>
    %4 = tpu.matmul %0, %1, %cst {dimension_numbers = #tpu.dot_dimension_numbers<[1], [0], [0], [1], [0, 0, 1, 1], [], []>} : vector<256x256xbf16>, vector<256x128xbf16>, vector<256x128xf32> -> vector<256x128xf32>
    %5 = arith.truncf %4 : vector<256x128xf32> to vector<256x128xbf16>
    %cst_7 = arith.constant dense<0.000000e+00> : vector<256x128xf32>
    %6 = tpu.matmul %5, %2, %cst_7 {dimension_numbers = #tpu.dot_dimension_numbers<[1], [0], [0], [1], [0, 0, 1, 1], [], []>} : vector<256x128xbf16>, vector<128x128xbf16>, vector<256x128xf32> -> vector<256x128xf32>
    %7 = vector.broadcast %3 : vector<1x128xf32> to vector<256x128xf32>
    %8 = arith.addf %6, %7 : vector<256x128xf32>
    %cst_8 = arith.constant 0.000000e+00 : f32
    %9 = vector.broadcast %cst_8 : f32 to vector<256x128xf32>
    %10 = arith.maximumf %8, %9 : vector<256x128xf32>
    %11 = arith.truncf %10 : vector<256x128xf32> to vector<256x128xbf16>
    %c0_9 = arith.constant 0 : index
    %c0_10 = arith.constant 0 : index
    %12 = vector.load %arg5[%c0_9, %c0_10] : memref<128x512xbf16, #tpu.memory_space<vmem>>, vector<128x512xbf16>
    %c0_11 = arith.constant 0 : index
    %c0_12 = arith.constant 0 : index
    %13 = vector.load %arg6[%c0_11, %c0_12] : memref<1x512xf32, #tpu.memory_space<vmem>>, vector<1x512xf32>
    %cst_13 = arith.constant dense<0.000000e+00> : vector<256x128xf32>
    %14 = tpu.matmul %0, %11, %cst_13 {dimension_numbers = #tpu.dot_dimension_numbers<[1], [0], [0], [1], [0, 0, 1, 1], [], []>} : vector<256x256xbf16>, vector<256x128xbf16>, vector<256x128xf32> -> vector<256x128xf32>
    %15 = arith.truncf %14 : vector<256x128xf32> to vector<256x128xbf16>
    %cst_14 = arith.constant dense<0.000000e+00> : vector<256x512xf32>
    %16 = tpu.matmul %15, %12, %cst_14 {dimension_numbers = #tpu.dot_dimension_numbers<[1], [0], [0], [1], [0, 0, 1, 1], [], []>} : vector<256x128xbf16>, vector<128x512xbf16>, vector<256x512xf32> -> vector<256x512xf32>
    %17 = vector.broadcast %13 : vector<1x512xf32> to vector<256x512xf32>
    %18 = arith.addf %16, %17 : vector<256x512xf32>
    %cst_15 = arith.constant 0.000000e+00 : f32
    %19 = vector.broadcast %cst_15 : f32 to vector<256x512xf32>
    %20 = arith.maximumf %18, %19 : vector<256x512xf32>
    %21 = arith.truncf %20 : vector<256x512xf32> to vector<256x512xbf16>
    %c0_16 = arith.constant 0 : index
    %c0_17 = arith.constant 0 : index
    %22 = vector.load %arg7[%c0_16, %c0_17] : memref<512x256xbf16, #tpu.memory_space<vmem>>, vector<512x256xbf16>
    %c0_18 = arith.constant 0 : index
    %c0_19 = arith.constant 0 : index
    %23 = vector.load %arg8[%c0_18, %c0_19] : memref<1x256xf32, #tpu.memory_space<vmem>>, vector<1x256xf32>
    %cst_20 = arith.constant dense<0.000000e+00> : vector<256x256xf32>
    %24 = tpu.matmul %21, %22, %cst_20 {dimension_numbers = #tpu.dot_dimension_numbers<[1], [0], [0], [1], [0, 0, 1, 1], [], []>} : vector<256x512xbf16>, vector<512x256xbf16>, vector<256x256xf32> -> vector<256x256xf32>
    %25 = arith.truncf %24 : vector<256x256xf32> to vector<256x256xbf16>
    %cst_21 = arith.constant dense<0.000000e+00> : vector<256x256xf32>
    %26 = tpu.matmul %0, %25, %cst_21 {dimension_numbers = #tpu.dot_dimension_numbers<[1], [0], [0], [1], [0, 0, 1, 1], [], []>} : vector<256x256xbf16>, vector<256x256xbf16>, vector<256x256xf32> -> vector<256x256xf32>
    %27 = vector.broadcast %23 : vector<1x256xf32> to vector<256x256xf32>
    %28 = arith.addf %26, %27 : vector<256x256xf32>
    %cst_22 = arith.constant 0.000000e+00 : f32
    %29 = vector.broadcast %cst_22 : f32 to vector<256x256xf32>
    %30 = arith.maximumf %28, %29 : vector<256x256xf32>
    %31 = arith.truncf %30 : vector<256x256xf32> to vector<256x256xbf16>
    %c0_23 = arith.constant 0 : index
    %c0_24 = arith.constant 0 : index
    %32 = vector.load %arg9[%c0_23, %c0_24] : memref<256x128xbf16, #tpu.memory_space<vmem>>, vector<256x128xbf16>
    %c0_25 = arith.constant 0 : index
    %c0_26 = arith.constant 0 : index
    %33 = vector.load %arg10[%c0_25, %c0_26] : memref<1x128xf32, #tpu.memory_space<vmem>>, vector<1x128xf32>
    %cst_27 = arith.constant dense<0.000000e+00> : vector<256x128xf32>
    %34 = tpu.matmul %31, %32, %cst_27 {dimension_numbers = #tpu.dot_dimension_numbers<[1], [0], [0], [1], [0, 0, 1, 1], [], []>} : vector<256x256xbf16>, vector<256x128xbf16>, vector<256x128xf32> -> vector<256x128xf32>
    %35 = arith.truncf %34 : vector<256x128xf32> to vector<256x128xbf16>
    %cst_28 = arith.constant dense<0.000000e+00> : vector<256x128xf32>
    %36 = tpu.matmul %0, %35, %cst_28 {dimension_numbers = #tpu.dot_dimension_numbers<[1], [0], [0], [1], [0, 0, 1, 1], [], []>} : vector<256x256xbf16>, vector<256x128xbf16>, vector<256x128xf32> -> vector<256x128xf32>
    %37 = vector.broadcast %33 : vector<1x128xf32> to vector<256x128xf32>
    %38 = arith.addf %36, %37 : vector<256x128xf32>
    %39 = arith.truncf %38 : vector<256x128xf32> to vector<256x128xbf16>
    %c0_29 = arith.constant 0 : index
    %c0_30 = arith.constant 0 : index
    %40 = vector.load %arg15[%c0_29, %c0_30] : memref<256x128xbf16, #tpu.memory_space<vmem>>, vector<256x128xbf16>
    tpu.vector_store %arg15[%c0_29, %c0_30], %39 {strides = array<i32>} : memref<256x128xbf16, #tpu.memory_space<vmem>>, vector<256x128xbf16>,
    %cst_31 = arith.constant 0.000000e+00 : f32
    %41 = vector.broadcast %cst_31 : f32 to vector<256x128xf32>
    %42 = arith.maximumf %38, %41 : vector<256x128xf32>
    %43 = arith.truncf %42 : vector<256x128xf32> to vector<256x128xbf16>
    %c0_32 = arith.constant 0 : index
    %c0_33 = arith.constant 0 : index
    %44 = vector.load %arg2[%c0_32, %c0_33] : memref<8x256xbf16, #tpu.memory_space<vmem>>, vector<8x256xbf16>
    %cst_34 = arith.constant dense<0.000000e+00> : vector<8x128xf32>
    %45 = tpu.matmul %44, %43, %cst_34 {dimension_numbers = #tpu.dot_dimension_numbers<[1], [0], [0], [1], [0, 0, 1, 1], [], []>} : vector<8x256xbf16>, vector<256x128xbf16>, vector<8x128xf32> -> vector<8x128xf32>
    %46 = arith.truncf %45 : vector<8x128xf32> to vector<8x128xbf16>
    %c0_35 = arith.constant 0 : index
    %c0_36 = arith.constant 0 : index
    %47 = vector.load %arg11[%c0_35, %c0_36] : memref<128x128xbf16, #tpu.memory_space<vmem>>, vector<128x128xbf16>
    %cst_37 = arith.constant dense<0.000000e+00> : vector<8x128xf32>
    %48 = tpu.matmul %46, %47, %cst_37 {dimension_numbers = #tpu.dot_dimension_numbers<[1], [0], [0], [1], [0, 0, 1, 1], [], []>} : vector<8x128xbf16>, vector<128x128xbf16>, vector<8x128xf32> -> vector<8x128xf32>
    %c0_38 = arith.constant 0 : index
    %c0_39 = arith.constant 0 : index
    %49 = vector.load %arg12[%c0_38, %c0_39] : memref<1x128xf32, #tpu.memory_space<vmem>>, vector<1x128xf32>
    %50 = vector.broadcast %49 : vector<1x128xf32> to vector<8x128xf32>
    %51 = arith.addf %48, %50 : vector<8x128xf32>
    %cst_40 = arith.constant 0.000000e+00 : f32
    %52 = vector.broadcast %cst_40 : f32 to vector<8x128xf32>
    %53 = arith.maximumf %51, %52 : vector<8x128xf32>
    %54 = arith.truncf %53 : vector<8x128xf32> to vector<8x128xbf16>
    %c0_41 = arith.constant 0 : index
    %c0_42 = arith.constant 0 : index
    %55 = vector.load %arg13[%c0_41, %c0_42] : memref<128x128xbf16, #tpu.memory_space<vmem>>, vector<128x128xbf16>
    %cst_43 = arith.constant dense<0.000000e+00> : vector<8x128xf32>
    %56 = tpu.matmul %54, %55, %cst_43 {dimension_numbers = #tpu.dot_dimension_numbers<[1], [0], [0], [1], [0, 0, 1, 1], [], []>} : vector<8x128xbf16>, vector<128x128xbf16>, vector<8x128xf32> -> vector<8x128xf32>
    %c0_44 = arith.constant 0 : index
    %c0_45 = arith.constant 0 : index
    %57 = vector.load %arg14[%c0_44, %c0_45] : memref<1x128xf32, #tpu.memory_space<vmem>>, vector<1x128xf32>
    %58 = vector.broadcast %57 : vector<1x128xf32> to vector<8x128xf32>
    %59 = arith.addf %56, %58 : vector<8x128xf32>
    %c0_46 = arith.constant 0 : index
    %c0_47 = arith.constant 0 : index
    %60 = vector.load %arg16[%c0_46, %c0_47] : memref<8x128xf32, #tpu.memory_space<vmem>>, vector<8x128xf32>
    tpu.vector_store %arg16[%c0_46, %c0_47], %59 {strides = array<i32>} : memref<8x128xf32, #tpu.memory_space<vmem>>, vector<8x128xf32>,
    return
  }
}

</mosaic_0001>

<bundles_post_ra>
// kernel: graph_neural_network_forward.1
= control target key start
LH: loop header
LB: loop body
LE: loop exit
PB: predicated region body
PF: predicated region fallthrough
CT: control target
= control target key end

     0   :  { %vm5166_vm0 = vmmov 0   ;;  %s6758_s1 = inlined_call_operand.vmem [shape: bf16[256,128], index: 1, kind: input, shape index: {}]   ;;  %s6759_s0 = inlined_call_operand.vmem [shape: bf16[256,256], index: 0, kind: input, shape index: {}]   ;;  %s6760_s3 = inlined_call_operand.vmem [shape: bf16[128,128], index: 3, kind: input, shape index: {}]   ;;  %s6761_s4 = inlined_call_operand.vmem [shape: f32[1,128], index: 4, kind: input, shape index: {}]   ;;  %s6762_s5 = inlined_call_operand.vmem [shape: bf16[128,512], index: 5, kind: input, shape index: {}]   ;;  %s6763_s7 = inlined_call_operand.vmem [shape: bf16[512,256], index: 7, kind: input, shape index: {}]   ;;  %s6764_s6 = inlined_call_operand.vmem [shape: f32[1,512], index: 6, kind: input, shape index: {}]   ;;  %s6765_s9 = inlined_call_operand.vmem [shape: bf16[256,128], index: 9, kind: input, shape index: {}]   ;;  %s6766_s8 = inlined_call_operand.vmem [shape: f32[1,256], index: 8, kind: input, shape index: {}]   ;;  %s6767_s10 = inlined_call_operand.vmem [shape: f32[1,128], index: 10, kind: input, shape index: {}]   ;;  %s6768_s2 = inlined_call_operand.vmem [shape: bf16[8,256], index: 2, kind: input, shape index: {}]   ;;  %s6769_s15 = inlined_call_operand.vmem [shape: bf16[256,128], index: 15, kind: output, shape index: {0}]   ;;  %s6770_s11 = inlined_call_operand.vmem [shape: bf16[128,128], index: 11, kind: input, shape index: {}]   ;;  %s6771_s13 = inlined_call_operand.vmem [shape: bf16[128,128], index: 13, kind: input, shape index: {}]   ;;  %s6772_s12 = inlined_call_operand.vmem [shape: f32[1,128], index: 12, kind: input, shape index: {}]   ;;  %s6773_s14 = inlined_call_operand.vmem [shape: f32[1,128], index: 14, kind: input, shape index: {}]   ;;  %s6774_s16 = inlined_call_operand.vmem [shape: f32[8,128], index: 16, kind: output, shape index: {1}]  }
   0x1   :  { %6776 = sst [smem:[#allocation2_spill]] %s6758_s1  ;;  %v5288_v11 = vld [vmem:[%s6759_s0 + $0x4] ss:$8 sps:$4 sm:$0xff]   ;;  %v5309_v17 = vld [vmem:[%s6759_s0] ss:$8 sps:$4 sm:$0xff]   ;;  %v4947_v23 = vld [vmem:[%s6760_s3 + $0x10] sm:$0xff]  }
   0x2   :  { %s6777_s23 = sld [smem:[#allocation2_spill]]  ;;  %422 = vmatprep.mubr.bf16.mxu0 %v5288_v11  ;;  %v5314_v18 = vld [vmem:[%s6759_s0 + $0x14] ss:$8 sps:$4 sm:$0xff]   ;;  %v5321_v19 = vld [vmem:[%s6759_s0 + $0x10] ss:$8 sps:$4 sm:$0xff]   ;;  %v4945_v21 = vld [vmem:[%s6760_s3] sm:$0xff]  }
   0x3   :  { %v5326_v20 = vld [vmem:[%s6759_s0 + $0x24] ss:$8 sps:$4 sm:$0xff]   ;;  %4726 = vmatprep.subr.bf16.mxu1 %v4945_v21  ;;  %v5342_v24 = vld [vmem:[%s6759_s0 + $0x20] ss:$8 sps:$4 sm:$0xff]   ;;  %v4948_v25 = vld [vmem:[%s6760_s3 + $0x18] sm:$0xff]  }
   0x4   :  { %v4946_v22 = vld [vmem:[%s6760_s3 + $0x8] sm:$0xff]   ;;  %4727 = vmatpush3.bf16.msra.mxu1 %v4945_v21  ;;  %v5350_v26 = vld [vmem:[%s6759_s0 + $0x34] ss:$8 sps:$4 sm:$0xff]   ;;  %v5357_v27 = vld [vmem:[%s6759_s0 + $0x30] ss:$8 sps:$4 sm:$0xff]  }
   0x5   :  { %4728 = vmatprep.subr.bf16.mxu1 %v4946_v22  ;;  %v5362_v28 = vld [vmem:[%s6759_s0 + $0x44] ss:$8 sps:$4 sm:$0xff]   ;;  %v5369_v29 = vld [vmem:[%s6759_s0 + $0x40] ss:$8 sps:$4 sm:$0xff]   ;;  %v5374_v30 = vld [vmem:[%s6759_s0 + $0x54] ss:$8 sps:$4 sm:$0xff]  }
   0x6   :  { %v5381_v31 = vld [vmem:[%s6759_s0 + $0x50] ss:$8 sps:$4 sm:$0xff]   ;;  %v5386_v32 = vld [vmem:[%s6759_s0 + $0x64] ss:$8 sps:$4 sm:$0xff]   ;;  %v5393_v33 = vld [vmem:[%s6759_s0 + $0x60] ss:$8 sps:$4 sm:$0xff]  }
   0x7   :  { %v5398_v34 = vld [vmem:[%s6759_s0 + $0x74] ss:$8 sps:$4 sm:$0xff]   ;;  %v5405_v35 = vld [vmem:[%s6759_s0 + $0x70] ss:$8 sps:$4 sm:$0xff]   ;;  %v5410_v36 = vld [vmem:[%s6759_s0 + $0x84] ss:$8 sps:$4 sm:$0xff]  }
   0x8   :  { %v4881_v0 = vld [vmem:[%s6777_s23 + $0x40] sm:$0xff]   ;;  %v4883_v2 = vld [vmem:[%s6777_s23 + $0x48] sm:$0xff]   ;;  %v4885_v4 = vld [vmem:[%s6777_s23 + $0x50] sm:$0xff]   ;;  %4729 = vmatpush3.bf16.msra.mxu1 %v4946_v22 }
   0x9   :  { %v4882_v1 = vld [vmem:[%s6777_s23] sm:$0xff]   ;;  %4214 = vmatprep.subr.bf16.mxu0 %v4881_v0  ;;  %v4884_v3 = vld [vmem:[%s6777_s23 + $0x8] sm:$0xff]   ;;  %v4886_v5 = vld [vmem:[%s6777_s23 + $0x10] sm:$0xff]   ;;  %4730 = vmatprep.subr.bf16.mxu1 %v4947_v23 }
   0xa   :  { %4215 = vmatpush3.bf16.msra.mxu0 %v4882_v1  ;;  %v4887_v6 = vld [vmem:[%s6777_s23 + $0x58] sm:$0xff]   ;;  %v4889_v8 = vld [vmem:[%s6777_s23 + $0x60] sm:$0xff]   ;;  %v4891_v10 = vld [vmem:[%s6777_s23 + $0x68] sm:$0xff]  }
   0xb   :  { %4216 = vmatprep.subr.bf16.mxu0 %v4883_v2  ;;  %v4888_v7 = vld [vmem:[%s6777_s23 + $0x18] sm:$0xff]   ;;  %v4890_v9 = vld [vmem:[%s6777_s23 + $0x20] sm:$0xff]   ;;  %v4892_v12 = vld [vmem:[%s6777_s23 + $0x28] sm:$0xff]  }
   0xc   :  { %v4893_v13 = vld [vmem:[%s6777_s23 + $0x70] sm:$0xff]   ;;  %v4895_v15 = vld [vmem:[%s6777_s23 + $0x78] sm:$0xff]   ;;  %4731 = vmatpush3.bf16.msra.mxu1 %v4947_v23  ;;  %v5417_v37 = vld [vmem:[%s6759_s0 + $0x80] ss:$8 sps:$4 sm:$0xff]  }
   0xd   :  { %v4894_v14 = vld [vmem:[%s6777_s23 + $0x30] sm:$0xff]   ;;  %v4896_v16 = vld [vmem:[%s6777_s23 + $0x38] sm:$0xff]   ;;  %4732 = vmatprep.subr.bf16.mxu1 %v4948_v25  ;;  %v5434_v40 = vld [vmem:[%s6759_s0 + $0xa4] ss:$8 sps:$4 sm:$0xff]  }
   0xe   :  { %4217 = vmatpush3.bf16.msra.mxu0 %v4884_v3  ;;  %v5422_v38 = vld [vmem:[%s6759_s0 + $0x94] ss:$8 sps:$4 sm:$0xff]   ;;  %v5429_v39 = vld [vmem:[%s6759_s0 + $0x90] ss:$8 sps:$4 sm:$0xff]   ;;  %v5441_v41 = vld [vmem:[%s6759_s0 + $0xa0] ss:$8 sps:$4 sm:$0xff]  }
   0xf   :  { %4218 = vmatprep.subr.bf16.mxu0 %v4885_v4  ;;  %v5446_v42 = vld [vmem:[%s6759_s0 + $0xb4] ss:$8 sps:$4 sm:$0xff]   ;;  %v4949_v43 = vld [vmem:[%s6760_s3 + $0x20] sm:$0xff]   ;;  %v5456_v44 = vld [vmem:[%s6759_s0 + $0xb0] ss:$8 sps:$4 sm:$0xff]  }
  0x10   :  { %4733 = vmatpush3.bf16.msra.mxu1 %v4948_v25  ;;  %v5461_v45 = vld [vmem:[%s6759_s0 + $0xc4] ss:$8 sps:$4 sm:$0xff]   ;;  %v4951_v47 = vld [vmem:[%s6760_s3 + $0x30] sm:$0xff]   ;;  %v5474_v48 = vld [vmem:[%s6759_s0 + $0xc0] ss:$8 sps:$4 sm:$0xff]  }
  0x11   :  { %4734 = vmatprep.subr.bf16.mxu1 %v4949_v43  ;;  %v4950_v46 = vld [vmem:[%s6760_s3 + $0x28] sm:$0xff]   ;;  %v5479_v49 = vld [vmem:[%s6759_s0 + $0xd4] ss:$8 sps:$4 sm:$0xff]   ;;  %v5489_v51 = vld [vmem:[%s6759_s0 + $0xd0] ss:$8 sps:$4 sm:$0xff]  }
  0x12   :  { %4219 = vmatpush3.bf16.msra.mxu0 %v4886_v5  ;;  %v4952_v50 = vld [vmem:[%s6760_s3 + $0x38] sm:$0xff]   ;;  %v5494_v52 = vld [vmem:[%s6759_s0 + $0xe4] ss:$8 sps:$4 sm:$0xff]   ;;  %v5501_v53 = vld [vmem:[%s6759_s0 + $0xe0] ss:$8 sps:$4 sm:$0xff]  }
  0x13   :  { %4220 = vmatprep.subr.bf16.mxu0 %v4887_v6  ;;  %v5506_v54 = vld [vmem:[%s6759_s0 + $0xf4] ss:$8 sps:$4 sm:$0xff]   ;;  %v5513_v55 = vld [vmem:[%s6759_s0 + $0xf0] ss:$8 sps:$4 sm:$0xff]  }
  0x14   :  { %4735 = vmatpush3.bf16.msra.mxu1 %v4949_v43 }
  0x15   :  { %4736 = vmatprep.subr.bf16.mxu1 %v4950_v46 }
  0x16   :  { %4221 = vmatpush3.bf16.msra.mxu0 %v4888_v7 }
  0x17   :  { %4222 = vmatprep.subr.bf16.mxu0 %v4889_v8 }
  0x18   :  { %4737 = vmatpush3.bf16.msra.mxu1 %v4950_v46 }
  0x19   :  { %4738 = vmatprep.subr.bf16.mxu1 %v4951_v47 }
  0x1a   :  { %4223 = vmatpush3.bf16.msra.mxu0 %v4890_v9 }
  0x1b   :  { %4224 = vmatprep.subr.bf16.mxu0 %v4891_v10 }
  0x1c   :  { %4739 = vmatpush3.bf16.msra.mxu1 %v4951_v47 }
  0x1d   :  { %4740 = vmatprep.subr.bf16.mxu1 %v4952_v50 }
  0x1e   :  { %4225 = vmatpush3.bf16.msra.mxu0 %v4892_v12 }
  0x1f   :  { %4226 = vmatprep.subr.bf16.mxu0 %v4893_v13 }
  0x20   :  { %4741 = vmatpush3.bf16.msra.mxu1 %v4952_v50 }
  0x22   :  { %4227 = vmatpush3.bf16.msra.mxu0 %v4894_v14 }
  0x23   :  { %4228 = vmatprep.subr.bf16.mxu0 %v4895_v15 }
  0x26   :  { %4229 = vmatpush3.bf16.msra.mxu0 %v4896_v16 }
  0x29   :  { %423 = vmatmul.mubr.bf16.vlgmr.msra.gmra.mrb[0].mxu0 %v5309_v17 }
  0x2a   :  { %430 = vmatprep.mubr.bf16.mxu0 %v5314_v18 }
  0x31   :  { %431 = vmatmul.mubr.bf16.gmra.mrb[4].mxu0 %v5321_v19 }
  0x32   :  { %438 = vmatprep.mubr.bf16.mxu0 %v5326_v20 }
  0x39   :  { %439 = vmatmul.mubr.bf16.gmra.mrb[8].mxu0 %v5342_v24 }
  0x3a   :  { %446 = vmatprep.mubr.bf16.mxu0 %v5350_v26 }
  0x41   :  { %447 = vmatmul.mubr.bf16.gmra.mrb[12].mxu0 %v5357_v27 }
  0x42   :  { %454 = vmatprep.mubr.bf16.mxu0 %v5362_v28 }
  0x49   :  { %455 = vmatmul.mubr.bf16.gmra.mrb[16].mxu0 %v5369_v29 }
  0x4a   :  { %462 = vmatprep.mubr.bf16.mxu0 %v5374_v30 }
  0x51   :  { %463 = vmatmul.mubr.bf16.gmra.mrb[20].mxu0 %v5381_v31 }
  0x52   :  { %470 = vmatprep.mubr.bf16.mxu0 %v5386_v32 }
  0x59   :  { %471 = vmatmul.mubr.bf16.gmra.mrb[24].mxu0 %v5393_v33 }
  0x5a   :  { %478 = vmatprep.mubr.bf16.mxu0 %v5398_v34 }
  0x61   :  { %479 = vmatmul.mubr.bf16.gmra.mrb[28].mxu0 %v5405_v35 }
  0x62   :  { %486 = vmatprep.mubr.bf16.mxu0 %v5410_v36 }
  0x69   :  { %487 = vmatmul.mubr.bf16.gmra.mrb[32].mxu0 %v5417_v37 }
  0x6a   :  { %494 = vmatprep.mubr.bf16.mxu0 %v5422_v38 }
  0x71   :  { %495 = vmatmul.mubr.bf16.gmra.mrb[36].mxu0 %v5429_v39 }
  0x72   :  { %502 = vmatprep.mubr.bf16.mxu0 %v5434_v40 }
  0x79   :  { %503 = vmatmul.mubr.bf16.gmra.mrb[40].mxu0 %v5441_v41 }
  0x7a   :  { %510 = vmatprep.mubr.bf16.mxu0 %v5446_v42 }
  0x81   :  { %511 = vmatmul.mubr.bf16.gmra.mrb[44].mxu0 %v5456_v44 }
  0x82   :  { %518 = vmatprep.mubr.bf16.mxu0 %v5461_v45 }
  0x89   :  { %519 = vmatmul.mubr.bf16.gmra.mrb[48].mxu0 %v5474_v48 }
  0x8a   :  { %526 = vmatprep.mubr.bf16.mxu0 %v5479_v49 }
  0x91   :  { %527 = vmatmul.mubr.bf16.gmra.mrb[52].mxu0 %v5489_v51 }
  0x92   :  { %534 = vmatprep.mubr.bf16.mxu0 %v5494_v52 }
  0x99   :  { %535 = vmatmul.mubr.bf16.gmra.mrb[56].mxu0 %v5501_v53 }
  0x9a   :  { %542 = vmatprep.mubr.bf16.mxu0 %v5506_v54 }
  0xa1   :  { %543 = vmatmul.mubr.bf16.gmra.mrb[60].mxu0 %v5513_v55 }
  0xfc   :  { %v4230_v56 = vpop.f32.mrb[0].mxu0 }
  0xfd   :  { %v4231_v57 = vpop.f32.mrb[1].mxu0 }
  0xfe   :  { %v4233_v58 = vpop.f32.mrb[2].mxu0  ;;  %v4232_v59 = vadd.f32 %v4231_v57, %v4230_v56 }
  0xff   :  { %v4234_v60 = vpop.f32.mrb[3].mxu0 }
 0x100   :  { %v4235_v61 = vadd.f32 %v4234_v60, %v4233_v58 }
 0x102   :  { %v551_v62 = vpack.c.bf16 %v4235_v61, %v4232_v59 }
 0x104   :  { %v4236_v63 = vpop.f32.mrb[4].mxu0  ;;  %4742 = vmatprep.mubr.bf16.mxu1 %v551_v62 }
 0x105   :  { %v4237_v0 = vpop.f32.mrb[5].mxu0 }
 0x106   :  { %v4238_v1 = vadd.f32 %v4237_v0, %v4236_v63  ;;  %v4239_v2 = vpop.f32.mrb[6].mxu0 }
 0x107   :  { %v4240_v3 = vpop.f32.mrb[7].mxu0 }
 0x108   :  { %v4241_v4 = vadd.f32 %v4240_v3, %v4239_v2 }
 0x10a   :  { %v552_v5 = vpack.c.bf16 %v4241_v4, %v4238_v1 }
 0x10c   :  { %v4242_v6 = vpop.f32.mrb[8].mxu0  ;;  %4743 = vmatmul.mubr.bf16.vlgmr.msra.gmra.mrb[0].mxu1 %v552_v5 }
 0x10d   :  { %v4243_v7 = vpop.f32.mrb[9].mxu0 }
 0x10e   :  { %v4244_v8 = vadd.f32 %v4243_v7, %v4242_v6  ;;  %v4245_v9 = vpop.f32.mrb[10].mxu0 }
 0x10f   :  { %v4246_v10 = vpop.f32.mrb[11].mxu0 }
 0x110   :  { %v4247_v12 = vadd.f32 %v4246_v10, %v4245_v9 }
 0x112   :  { %v553_v13 = vpack.c.bf16 %v4247_v12, %v4244_v8 }
 0x114   :  { %v4248_v14 = vpop.f32.mrb[12].mxu0  ;;  %4746 = vmatprep.mubr.bf16.mxu1 %v553_v13 }
 0x115   :  { %v4249_v15 = vpop.f32.mrb[13].mxu0 }
 0x116   :  { %v4250_v16 = vadd.f32 %v4249_v15, %v4248_v14  ;;  %v4251_v21 = vpop.f32.mrb[14].mxu0 }
 0x117   :  { %v4252_v22 = vpop.f32.mrb[15].mxu0 }
 0x118   :  { %v4253_v23 = vadd.f32 %v4252_v22, %v4251_v21 }
 0x11a   :  { %v554_v25 = vpack.c.bf16 %v4253_v23, %v4250_v16 }
 0x11c   :  { %v4254_v43 = vpop.f32.mrb[16].mxu0  ;;  %4747 = vmatmul.mubr.bf16.gmra.mrb[4].mxu1 %v554_v25 }
 0x11d   :  { %v4255_v46 = vpop.f32.mrb[17].mxu0 }
 0x11e   :  { %v4256_v47 = vadd.f32 %v4255_v46, %v4254_v43  ;;  %v4257_v50 = vpop.f32.mrb[18].mxu0 }
 0x11f   :  { %v4258_v56 = vpop.f32.mrb[19].mxu0 }
 0x120   :  { %v4259_v57 = vadd.f32 %v4258_v56, %v4257_v50 }
 0x122   :  { %v555_v58 = vpack.c.bf16 %v4259_v57, %v4256_v47 }
 0x124   :  { %v4260_v59 = vpop.f32.mrb[20].mxu0  ;;  %4750 = vmatprep.mubr.bf16.mxu1 %v555_v58 }
 0x125   :  { %v4261_v60 = vpop.f32.mrb[21].mxu0 }
 0x126   :  { %v4262_v61 = vadd.f32 %v4261_v60, %v4260_v59  ;;  %v4263_v62 = vpop.f32.mrb[22].mxu0 }
 0x127   :  { %v4264_v63 = vpop.f32.mrb[23].mxu0 }
 0x128   :  { %v4265_v0 = vadd.f32 %v4264_v63, %v4263_v62 }
 0x12a   :  { %v556_v1 = vpack.c.bf16 %v4265_v0, %v4262_v61 }
 0x12c   :  { %v4266_v2 = vpop.f32.mrb[24].mxu0  ;;  %4751 = vmatmul.mubr.bf16.gmra.mrb[8].mxu1 %v556_v1 }
 0x12d   :  { %v4267_v3 = vpop.f32.mrb[25].mxu0 }
 0x12e   :  { %v4268_v4 = vadd.f32 %v4267_v3, %v4266_v2  ;;  %v4269_v5 = vpop.f32.mrb[26].mxu0 }
 0x12f   :  { %v4270_v6 = vpop.f32.mrb[27].mxu0 }
 0x130   :  { %v4271_v7 = vadd.f32 %v4270_v6, %v4269_v5 }
 0x132   :  { %v557_v8 = vpack.c.bf16 %v4271_v7, %v4268_v4 }
 0x134   :  { %v4272_v9 = vpop.f32.mrb[28].mxu0  ;;  %4754 = vmatprep.mubr.bf16.mxu1 %v557_v8 }
 0x135   :  { %v4273_v10 = vpop.f32.mrb[29].mxu0 }
 0x136   :  { %v4274_v12 = vadd.f32 %v4273_v10, %v4272_v9  ;;  %v4275_v13 = vpop.f32.mrb[30].mxu0 }
 0x137   :  { %v4276_v14 = vpop.f32.mrb[31].mxu0 }
 0x138   :  { %v4277_v15 = vadd.f32 %v4276_v14, %v4275_v13 }
 0x13a   :  { %v558_v16 = vpack.c.bf16 %v4277_v15, %v4274_v12 }
 0x13c   :  { %v4278_v21 = vpop.f32.mrb[32].mxu0  ;;  %4755 = vmatmul.mubr.bf16.gmra.mrb[12].mxu1 %v558_v16 }
 0x13d   :  { %v4279_v22 = vpop.f32.mrb[33].mxu0 }
 0x13e   :  { %v4280_v23 = vadd.f32 %v4279_v22, %v4278_v21  ;;  %v4281_v25 = vpop.f32.mrb[34].mxu0 }
 0x13f   :  { %v4282_v43 = vpop.f32.mrb[35].mxu0 }
 0x140   :  { %v4283_v46 = vadd.f32 %v4282_v43, %v4281_v25 }
 0x142   :  { %v559_v47 = vpack.c.bf16 %v4283_v46, %v4280_v23 }
 0x144   :  { %v4284_v50 = vpop.f32.mrb[36].mxu0  ;;  %4758 = vmatprep.mubr.bf16.mxu1 %v559_v47 }
 0x145   :  { %v4285_v56 = vpop.f32.mrb[37].mxu0 }
 0x146   :  { %v4286_v57 = vadd.f32 %v4285_v56, %v4284_v50  ;;  %v4287_v58 = vpop.f32.mrb[38].mxu0 }
 0x147   :  { %v4288_v59 = vpop.f32.mrb[39].mxu0 }
 0x148   :  { %v4289_v60 = vadd.f32 %v4288_v59, %v4287_v58 }
 0x14a   :  { %v560_v61 = vpack.c.bf16 %v4289_v60, %v4286_v57 }
 0x14c   :  { %v4290_v62 = vpop.f32.mrb[40].mxu0  ;;  %4759 = vmatmul.mubr.bf16.gmra.mrb[16].mxu1 %v560_v61 }
 0x14d   :  { %v4291_v63 = vpop.f32.mrb[41].mxu0 }
 0x14e   :  { %v4292_v0 = vadd.f32 %v4291_v63, %v4290_v62  ;;  %v4293_v1 = vpop.f32.mrb[42].mxu0 }
 0x14f   :  { %v4294_v2 = vpop.f32.mrb[43].mxu0 }
 0x150   :  { %v4295_v3 = vadd.f32 %v4294_v2, %v4293_v1 }
 0x152   :  { %v561_v4 = vpack.c.bf16 %v4295_v3, %v4292_v0 }
 0x154   :  { %v4296_v5 = vpop.f32.mrb[44].mxu0  ;;  %4762 = vmatprep.mubr.bf16.mxu1 %v561_v4 }
 0x155   :  { %v4297_v6 = vpop.f32.mrb[45].mxu0 }
 0x156   :  { %v4298_v7 = vadd.f32 %v4297_v6, %v4296_v5  ;;  %v4299_v8 = vpop.f32.mrb[46].mxu0 }
 0x157   :  { %v4300_v9 = vpop.f32.mrb[47].mxu0 }
 0x158   :  { %v4301_v10 = vadd.f32 %v4300_v9, %v4299_v8  ;;  %v5520_v8 = vld [vmem:[%s6761_s4] ss:$0 sm:$0xff] }
 0x15a   :  { %v562_v12 = vpack.c.bf16 %v4301_v10, %v4298_v7 }
 0x15c   :  { %v4302_v13 = vpop.f32.mrb[48].mxu0  ;;  %4763 = vmatmul.mubr.bf16.gmra.mrb[20].mxu1 %v562_v12 }
 0x15d   :  { %v4303_v14 = vpop.f32.mrb[49].mxu0 }
 0x15e   :  { %v4304_v15 = vadd.f32 %v4303_v14, %v4302_v13  ;;  %v4305_v16 = vpop.f32.mrb[50].mxu0 }
 0x15f   :  { %v4306_v21 = vpop.f32.mrb[51].mxu0 }
 0x160   :  { %v4307_v22 = vadd.f32 %v4306_v21, %v4305_v16 }
 0x162   :  { %v563_v23 = vpack.c.bf16 %v4307_v22, %v4304_v15 }
 0x164   :  { %v4308_v25 = vpop.f32.mrb[52].mxu0  ;;  %4766 = vmatprep.mubr.bf16.mxu1 %v563_v23 }
 0x165   :  { %v4309_v43 = vpop.f32.mrb[53].mxu0 }
 0x166   :  { %v4310_v46 = vadd.f32 %v4309_v43, %v4308_v25  ;;  %v4311_v47 = vpop.f32.mrb[54].mxu0 }
 0x167   :  { %v4312_v50 = vpop.f32.mrb[55].mxu0 }
 0x168   :  { %v4313_v56 = vadd.f32 %v4312_v50, %v4311_v47 }
 0x16a   :  { %v564_v57 = vpack.c.bf16 %v4313_v56, %v4310_v46 }
 0x16c   :  { %v4314_v58 = vpop.f32.mrb[56].mxu0  ;;  %4767 = vmatmul.mubr.bf16.gmra.mrb[24].mxu1 %v564_v57 }
 0x16d   :  { %v4315_v59 = vpop.f32.mrb[57].mxu0 }
 0x16e   :  { %v4316_v60 = vadd.f32 %v4315_v59, %v4314_v58  ;;  %v4317_v61 = vpop.f32.mrb[58].mxu0 }
 0x16f   :  { %v4318_v62 = vpop.f32.mrb[59].mxu0 }
 0x170   :  { %v4319_v63 = vadd.f32 %v4318_v62, %v4317_v61 }
 0x172   :  { %v565_v0 = vpack.c.bf16 %v4319_v63, %v4316_v60 }
 0x174   :  { %v4320_v1 = vpop.f32.mrb[60].mxu0  ;;  %4770 = vmatprep.mubr.bf16.mxu1 %v565_v0 }
 0x175   :  { %v4321_v2 = vpop.f32.mrb[61].mxu0 }
 0x176   :  { %v4322_v3 = vadd.f32 %v4321_v2, %v4320_v1  ;;  %v4323_v4 = vpop.f32.mrb[62].mxu0 }
 0x177   :  { %v4324_v5 = vpop.f32.mrb[63].mxu0 }
 0x178   :  { %v4325_v6 = vadd.f32 %v4324_v5, %v4323_v4 }
 0x17a   :  { %v566_v7 = vpack.c.bf16 %v4325_v6, %v4322_v3 }
 0x17c   :  { %4771 = vmatmul.mubr.bf16.gmra.mrb[28].mxu1 %v566_v7 }
 0x17d   :  { %895 = vmatprep.mubr.bf16.mxu1 %v5288_v11 }
 0x1df   :  { %v4744_v9 = vpop.f32.mrb[0].mxu1 }
 0x1e0   :  { %v664_v10 = vadd.f32 %v4744_v9, %v5520_v8  ;;  %v655_v12 = vpop.f32.mrb[1].mxu1 }
 0x1e1   :  { %v656_v13 = vadd.f32 %v5520_v8, %v655_v12  ;;  %v4745_v14 = vpop.f32.mrb[2].mxu1 }
 0x1e2   :  { %v667_v15 = vadd.f32 %v4745_v14, %v5520_v8  ;;  %v658_v16 = vpop.f32.mrb[3].mxu1  ;;  %v784_v22 = vmax.f32 %v664_v10, 0.0 }
 0x1e3   :  { %v659_v21 = vadd.f32 %v5520_v8, %v658_v16  ;;  %v782_v11 = vmax.f32 %v656_v13, 0.0 }
 0x1e4   :  { %v785_v23 = vmax.f32 %v667_v15, 0.0 }
 0x1e5   :  { %v783_v25 = vmax.f32 %v659_v21, 0.0 }
 0x1e6   :  { %v815_v43 = vpack.c.bf16 %v785_v23, %v784_v22 }
 0x1e7   :  { %v814_v46 = vpack.c.bf16 %v783_v25, %v782_v11 }
 0x1ef   :  { %v4748_v47 = vpop.f32.mrb[4].mxu1 }
 0x1f0   :  { %v680_v50 = vadd.f32 %v4748_v47, %v5520_v8  ;;  %v671_v56 = vpop.f32.mrb[5].mxu1 }
 0x1f1   :  { %v672_v57 = vadd.f32 %v5520_v8, %v671_v56  ;;  %v4749_v58 = vpop.f32.mrb[6].mxu1 }
 0x1f2   :  { %v683_v59 = vadd.f32 %v4749_v58, %v5520_v8  ;;  %v674_v60 = vpop.f32.mrb[7].mxu1  ;;  %v788_v62 = vmax.f32 %v680_v50, 0.0 }
 0x1f3   :  { %v675_v61 = vadd.f32 %v5520_v8, %v674_v60  ;;  %v786_v0 = vmax.f32 %v672_v57, 0.0 }
 0x1f4   :  { %v789_v63 = vmax.f32 %v683_v59, 0.0 }
 0x1f5   :  { %v787_v1 = vmax.f32 %v675_v61, 0.0 }
 0x1f6   :  { %v5530_v2 = vpack.c.bf16 %v789_v63, %v788_v62 }
 0x1f7   :  { %v816_v3 = vpack.c.bf16 %v787_v1, %v786_v0 }
 0x1ff   :  { %v4752_v4 = vpop.f32.mrb[8].mxu1 }
 0x200   :  { %v696_v5 = vadd.f32 %v4752_v4, %v5520_v8  ;;  %v687_v6 = vpop.f32.mrb[9].mxu1 }
 0x201   :  { %v688_v7 = vadd.f32 %v5520_v8, %v687_v6  ;;  %v4753_v9 = vpop.f32.mrb[10].mxu1 }
 0x202   :  { %v699_v10 = vadd.f32 %v4753_v9, %v5520_v8  ;;  %v690_v12 = vpop.f32.mrb[11].mxu1  ;;  %v792_v14 = vmax.f32 %v696_v5, 0.0 }
 0x203   :  { %v691_v13 = vadd.f32 %v5520_v8, %v690_v12  ;;  %v790_v16 = vmax.f32 %v688_v7, 0.0 }
 0x204   :  { %v793_v15 = vmax.f32 %v699_v10, 0.0 }
 0x205   :  { %v791_v21 = vmax.f32 %v691_v13, 0.0 }
 0x206   :  { %v5536_v22 = vpack.c.bf16 %v793_v15, %v792_v14 }
 0x207   :  { %v5538_v23 = vpack.c.bf16 %v791_v21, %v790_v16 }
 0x20f   :  { %v4756_v11 = vpop.f32.mrb[12].mxu1 }
 0x210   :  { %v712_v25 = vadd.f32 %v4756_v11, %v5520_v8  ;;  %v703_v47 = vpop.f32.mrb[13].mxu1 }
 0x211   :  { %v704_v50 = vadd.f32 %v5520_v8, %v703_v47  ;;  %v4757_v56 = vpop.f32.mrb[14].mxu1 }
 0x212   :  { %v715_v57 = vadd.f32 %v4757_v56, %v5520_v8  ;;  %v706_v58 = vpop.f32.mrb[15].mxu1  ;;  %v796_v60 = vmax.f32 %v712_v25, 0.0 }
 0x213   :  { %v707_v59 = vadd.f32 %v5520_v8, %v706_v58  ;;  %v794_v62 = vmax.f32 %v704_v50, 0.0 }
 0x214   :  { %v797_v61 = vmax.f32 %v715_v57, 0.0 }
 0x215   :  { %v795_v63 = vmax.f32 %v707_v59, 0.0 }
 0x216   :  { %v5544_v0 = vpack.c.bf16 %v797_v61, %v796_v60 }
 0x217   :  { %v5546_v1 = vpack.c.bf16 %v795_v63, %v794_v62 }
 0x21f   :  { %v4760_v4 = vpop.f32.mrb[16].mxu1 }
 0x220   :  { %v728_v5 = vadd.f32 %v4760_v4, %v5520_v8  ;;  %v719_v6 = vpop.f32.mrb[17].mxu1 }
 0x221   :  { %v720_v7 = vadd.f32 %v5520_v8, %v719_v6  ;;  %v4761_v9 = vpop.f32.mrb[18].mxu1 }
 0x222   :  { %v731_v10 = vadd.f32 %v4761_v9, %v5520_v8  ;;  %v722_v12 = vpop.f32.mrb[19].mxu1  ;;  %v800_v14 = vmax.f32 %v728_v5, 0.0 }
 0x223   :  { %v723_v13 = vadd.f32 %v5520_v8, %v722_v12  ;;  %v798_v16 = vmax.f32 %v720_v7, 0.0 }
 0x224   :  { %v801_v15 = vmax.f32 %v731_v10, 0.0 }
 0x225   :  { %v799_v21 = vmax.f32 %v723_v13, 0.0 }
 0x226   :  { %v823_v11 = vpack.c.bf16 %v801_v15, %v800_v14 }
 0x227   :  { %v822_v25 = vpack.c.bf16 %v799_v21, %v798_v16 }
 0x229   :  { %4350 = vmatprep.subr.bf16.mxu1 %v822_v25 }
 0x22a   :  { %4351 = vmatpush3.bf16.msra.mxu1 %v814_v46 }
 0x22b   :  { %4352 = vmatprep.subr.bf16.mxu1 %v823_v11 }
 0x22e   :  { %4353 = vmatpush3.bf16.msra.mxu1 %v815_v43 }
 0x22f   :  { %v4764_v47 = vpop.f32.mrb[20].mxu1 }
 0x230   :  { %v744_v50 = vadd.f32 %v4764_v47, %v5520_v8  ;;  %v735_v56 = vpop.f32.mrb[21].mxu1 }
 0x231   :  { %v736_v57 = vadd.f32 %v5520_v8, %v735_v56  ;;  %v4765_v58 = vpop.f32.mrb[22].mxu1 }
 0x232   :  { %v747_v59 = vadd.f32 %v4765_v58, %v5520_v8  ;;  %v738_v60 = vpop.f32.mrb[23].mxu1  ;;  %v804_v62 = vmax.f32 %v744_v50, 0.0 }
 0x233   :  { %v739_v61 = vadd.f32 %v5520_v8, %v738_v60  ;;  %v802_v4 = vmax.f32 %v736_v57, 0.0 }
 0x234   :  { %v805_v63 = vmax.f32 %v747_v59, 0.0 }
 0x235   :  { %v803_v5 = vmax.f32 %v739_v61, 0.0 }
 0x236   :  { %v825_v6 = vpack.c.bf16 %v805_v63, %v804_v62 }
 0x237   :  { %v824_v46 = vpack.c.bf16 %v803_v5, %v802_v4 }
 0x239   :  { %4354 = vmatprep.subr.bf16.mxu1 %v824_v46  ;;  %v4955_v46 = vld [vmem:[%s6762_s5 + $0x4] ss:$16 sps:$4 sm:$0xff]  }
 0x23a   :  { %4355 = vmatpush3.bf16.msra.mxu1 %v816_v3  ;;  %1221 = vmatprep.subr.bf16.mxu0 %v4955_v46 }
 0x23b   :  { %4356 = vmatprep.subr.bf16.mxu1 %v825_v6 }
 0x23e   :  { %4357 = vmatpush3.bf16.msra.mxu1 %v5530_v2 }
 0x23f   :  { %v4768_v43 = vpop.f32.mrb[24].mxu1 }
 0x240   :  { %v760_v7 = vadd.f32 %v4768_v43, %v5520_v8  ;;  %v751_v9 = vpop.f32.mrb[25].mxu1  ;;  %v4956_v43 = vld [vmem:[%s6762_s5 + $0x20] ss:$16 sps:$4 sm:$0xff]  }
 0x241   :  { %v752_v10 = vadd.f32 %v5520_v8, %v751_v9  ;;  %v4769_v12 = vpop.f32.mrb[26].mxu1  ;;  %v4964_v9 = vld [vmem:[%s6762_s5 + $0x44] ss:$16 sps:$4 sm:$0xff]  }
 0x242   :  { %v763_v13 = vadd.f32 %v4769_v12, %v5520_v8  ;;  %v754_v14 = vpop.f32.mrb[27].mxu1  ;;  %v808_v16 = vmax.f32 %v760_v7, 0.0  ;;  %v4959_v7 = vld [vmem:[%s6762_s5 + $0x8] ss:$16 sps:$4 sm:$0xff]  }
 0x243   :  { %v755_v15 = vadd.f32 %v5520_v8, %v754_v14  ;;  %v806_v11 = vmax.f32 %v752_v10, 0.0  ;;  %v4967_v10 = vld [vmem:[%s6762_s5 + $0x2c] ss:$16 sps:$4 sm:$0xff]   ;;  %v4965_v12 = vld [vmem:[%s6762_s5 + $0x28] ss:$16 sps:$4 sm:$0xff]  }
 0x244   :  { %v809_v21 = vmax.f32 %v763_v13, 0.0  ;;  %v4973_v13 = vld [vmem:[%s6762_s5 + $0x64] ss:$16 sps:$4 sm:$0xff]   ;;  %v4971_v14 = vld [vmem:[%s6762_s5 + $0x60] ss:$16 sps:$4 sm:$0xff]  }
 0x245   :  { %v807_v25 = vmax.f32 %v755_v15, 0.0  ;;  %v4979_v15 = vld [vmem:[%s6762_s5 + $0x84] ss:$16 sps:$4 sm:$0xff]  }
 0x246   :  { %v827_v3 = vpack.c.bf16 %v809_v21, %v808_v16  ;;  %v4976_v16 = vld [vmem:[%s6762_s5 + $0x6c] ss:$16 sps:$4 sm:$0xff]   ;;  %v4974_v21 = vld [vmem:[%s6762_s5 + $0x68] ss:$16 sps:$4 sm:$0xff]  }
 0x247   :  { %v826_v47 = vpack.c.bf16 %v807_v25, %v806_v11  ;;  %v4977_v11 = vld [vmem:[%s6762_s5 + $0x80] ss:$16 sps:$4 sm:$0xff]   ;;  %v4985_v25 = vld [vmem:[%s6762_s5 + $0xa4] ss:$16 sps:$4 sm:$0xff]  }
 0x249   :  { %4358 = vmatprep.subr.bf16.mxu1 %v826_v47  ;;  %v4980_v47 = vld [vmem:[%s6762_s5 + $0x88] ss:$16 sps:$4 sm:$0xff]  }
 0x24a   :  { %4359 = vmatpush3.bf16.msra.mxu1 %v5538_v23 }
 0x24b   :  { %4360 = vmatprep.subr.bf16.mxu1 %v827_v3  ;;  %v4983_v3 = vld [vmem:[%s6762_s5 + $0xa0] ss:$16 sps:$4 sm:$0xff]  }
 0x24e   :  { %4361 = vmatpush3.bf16.msra.mxu1 %v5536_v22  ;;  %v4953_v22 = vld [vmem:[%s6762_s5] ss:$16 sps:$4 sm:$0xff]  }
 0x24f   :  { %v4772_v2 = vpop.f32.mrb[28].mxu1  ;;  %1222 = vmatpush1.bf16.msra.mxu0 %v4953_v22 }
 0x250   :  { %v776_v50 = vadd.f32 %v4772_v2, %v5520_v8  ;;  %v767_v56 = vpop.f32.mrb[29].mxu1  ;;  %v4986_v2 = vld [vmem:[%s6762_s5 + $0xa8] ss:$16 sps:$4 sm:$0xff]  }
 0x251   :  { %v768_v57 = vadd.f32 %v5520_v8, %v767_v56  ;;  %v4773_v58 = vpop.f32.mrb[30].mxu1  ;;  %v5007_v56 = vld [vmem:[%s6763_s7 + $0x20] ss:$8 sps:$4 sm:$0xff]  }
 0x252   :  { %v779_v59 = vadd.f32 %v4773_v58, %v5520_v8  ;;  %v770_v60 = vpop.f32.mrb[31].mxu1  ;;  %v812_v62 = vmax.f32 %v776_v50, 0.0 }
 0x253   :  { %v771_v61 = vadd.f32 %v5520_v8, %v770_v60  ;;  %v810_v4 = vmax.f32 %v768_v57, 0.0  ;;  %v4958_v8 = vld [vmem:[%s6762_s5 + $0x24] ss:$16 sps:$4 sm:$0xff]  }
 0x254   :  { %v813_v63 = vmax.f32 %v779_v59, 0.0  ;;  %1223 = vmatprep.subr.bf16.mxu0 %v4958_v8  ;;  %v5012_v57 = vld [vmem:[%s6763_s7 + $0x34] ss:$8 sps:$4 sm:$0xff]   ;;  %v5016_v8 = vld [vmem:[%s6763_s7 + $0x50] ss:$8 sps:$4 sm:$0xff]  }
 0x255   :  { %v811_v5 = vmax.f32 %v771_v61, 0.0  ;;  %1224 = vmatpush1.bf16.msra.mxu0 %v4956_v43 }
 0x256   :  { %v829_v23 = vpack.c.bf16 %v813_v63, %v812_v62  ;;  %1225 = vmatprep.subr.bf16.mxu0 %v4964_v9  ;;  %v5010_v62 = vld [vmem:[%s6763_s7 + $0x30] ss:$8 sps:$4 sm:$0xff]  }
 0x257   :  { %v828_v6 = vpack.c.bf16 %v811_v5, %v810_v4  ;;  %v5015_v4 = vld [vmem:[%s6763_s7 + $0x44] ss:$8 sps:$4 sm:$0xff]  }
 0x259   :  { %4362 = vmatprep.subr.bf16.mxu1 %v828_v6  ;;  %v5018_v6 = vld [vmem:[%s6763_s7 + $0x54] ss:$8 sps:$4 sm:$0xff]  }
 0x25a   :  { %4363 = vmatpush3.bf16.msra.mxu1 %v5546_v1  ;;  %v4961_v1 = vld [vmem:[%s6762_s5 + $0xc] ss:$16 sps:$4 sm:$0xff]  }
 0x25b   :  { %4364 = vmatprep.subr.bf16.mxu1 %v829_v23  ;;  %v5013_v23 = vld [vmem:[%s6763_s7 + $0x40] ss:$8 sps:$4 sm:$0xff]  }
 0x25e   :  { %4365 = vmatpush3.bf16.msra.mxu1 %v5544_v0  ;;  %v4962_v0 = vld [vmem:[%s6762_s5 + $0x40] ss:$16 sps:$4 sm:$0xff]  }
 0x25f   :  { %1414 = vmatprep.subr.bf16.mxu1 %v4961_v1  ;;  %1226 = vmatpush1.bf16.msra.mxu0 %v4962_v0  ;;  %v5021_v1 = vld [vmem:[%s6763_s7 + $0x64] ss:$8 sps:$4 sm:$0xff]  }
 0x260   :  { %1227 = vmatprep.subr.bf16.mxu0 %v4973_v13  ;;  %v5024_v13 = vld [vmem:[%s6763_s7 + $0x74] ss:$8 sps:$4 sm:$0xff]  }
 0x261   :  { %896 = vmatmul.mubr.bf16.vlgmr.msra.gmra.mrb[32].mxu1 %v5309_v17  ;;  %v4970_v17 = vld [vmem:[%s6762_s5 + $0x4c] ss:$16 sps:$4 sm:$0xff]  }
 0x262   :  { %903 = vmatprep.mubr.bf16.mxu1 %v5314_v18  ;;  %1415 = vmatpush1.bf16.msra.mxu1 %v4959_v7  ;;  %v4968_v18 = vld [vmem:[%s6762_s5 + $0x48] ss:$16 sps:$4 sm:$0xff]  }
 0x263   :  { %1416 = vmatprep.subr.bf16.mxu1 %v4967_v10  ;;  %1228 = vmatpush1.bf16.msra.mxu0 %v4971_v14 }
 0x264   :  { %1229 = vmatprep.subr.bf16.mxu0 %v4979_v15 }
 0x266   :  { %1417 = vmatpush1.bf16.msra.mxu1 %v4965_v12  ;;  %v5019_v12 = vld [vmem:[%s6763_s7 + $0x60] ss:$8 sps:$4 sm:$0xff]  }
 0x267   :  { %1418 = vmatprep.subr.bf16.mxu1 %v4970_v17  ;;  %1230 = vmatpush1.bf16.msra.mxu0 %v4977_v11 }
 0x268   :  { %1231 = vmatprep.subr.bf16.mxu0 %v4985_v25  ;;  %v5027_v25 = vld [vmem:[%s6763_s7 + $0x84] ss:$8 sps:$4 sm:$0xff]  }
 0x269   :  { %904 = vmatmul.mubr.bf16.gmra.mrb[36].mxu1 %v5321_v19  ;;  %v4982_v19 = vld [vmem:[%s6762_s5 + $0x8c] ss:$16 sps:$4 sm:$0xff]  }
 0x26a   :  { %911 = vmatprep.mubr.bf16.mxu1 %v5326_v20  ;;  %1419 = vmatpush1.bf16.msra.mxu1 %v4968_v18  ;;  %v4988_v20 = vld [vmem:[%s6762_s5 + $0xac] ss:$16 sps:$4 sm:$0xff]  }
 0x26b   :  { %1420 = vmatprep.subr.bf16.mxu1 %v4976_v16  ;;  %1232 = vmatpush1.bf16.msra.mxu0 %v4983_v3 }
 0x26e   :  { %1421 = vmatpush1.bf16.msra.mxu1 %v4974_v21  ;;  %v5022_v21 = vld [vmem:[%s6763_s7 + $0x70] ss:$8 sps:$4 sm:$0xff]  }
 0x26f   :  { %1422 = vmatprep.subr.bf16.mxu1 %v4982_v19 }
 0x271   :  { %912 = vmatmul.mubr.bf16.gmra.mrb[40].mxu1 %v5342_v24  ;;  %v4991_v24 = vld [vmem:[%s6762_s5 + $0xc4] ss:$16 sps:$4 sm:$0xff]  }
 0x272   :  { %919 = vmatprep.mubr.bf16.mxu1 %v5350_v26  ;;  %1423 = vmatpush1.bf16.msra.mxu1 %v4980_v47  ;;  %v4994_v26 = vld [vmem:[%s6762_s5 + $0xcc] ss:$16 sps:$4 sm:$0xff]   ;;  %v5025_v47 = vld [vmem:[%s6763_s7 + $0x80] ss:$8 sps:$4 sm:$0xff]  }
 0x273   :  { %1424 = vmatprep.subr.bf16.mxu1 %v4988_v20  ;;  %1233 = vmatprep.subr.bf16.mxu0 %v4991_v24  ;;  %v5030_v20 = vld [vmem:[%s6763_s7 + $0x94] ss:$8 sps:$4 sm:$0xff]  }
 0x276   :  { %1425 = vmatpush1.bf16.msra.mxu1 %v4986_v2 }
 0x277   :  { %1426 = vmatprep.subr.bf16.mxu1 %v4994_v26 }
 0x279   :  { %920 = vmatmul.mubr.bf16.gmra.mrb[44].mxu1 %v5357_v27  ;;  %v4989_v27 = vld [vmem:[%s6762_s5 + $0xc0] ss:$16 sps:$4 sm:$0xff]  }
 0x27a   :  { %927 = vmatprep.mubr.bf16.mxu1 %v5362_v28  ;;  %v4992_v28 = vld [vmem:[%s6762_s5 + $0xc8] ss:$16 sps:$4 sm:$0xff]   ;;  %1234 = vmatpush1.bf16.msra.mxu0 %v4989_v27 }
 0x27b   :  { %1427 = vmatpush1.bf16.msra.mxu1 %v4992_v28  ;;  %v5028_v28 = vld [vmem:[%s6763_s7 + $0x90] ss:$8 sps:$4 sm:$0xff]  }
 0x281   :  { %928 = vmatmul.mubr.bf16.gmra.mrb[48].mxu1 %v5369_v29  ;;  %v4997_v29 = vld [vmem:[%s6762_s5 + $0xe4] ss:$16 sps:$4 sm:$0xff]  }
 0x282   :  { %935 = vmatprep.mubr.bf16.mxu1 %v5374_v30  ;;  %v5000_v30 = vld [vmem:[%s6762_s5 + $0xec] ss:$16 sps:$4 sm:$0xff]   ;;  %1235 = vmatprep.subr.bf16.mxu0 %v4997_v29 }
 0x283   :  { %1428 = vmatprep.subr.bf16.mxu1 %v5000_v30  ;;  %v5033_v30 = vld [vmem:[%s6763_s7 + $0xa4] ss:$8 sps:$4 sm:$0xff]  }
 0x289   :  { %936 = vmatmul.mubr.bf16.gmra.mrb[52].mxu1 %v5381_v31  ;;  %v4995_v31 = vld [vmem:[%s6762_s5 + $0xe0] ss:$16 sps:$4 sm:$0xff]  }
 0x28a   :  { %943 = vmatprep.mubr.bf16.mxu1 %v5386_v32  ;;  %v4998_v32 = vld [vmem:[%s6762_s5 + $0xe8] ss:$16 sps:$4 sm:$0xff]   ;;  %1236 = vmatpush1.bf16.msra.mxu0 %v4995_v31 }
 0x28b   :  { %1429 = vmatpush1.bf16.msra.mxu1 %v4998_v32 }
 0x291   :  { %944 = vmatmul.mubr.bf16.gmra.mrb[56].mxu1 %v5393_v33  ;;  %v5164_v33 = vmov 0  }
 0x292   :  { %951 = vmatprep.mubr.bf16.mxu1 %v5398_v34  ;;  %1253 = vmatprep.mubr.bf16.mxu0 %v5164_v33 }
 0x299   :  { %952 = vmatmul.mubr.bf16.gmra.mrb[60].mxu1 %v5405_v35 }
 0x29a   :  { %959 = vmatprep.mubr.bf16.mxu1 %v5410_v36 }
 0x2a1   :  { %960 = vmatmul.mubr.bf16.gmra.mrb[64].mxu1 %v5417_v37 }
 0x2a2   :  { %967 = vmatprep.mubr.bf16.mxu1 %v5422_v38  ;;  %v5003_v38 = vld [vmem:[%s6763_s7 + $0x4] ss:$8 sps:$4 sm:$0xff]  }
 0x2a3   :  { %2184 = vmatprep.subr.bf16.mxu0 %v5003_v38 }
 0x2a9   :  { %968 = vmatmul.mubr.bf16.gmra.mrb[68].mxu1 %v5429_v39 }
 0x2aa   :  { %975 = vmatprep.mubr.bf16.mxu1 %v5434_v40 }
 0x2b1   :  { %976 = vmatmul.mubr.bf16.gmra.mrb[72].mxu1 %v5441_v41 }
 0x2b2   :  { %983 = vmatprep.mubr.bf16.mxu1 %v5446_v42  ;;  %v5001_v42 = vld [vmem:[%s6763_s7] ss:$8 sps:$4 sm:$0xff]  }
 0x2b9   :  { %984 = vmatmul.mubr.bf16.gmra.mrb[76].mxu1 %v5456_v44  ;;  %v5006_v44 = vld [vmem:[%s6763_s7 + $0x14] ss:$8 sps:$4 sm:$0xff]  }
 0x2ba   :  { %991 = vmatprep.mubr.bf16.mxu1 %v5461_v45 }
 0x2c1   :  { %992 = vmatmul.mubr.bf16.gmra.mrb[80].mxu1 %v5474_v48 }
 0x2c2   :  { %999 = vmatprep.mubr.bf16.mxu1 %v5479_v49 }
 0x2c9   :  { %1000 = vmatmul.mubr.bf16.gmra.mrb[84].mxu1 %v5489_v51 }
 0x2ca   :  { %1007 = vmatprep.mubr.bf16.mxu1 %v5494_v52  ;;  %v5004_v52 = vld [vmem:[%s6763_s7 + $0x10] ss:$8 sps:$4 sm:$0xff]  }
 0x2d1   :  { %1008 = vmatmul.mubr.bf16.gmra.mrb[88].mxu1 %v5501_v53 }
 0x2d2   :  { %1015 = vmatprep.mubr.bf16.mxu1 %v5506_v54  ;;  %v5009_v54 = vld [vmem:[%s6763_s7 + $0x24] ss:$8 sps:$4 sm:$0xff]  }
 0x2d9   :  { %1016 = vmatmul.mubr.bf16.gmra.mrb[92].mxu1 %v5513_v55 }
 0x2da   :  { %1446 = vmatprep.mubr.bf16.mxu1 %v5164_v33 }
 0x334   :  { %v4366_v34 = vpop.f32.mrb[32].mxu1 }
 0x335   :  { %v4367_v35 = vpop.f32.mrb[33].mxu1 }
 0x336   :  { %v4368_v36 = vadd.f32 %v4367_v35, %v4366_v34  ;;  %v4369_v37 = vpop.f32.mrb[34].mxu1  ;;  %v5031_v34 = vld [vmem:[%s6763_s7 + $0xa0] ss:$8 sps:$4 sm:$0xff]   ;;  %v5036_v35 = vld [vmem:[%s6763_s7 + $0xb4] ss:$8 sps:$4 sm:$0xff]  }
 0x337   :  { %v4370_v39 = vpop.f32.mrb[35].mxu1 }
 0x338   :  { %v4371_v40 = vadd.f32 %v4370_v39, %v4369_v37 }
 0x33a   :  { %v1024_v41 = vpack.c.bf16 %v4371_v40, %v4368_v36  ;;  %v5034_v40 = vld [vmem:[%s6763_s7 + $0xb0] ss:$8 sps:$4 sm:$0xff]  }
 0x33c   :  { %v4372_v45 = vpop.f32.mrb[36].mxu1  ;;  %1254 = vmatmul.mubr.bf16.vlgmr.msra.gmra.mrb[64].mxu0 %v1024_v41  ;;  %1447 = vmatmul.mubr.bf16.vlgmr.msra.gmra.mrb[96].mxu1 %v1024_v41 }
 0x33d   :  { %v4373_v48 = vpop.f32.mrb[37].mxu1  ;;  %1263 = vmatprep.mubr.bf16.mxu0 %v5164_v33  ;;  %1456 = vmatprep.mubr.bf16.mxu1 %v5164_v33 }
 0x33e   :  { %v4374_v49 = vadd.f32 %v4373_v48, %v4372_v45  ;;  %v4375_v51 = vpop.f32.mrb[38].mxu1  ;;  %2185 = vmatpush1.bf16.msra.mxu0 %v5001_v42  ;;  %v5039_v42 = vld [vmem:[%s6763_s7 + $0xc4] ss:$8 sps:$4 sm:$0xff]   ;;  %v5037_v48 = vld [vmem:[%s6763_s7 + $0xc0] ss:$8 sps:$4 sm:$0xff]  }
 0x33f   :  { %v4376_v53 = vpop.f32.mrb[39].mxu1  ;;  %2186 = vmatprep.subr.bf16.mxu0 %v5006_v44 }
 0x340   :  { %v4377_v55 = vadd.f32 %v4376_v53, %v4375_v51 }
 0x342   :  { %v1025_v50 = vpack.c.bf16 %v4377_v55, %v4374_v49  ;;  %2187 = vmatpush1.bf16.msra.mxu0 %v5004_v52  ;;  %v5042_v49 = vld [vmem:[%s6763_s7 + $0xd4] ss:$8 sps:$4 sm:$0xff]   ;;  %v5040_v55 = vld [vmem:[%s6763_s7 + $0xd0] ss:$8 sps:$4 sm:$0xff]  }
 0x343   :  { %2188 = vmatprep.subr.bf16.mxu0 %v5009_v54 }
 0x344   :  { %v4378_v58 = vpop.f32.mrb[40].mxu1  ;;  %1264 = vmatmul.mubr.bf16.gmra.mrb[68].mxu0 %v1025_v50  ;;  %1457 = vmatmul.mubr.bf16.gmra.mrb[100].mxu1 %v1025_v50 }
 0x345   :  { %v4379_v59 = vpop.f32.mrb[41].mxu1  ;;  %1273 = vmatprep.mubr.bf16.mxu0 %v5164_v33  ;;  %1466 = vmatprep.mubr.bf16.mxu1 %v5164_v33 }
 0x346   :  { %v4380_v60 = vadd.f32 %v4379_v59, %v4378_v58  ;;  %v4381_v61 = vpop.f32.mrb[42].mxu1  ;;  %2189 = vmatpush1.bf16.msra.mxu0 %v5007_v56 }
 0x347   :  { %v4382_v63 = vpop.f32.mrb[43].mxu1  ;;  %2190 = vmatprep.subr.bf16.mxu0 %v5012_v57 }
 0x348   :  { %v4383_v5 = vadd.f32 %v4382_v63, %v4381_v61 }
 0x34a   :  { %v1026_v22 = vpack.c.bf16 %v4383_v5, %v4380_v60  ;;  %2191 = vmatpush1.bf16.msra.mxu0 %v5010_v62 }
 0x34b   :  { %2192 = vmatprep.subr.bf16.mxu0 %v5015_v4 }
 0x34c   :  { %v4384_v46 = vpop.f32.mrb[44].mxu1  ;;  %1274 = vmatmul.mubr.bf16.gmra.mrb[72].mxu0 %v1026_v22  ;;  %1467 = vmatmul.mubr.bf16.gmra.mrb[104].mxu1 %v1026_v22 }
 0x34d   :  { %v4385_v43 = vpop.f32.mrb[45].mxu1  ;;  %1283 = vmatprep.mubr.bf16.mxu0 %v5164_v33  ;;  %1476 = vmatprep.mubr.bf16.mxu1 %v5164_v33 }
 0x34e   :  { %v4386_v7 = vadd.f32 %v4385_v43, %v4384_v46  ;;  %v4387_v9 = vpop.f32.mrb[46].mxu1  ;;  %2193 = vmatpush1.bf16.msra.mxu0 %v5013_v23 }
 0x34f   :  { %v4388_v10 = vpop.f32.mrb[47].mxu1  ;;  %2194 = vmatprep.subr.bf16.mxu0 %v5018_v6 }
 0x350   :  { %v4389_v0 = vadd.f32 %v4388_v10, %v4387_v9 }
 0x352   :  { %v1027_v17 = vpack.c.bf16 %v4389_v0, %v4386_v7  ;;  %2195 = vmatpush1.bf16.msra.mxu0 %v5016_v8 }
 0x353   :  { %2196 = vmatprep.subr.bf16.mxu0 %v5021_v1 }
 0x354   :  { %v4390_v18 = vpop.f32.mrb[48].mxu1  ;;  %1284 = vmatmul.mubr.bf16.gmra.mrb[76].mxu0 %v1027_v17  ;;  %1477 = vmatmul.mubr.bf16.gmra.mrb[108].mxu1 %v1027_v17 }
 0x355   :  { %v4391_v14 = vpop.f32.mrb[49].mxu1  ;;  %1293 = vmatprep.mubr.bf16.mxu0 %v5164_v33  ;;  %1486 = vmatprep.mubr.bf16.mxu1 %v5164_v33 }
 0x356   :  { %v4392_v15 = vadd.f32 %v4391_v14, %v4390_v18  ;;  %v4393_v16 = vpop.f32.mrb[50].mxu1  ;;  %2197 = vmatpush1.bf16.msra.mxu0 %v5019_v12 }
 0x357   :  { %v4394_v11 = vpop.f32.mrb[51].mxu1  ;;  %2198 = vmatprep.subr.bf16.mxu0 %v5024_v13 }
 0x358   :  { %v4395_v19 = vadd.f32 %v4394_v11, %v4393_v16  ;;  %v5045_v11 = vld [vmem:[%s6763_s7 + $0xe4] ss:$8 sps:$4 sm:$0xff]  }
 0x35a   :  { %v1028_v3 = vpack.c.bf16 %v4395_v19, %v4392_v15  ;;  %2199 = vmatpush1.bf16.msra.mxu0 %v5022_v21 }
 0x35b   :  { %2200 = vmatprep.subr.bf16.mxu0 %v5027_v25  ;;  %v5043_v25 = vld [vmem:[%s6763_s7 + $0xe0] ss:$8 sps:$4 sm:$0xff]  }
 0x35c   :  { %v4396_v2 = vpop.f32.mrb[52].mxu1  ;;  %1294 = vmatmul.mubr.bf16.gmra.mrb[80].mxu0 %v1028_v3  ;;  %1487 = vmatmul.mubr.bf16.gmra.mrb[112].mxu1 %v1028_v3 }
 0x35d   :  { %v4397_v24 = vpop.f32.mrb[53].mxu1  ;;  %1303 = vmatprep.mubr.bf16.mxu0 %v5164_v33  ;;  %1496 = vmatprep.mubr.bf16.mxu1 %v5164_v33 }
 0x35e   :  { %v4398_v26 = vadd.f32 %v4397_v24, %v4396_v2  ;;  %v4399_v27 = vpop.f32.mrb[54].mxu1  ;;  %2201 = vmatpush1.bf16.msra.mxu0 %v5025_v47  ;;  %v5048_v47 = vld [vmem:[%s6763_s7 + $0xf4] ss:$8 sps:$4 sm:$0xff]   ;;  %v5046_v2 = vld [vmem:[%s6763_s7 + $0xf0] ss:$8 sps:$4 sm:$0xff]  }
 0x35f   :  { %v4400_v29 = vpop.f32.mrb[55].mxu1  ;;  %2202 = vmatprep.subr.bf16.mxu0 %v5030_v20 }
 0x360   :  { %v4401_v31 = vadd.f32 %v4400_v29, %v4399_v27 }
 0x362   :  { %v1029_v32 = vpack.c.bf16 %v4401_v31, %v4398_v26  ;;  %2203 = vmatpush1.bf16.msra.mxu0 %v5028_v28 }
 0x363   :  { %2204 = vmatprep.subr.bf16.mxu0 %v5033_v30 }
 0x364   :  { %v4402_v36 = vpop.f32.mrb[56].mxu1  ;;  %1304 = vmatmul.mubr.bf16.gmra.mrb[84].mxu0 %v1029_v32  ;;  %1497 = vmatmul.mubr.bf16.gmra.mrb[116].mxu1 %v1029_v32 }
 0x365   :  { %v4403_v37 = vpop.f32.mrb[57].mxu1  ;;  %1313 = vmatprep.mubr.bf16.mxu0 %v5164_v33  ;;  %1506 = vmatprep.mubr.bf16.mxu1 %v5164_v33 }
 0x366   :  { %v4404_v38 = vadd.f32 %v4403_v37, %v4402_v36  ;;  %v4405_v39 = vpop.f32.mrb[58].mxu1  ;;  %2205 = vmatpush1.bf16.msra.mxu0 %v5031_v34 }
 0x367   :  { %v4406_v41 = vpop.f32.mrb[59].mxu1  ;;  %2206 = vmatprep.subr.bf16.mxu0 %v5036_v35 }
 0x368   :  { %v4407_v44 = vadd.f32 %v4406_v41, %v4405_v39 }
 0x36a   :  { %v1030_v45 = vpack.c.bf16 %v4407_v44, %v4404_v38  ;;  %2207 = vmatpush1.bf16.msra.mxu0 %v5034_v40 }
 0x36b   :  { %2208 = vmatprep.subr.bf16.mxu0 %v5039_v42 }
 0x36c   :  { %v4408_v51 = vpop.f32.mrb[60].mxu1  ;;  %1314 = vmatmul.mubr.bf16.gmra.mrb[88].mxu0 %v1030_v45  ;;  %1507 = vmatmul.mubr.bf16.gmra.mrb[120].mxu1 %v1030_v45 }
 0x36d   :  { %v4409_v52 = vpop.f32.mrb[61].mxu1  ;;  %1323 = vmatprep.mubr.bf16.mxu0 %v5164_v33  ;;  %1516 = vmatprep.mubr.bf16.mxu1 %v5164_v33 }
 0x36e   :  { %v4410_v53 = vadd.f32 %v4409_v52, %v4408_v51  ;;  %v4411_v54 = vpop.f32.mrb[62].mxu1  ;;  %2209 = vmatpush1.bf16.msra.mxu0 %v5037_v48 }
 0x36f   :  { %v4412_v50 = vpop.f32.mrb[63].mxu1  ;;  %2210 = vmatprep.subr.bf16.mxu0 %v5042_v49 }
 0x370   :  { %v4413_v56 = vadd.f32 %v4412_v50, %v4411_v54  ;;  %v5131_v50 = vld [vmem:[%s6759_s0 + $0x4] ss:$8 sps:$4 sm:$0xff]  }
 0x372   :  { %v1031_v57 = vpack.c.bf16 %v4413_v56, %v4410_v53  ;;  %2211 = vmatpush1.bf16.msra.mxu0 %v5040_v55  ;;  %v5051_v56 = vld [vmem:[%s6763_s7 + $0x104] ss:$8 sps:$4 sm:$0xff]  }
 0x373   :  { %2212 = vmatprep.subr.bf16.mxu0 %v5045_v11 }
 0x374   :  { %v4414_v58 = vpop.f32.mrb[64].mxu1  ;;  %1324 = vmatmul.mubr.bf16.gmra.mrb[92].mxu0 %v1031_v57  ;;  %1517 = vmatmul.mubr.bf16.gmra.mrb[124].mxu1 %v1031_v57  ;;  %v1041_v57 = vlaneseq }
 0x375   :  { %v4415_v59 = vpop.f32.mrb[65].mxu1  ;;  %1333 = vmatprep.mubr.bf16.mxu0 %v5164_v33  ;;  %1526 = vmatprep.mubr.bf16.mxu1 %v5164_v33 }
 0x376   :  { %v4416_v60 = vadd.f32 %v4415_v59, %v4414_v58  ;;  %v4417_v61 = vpop.f32.mrb[66].mxu1  ;;  %2213 = vmatpush1.bf16.msra.mxu0 %v5043_v25  ;;  %v5830_v58 = vshrl.u32 %v1041_v57, 7 }
 0x377   :  { %v4418_v62 = vpop.f32.mrb[67].mxu1  ;;  %2214 = vmatprep.subr.bf16.mxu0 %v5048_v47 }
 0x378   :  { %v4419_v63 = vadd.f32 %v4418_v62, %v4417_v61  ;;  %v1051_v59 = vsub.s32 2, %v5830_v58  ;;  %v1047_v61 = vsub.s32 1, %v5830_v58  ;;  %v1055_v62 = vsub.s32 3, %v5830_v58 }
 0x37a   :  { %v1032_v4 = vpack.c.bf16 %v4419_v63, %v4416_v60  ;;  %2215 = vmatpush1.bf16.msra.mxu0 %v5046_v2  ;;  %v862_v60 = vld [vmem:[%s6764_s6] sm:$0xf] }
 0x37b   :  { %2377 = vmatprep.subr.bf16.mxu0 %v5051_v56 }
 0x37c   :  { %v4420_v5 = vpop.f32.mrb[68].mxu1  ;;  %1334 = vmatmul.mubr.bf16.gmra.mrb[96].mxu0 %v1032_v4  ;;  %1527 = vmatmul.mubr.bf16.gmra.mrb[128].mxu1 %v1032_v4  ;;  %v5843_v4 = vrot.slane %v862_v60, %v1051_v59 }
 0x37d   :  { %v4421_v23 = vpop.f32.mrb[69].mxu1  ;;  %1343 = vmatprep.mubr.bf16.mxu0 %v5164_v33  ;;  %1536 = vmatprep.mubr.bf16.mxu1 %v5164_v33 }
 0x37e   :  { %v4422_v6 = vadd.f32 %v4421_v23, %v4420_v5  ;;  %v4423_v22 = vpop.f32.mrb[70].mxu1  ;;  %v5847_v5 = vrot.slane %v862_v60, %v1047_v61  ;;  %v5849_v23 = vrot.slane %v862_v60, %v1055_v62 }
 0x37f   :  { %v4424_v46 = vpop.f32.mrb[71].mxu1 }
 0x380   :  { %v4425_v8 = vadd.f32 %v4424_v46, %v4423_v22 }
 0x382   :  { %v1033_v43 = vpack.c.bf16 %v4425_v8, %v4422_v6 }
 0x384   :  { %v4426_v1 = vpop.f32.mrb[72].mxu1  ;;  %1344 = vmatmul.mubr.bf16.gmra.mrb[100].mxu0 %v1033_v43  ;;  %1537 = vmatmul.mubr.bf16.gmra.mrb[132].mxu1 %v1033_v43 }
 0x385   :  { %v4427_v7 = vpop.f32.mrb[73].mxu1  ;;  %1353 = vmatprep.mubr.bf16.mxu0 %v5164_v33  ;;  %1546 = vmatprep.mubr.bf16.mxu1 %v5164_v33 }
 0x386   :  { %v4428_v9 = vadd.f32 %v4427_v7, %v4426_v1  ;;  %v4429_v10 = vpop.f32.mrb[74].mxu1 }
 0x387   :  { %v4430_v0 = vpop.f32.mrb[75].mxu1 }
 0x388   :  { %v4431_v12 = vadd.f32 %v4430_v0, %v4429_v10 }
 0x38a   :  { %v1034_v13 = vpack.c.bf16 %v4431_v12, %v4428_v9 }
 0x38c   :  { %v4432_v17 = vpop.f32.mrb[76].mxu1  ;;  %1354 = vmatmul.mubr.bf16.gmra.mrb[104].mxu0 %v1034_v13  ;;  %1547 = vmatmul.mubr.bf16.gmra.mrb[136].mxu1 %v1034_v13 }
 0x38d   :  { %v4433_v18 = vpop.f32.mrb[77].mxu1  ;;  %1363 = vmatprep.mubr.bf16.mxu0 %v5164_v33  ;;  %1556 = vmatprep.mubr.bf16.mxu1 %v5164_v33 }
 0x38e   :  { %v4434_v14 = vadd.f32 %v4433_v18, %v4432_v17  ;;  %v4435_v15 = vpop.f32.mrb[78].mxu1 }
 0x38f   :  { %v4436_v16 = vpop.f32.mrb[79].mxu1 }
 0x390   :  { %v4437_v21 = vadd.f32 %v4436_v16, %v4435_v15 }
 0x392   :  { %v1035_v19 = vpack.c.bf16 %v4437_v21, %v4434_v14 }
 0x394   :  { %v4438_v3 = vpop.f32.mrb[80].mxu1  ;;  %1364 = vmatmul.mubr.bf16.gmra.mrb[108].mxu0 %v1035_v19  ;;  %1557 = vmatmul.mubr.bf16.gmra.mrb[140].mxu1 %v1035_v19 }
 0x395   :  { %v4439_v20 = vpop.f32.mrb[81].mxu1  ;;  %1373 = vmatprep.mubr.bf16.mxu0 %v5164_v33  ;;  %1566 = vmatprep.mubr.bf16.mxu1 %v5164_v33 }
 0x396   :  { %v4440_v24 = vadd.f32 %v4439_v20, %v4438_v3  ;;  %v4441_v26 = vpop.f32.mrb[82].mxu1 }
 0x397   :  { %v4442_v27 = vpop.f32.mrb[83].mxu1 }
 0x398   :  { %v4443_v28 = vadd.f32 %v4442_v27, %v4441_v26 }
 0x39a   :  { %v1036_v29 = vpack.c.bf16 %v4443_v28, %v4440_v24 }
 0x39c   :  { %v4444_v30 = vpop.f32.mrb[84].mxu1  ;;  %1374 = vmatmul.mubr.bf16.gmra.mrb[112].mxu0 %v1036_v29  ;;  %1567 = vmatmul.mubr.bf16.gmra.mrb[144].mxu1 %v1036_v29 }
 0x39d   :  { %v4445_v31 = vpop.f32.mrb[85].mxu1  ;;  %1383 = vmatprep.mubr.bf16.mxu0 %v5164_v33  ;;  %1576 = vmatprep.mubr.bf16.mxu1 %v5164_v33 }
 0x39e   :  { %v4446_v32 = vadd.f32 %v4445_v31, %v4444_v30  ;;  %v4447_v34 = vpop.f32.mrb[86].mxu1  ;;  %v5049_v30 = vld [vmem:[%s6763_s7 + $0x100] ss:$8 sps:$4 sm:$0xff]  }
 0x39f   :  { %v4448_v35 = vpop.f32.mrb[87].mxu1 }
 0x3a0   :  { %v4449_v36 = vadd.f32 %v4448_v35, %v4447_v34 }
 0x3a2   :  { %v1037_v37 = vpack.c.bf16 %v4449_v36, %v4446_v32  ;;  %v5054_v36 = vld [vmem:[%s6763_s7 + $0x114] ss:$8 sps:$4 sm:$0xff]  }
 0x3a4   :  { %v4450_v38 = vpop.f32.mrb[88].mxu1  ;;  %1384 = vmatmul.mubr.bf16.gmra.mrb[116].mxu0 %v1037_v37  ;;  %1577 = vmatmul.mubr.bf16.gmra.mrb[148].mxu1 %v1037_v37 }
 0x3a5   :  { %v4451_v39 = vpop.f32.mrb[89].mxu1  ;;  %1393 = vmatprep.mubr.bf16.mxu0 %v5164_v33  ;;  %1586 = vmatprep.mubr.bf16.mxu1 %v5164_v33 }
 0x3a6   :  { %v4452_v40 = vadd.f32 %v4451_v39, %v4450_v38  ;;  %v4453_v41 = vpop.f32.mrb[90].mxu1 }
 0x3a7   :  { %v4454_v42 = vpop.f32.mrb[91].mxu1 }
 0x3a8   :  { %v4455_v44 = vadd.f32 %v4454_v42, %v4453_v41 }
 0x3aa   :  { %v1038_v45 = vpack.c.bf16 %v4455_v44, %v4452_v40 }
 0x3ac   :  { %v4456_v48 = vpop.f32.mrb[92].mxu1  ;;  %1394 = vmatmul.mubr.bf16.gmra.mrb[120].mxu0 %v1038_v45  ;;  %1587 = vmatmul.mubr.bf16.gmra.mrb[152].mxu1 %v1038_v45 }
 0x3ad   :  { %v4457_v49 = vpop.f32.mrb[93].mxu1  ;;  %1403 = vmatprep.mubr.bf16.mxu0 %v5164_v33  ;;  %1596 = vmatprep.mubr.bf16.mxu1 %v5164_v33  ;;  %v1043_v33 = vsub.s32 0, %v5830_v58 }
 0x3ae   :  { %v4458_v51 = vadd.f32 %v4457_v49, %v4456_v48  ;;  %v4459_v52 = vpop.f32.mrb[94].mxu1 }
 0x3af   :  { %v4460_v53 = vpop.f32.mrb[95].mxu1  ;;  %v5841_v63 = vrot.slane %v862_v60, %v1043_v33 }
 0x3b0   :  { %v4461_v54 = vadd.f32 %v4460_v53, %v4459_v52 }
 0x3b2   :  { %v1039_v55 = vpack.c.bf16 %v4461_v54, %v4458_v51  ;;  %v5052_v51 = vld [vmem:[%s6763_s7 + $0x110] ss:$8 sps:$4 sm:$0xff]  }
 0x3b4   :  { %1404 = vmatmul.mubr.bf16.gmra.mrb[124].mxu0 %v1039_v55  ;;  %1597 = vmatmul.mubr.bf16.gmra.mrb[156].mxu1 %v1039_v55 }
 0x3b5   :  { %2645 = vmatprep.mubr.bf16.mxu1 %v5131_v50  ;;  %v5057_v50 = vld [vmem:[%s6763_s7 + $0x124] ss:$8 sps:$4 sm:$0xff]  }
 0x40f   :  { %v1255_v6 = vpop.f32.mrb[64].mxu0  ;;  %v1448_v22 = vpop.f32.mrb[96].mxu1 }
 0x410   :  { %v1256_v46 = vadd.f32 %v1255_v6, %v5841_v63  ;;  %v1449_v8 = vadd.f32 %v1448_v22, %v5843_v4  ;;  %v1257_v43 = vpop.f32.mrb[65].mxu0  ;;  %v1450_v1 = vpop.f32.mrb[97].mxu1 }
 0x411   :  { %v1258_v7 = vadd.f32 %v1257_v43, %v5847_v5  ;;  %v1451_v9 = vadd.f32 %v1450_v1, %v5849_v23  ;;  %v1259_v10 = vpop.f32.mrb[66].mxu0  ;;  %v1452_v0 = vpop.f32.mrb[98].mxu1  ;;  %v5055_v1 = vld [vmem:[%s6763_s7 + $0x120] ss:$8 sps:$4 sm:$0xff]  }
 0x412   :  { %v1260_v12 = vadd.f32 %v1259_v10, %v5841_v63  ;;  %v1453_v13 = vadd.f32 %v1452_v0, %v5843_v4  ;;  %v1261_v17 = vpop.f32.mrb[67].mxu0  ;;  %v1454_v18 = vpop.f32.mrb[99].mxu1  ;;  %v1607_v16 = vmax.f32 %v1256_v46, 0.0  ;;  %v1609_v21 = vmax.f32 %v1449_v8, 0.0 }
 0x413   :  { %v1262_v14 = vadd.f32 %v1261_v17, %v5847_v5  ;;  %v1455_v15 = vadd.f32 %v1454_v18, %v5849_v23  ;;  %v1608_v19 = vmax.f32 %v1258_v7, 0.0  ;;  %v1610_v3 = vmax.f32 %v1451_v9, 0.0 }
 0x414   :  { %v1611_v11 = vmax.f32 %v1260_v12, 0.0  ;;  %v1613_v25 = vmax.f32 %v1453_v13, 0.0  ;;  %v5060_v12 = vld [vmem:[%s6763_s7 + $0x134] ss:$8 sps:$4 sm:$0xff]  }
 0x415   :  { %v1612_v47 = vmax.f32 %v1262_v14, 0.0  ;;  %v1614_v20 = vmax.f32 %v1455_v15, 0.0 }
 0x416   :  { %v1735_v2 = vpack.c.bf16 %v1611_v11, %v1607_v16  ;;  %v5859_v24 = vpack.c.bf16 %v1613_v25, %v1609_v21 }
 0x417   :  { %v1736_v26 = vpack.c.bf16 %v1612_v47, %v1608_v19  ;;  %v5861_v27 = vpack.c.bf16 %v1614_v20, %v1610_v3  ;;  %v1265_v28 = vpop.f32.mrb[68].mxu0  ;;  %v1458_v29 = vpop.f32.mrb[100].mxu1  ;;  %v5058_v3 = vld [vmem:[%s6763_s7 + $0x130] ss:$8 sps:$4 sm:$0xff]  }
 0x418   :  { %v1266_v31 = vadd.f32 %v1265_v28, %v5841_v63  ;;  %v1459_v32 = vadd.f32 %v1458_v29, %v5843_v4  ;;  %v1267_v34 = vpop.f32.mrb[69].mxu0  ;;  %v1460_v35 = vpop.f32.mrb[101].mxu1  ;;  %v5063_v28 = vld [vmem:[%s6763_s7 + $0x144] ss:$8 sps:$4 sm:$0xff]  }
 0x419   :  { %v1268_v37 = vadd.f32 %v1267_v34, %v5847_v5  ;;  %v1461_v38 = vadd.f32 %v1460_v35, %v5849_v23  ;;  %v1269_v39 = vpop.f32.mrb[70].mxu0  ;;  %v1462_v40 = vpop.f32.mrb[102].mxu1  ;;  %2216 = vmatprep.mubr.bf16.mxu0 %v1736_v26 }
 0x41a   :  { %v1270_v41 = vadd.f32 %v1269_v39, %v5841_v63  ;;  %v1463_v42 = vadd.f32 %v1462_v40, %v5843_v4  ;;  %v1271_v44 = vpop.f32.mrb[71].mxu0  ;;  %v1464_v45 = vpop.f32.mrb[103].mxu1  ;;  %2217 = vmatmul.mubr.bf16.vlgmr.msra.gmra.mrb[128].mxu0 %v1735_v2  ;;  %v1615_v52 = vmax.f32 %v1266_v31, 0.0  ;;  %v1617_v53 = vmax.f32 %v1459_v32, 0.0  ;;  %v5061_v40 = vld [vmem:[%s6763_s7 + $0x140] ss:$8 sps:$4 sm:$0xff]  }
 0x41b   :  { %v1272_v48 = vadd.f32 %v1271_v44, %v5847_v5  ;;  %v1465_v49 = vadd.f32 %v1464_v45, %v5849_v23  ;;  %2378 = vmatpush1.bf16.msra.mxu0 %v5049_v30  ;;  %v1616_v56 = vmax.f32 %v1268_v37, 0.0  ;;  %v1618_v57 = vmax.f32 %v1461_v38, 0.0 }
 0x41c   :  { %v1619_v54 = vmax.f32 %v1270_v41, 0.0  ;;  %v1621_v55 = vmax.f32 %v1463_v42, 0.0  ;;  %2379 = vmatprep.subr.bf16.mxu0 %v5054_v36 }
 0x41d   :  { %v1620_v59 = vmax.f32 %v1272_v48, 0.0  ;;  %v1622_v60 = vmax.f32 %v1465_v49, 0.0  ;;  %v5066_v48 = vld [vmem:[%s6763_s7 + $0x154] ss:$8 sps:$4 sm:$0xff]  }
 0x41e   :  { %v1739_v62 = vpack.c.bf16 %v1619_v54, %v1615_v52  ;;  %v5883_v6 = vpack.c.bf16 %v1621_v55, %v1617_v53 }
 0x41f   :  { %v1740_v22 = vpack.c.bf16 %v1620_v59, %v1616_v56  ;;  %v5885_v46 = vpack.c.bf16 %v1622_v60, %v1618_v57  ;;  %v1275_v8 = vpop.f32.mrb[72].mxu0  ;;  %v1468_v43 = vpop.f32.mrb[104].mxu1  ;;  %2380 = vmatpush1.bf16.msra.mxu0 %v5052_v51  ;;  %v5064_v60 = vld [vmem:[%s6763_s7 + $0x150] ss:$8 sps:$4 sm:$0xff]  }
 0x420   :  { %v1276_v7 = vadd.f32 %v1275_v8, %v5841_v63  ;;  %v1469_v9 = vadd.f32 %v1468_v43, %v5843_v4  ;;  %v1277_v10 = vpop.f32.mrb[73].mxu0  ;;  %v1470_v0 = vpop.f32.mrb[105].mxu1  ;;  %2381 = vmatprep.subr.bf16.mxu0 %v5057_v50 }
 0x421   :  { %v1278_v13 = vadd.f32 %v1277_v10, %v5847_v5  ;;  %v1471_v17 = vadd.f32 %v1470_v0, %v5849_v23  ;;  %v1279_v18 = vpop.f32.mrb[74].mxu0  ;;  %v1472_v14 = vpop.f32.mrb[106].mxu1  ;;  %2226 = vmatprep.mubr.bf16.mxu0 %v1740_v22 }
 0x422   :  { %v1280_v15 = vadd.f32 %v1279_v18, %v5841_v63  ;;  %v1473_v16 = vadd.f32 %v1472_v14, %v5843_v4  ;;  %v1281_v21 = vpop.f32.mrb[75].mxu0  ;;  %v1474_v11 = vpop.f32.mrb[107].mxu1  ;;  %2227 = vmatmul.mubr.bf16.gmra.mrb[132].mxu0 %v1739_v62  ;;  %v1623_v47 = vmax.f32 %v1276_v7, 0.0  ;;  %v1625_v20 = vmax.f32 %v1469_v9, 0.0 }
 0x423   :  { %v1282_v25 = vadd.f32 %v1281_v21, %v5847_v5  ;;  %v1475_v19 = vadd.f32 %v1474_v11, %v5849_v23  ;;  %2382 = vmatpush1.bf16.msra.mxu0 %v5055_v1  ;;  %v1624_v29 = vmax.f32 %v1278_v13, 0.0  ;;  %v1626_v30 = vmax.f32 %v1471_v17, 0.0  ;;  %v5069_v1 = vld [vmem:[%s6763_s7 + $0x164] ss:$8 sps:$4 sm:$0xff]  }
 0x424   :  { %v1627_v2 = vmax.f32 %v1280_v15, 0.0  ;;  %v1629_v26 = vmax.f32 %v1473_v16, 0.0  ;;  %2383 = vmatprep.subr.bf16.mxu0 %v5060_v12  ;;  %v5067_v16 = vld [vmem:[%s6763_s7 + $0x160] ss:$8 sps:$4 sm:$0xff]  }
 0x425   :  { %v1628_v31 = vmax.f32 %v1282_v25, 0.0  ;;  %v1630_v32 = vmax.f32 %v1475_v19, 0.0 }
 0x426   :  { %v1743_v34 = vpack.c.bf16 %v1627_v2, %v1623_v47  ;;  %v5907_v35 = vpack.c.bf16 %v1629_v26, %v1625_v20 }
 0x427   :  { %v1744_v36 = vpack.c.bf16 %v1628_v31, %v1624_v29  ;;  %v5909_v37 = vpack.c.bf16 %v1630_v32, %v1626_v30  ;;  %v1285_v38 = vpop.f32.mrb[76].mxu0  ;;  %v1478_v39 = vpop.f32.mrb[108].mxu1  ;;  %2384 = vmatpush1.bf16.msra.mxu0 %v5058_v3  ;;  %v5072_v3 = vld [vmem:[%s6763_s7 + $0x174] ss:$8 sps:$4 sm:$0xff]  }
 0x428   :  { %v1286_v41 = vadd.f32 %v1285_v38, %v5841_v63  ;;  %v1479_v42 = vadd.f32 %v1478_v39, %v5843_v4  ;;  %v1287_v44 = vpop.f32.mrb[77].mxu0  ;;  %v1480_v45 = vpop.f32.mrb[109].mxu1  ;;  %2385 = vmatprep.subr.bf16.mxu0 %v5063_v28 }
 0x429   :  { %v1288_v49 = vadd.f32 %v1287_v44, %v5847_v5  ;;  %v1481_v51 = vadd.f32 %v1480_v45, %v5849_v23  ;;  %v1289_v52 = vpop.f32.mrb[78].mxu0  ;;  %v1482_v53 = vpop.f32.mrb[110].mxu1  ;;  %2236 = vmatprep.mubr.bf16.mxu0 %v1744_v36  ;;  %v5070_v36 = vld [vmem:[%s6763_s7 + $0x170] ss:$8 sps:$4 sm:$0xff]  }
 0x42a   :  { %v1290_v54 = vadd.f32 %v1289_v52, %v5841_v63  ;;  %v1483_v55 = vadd.f32 %v1482_v53, %v5843_v4  ;;  %v1291_v50 = vpop.f32.mrb[79].mxu0  ;;  %v1484_v56 = vpop.f32.mrb[111].mxu1  ;;  %2237 = vmatmul.mubr.bf16.gmra.mrb[136].mxu0 %v1743_v34  ;;  %v1631_v62 = vmax.f32 %v1286_v41, 0.0  ;;  %v1633_v22 = vmax.f32 %v1479_v42, 0.0  ;;  %v5075_v42 = vld [vmem:[%s6763_s7 + $0x184] ss:$8 sps:$4 sm:$0xff]  }
 0x42b   :  { %v1292_v57 = vadd.f32 %v1291_v50, %v5847_v5  ;;  %v1485_v59 = vadd.f32 %v1484_v56, %v5849_v23  ;;  %2386 = vmatpush1.bf16.msra.mxu0 %v5061_v40  ;;  %v1632_v7 = vmax.f32 %v1288_v49, 0.0  ;;  %v1634_v9 = vmax.f32 %v1481_v51, 0.0  ;;  %v5073_v56 = vld [vmem:[%s6763_s7 + $0x180] ss:$8 sps:$4 sm:$0xff]  }
 0x42c   :  { %v1635_v8 = vmax.f32 %v1290_v54, 0.0  ;;  %v1637_v43 = vmax.f32 %v1483_v55, 0.0  ;;  %2387 = vmatprep.subr.bf16.mxu0 %v5066_v48 }
 0x42d   :  { %v1636_v10 = vmax.f32 %v1292_v57, 0.0  ;;  %v1638_v0 = vmax.f32 %v1485_v59, 0.0 }
 0x42e   :  { %v1747_v12 = vpack.c.bf16 %v1635_v8, %v1631_v62  ;;  %v5931_v13 = vpack.c.bf16 %v1637_v43, %v1633_v22  ;;  %v5078_v22 = vld [vmem:[%s6763_s7 + $0x194] ss:$8 sps:$4 sm:$0xff]  }
 0x42f   :  { %v1748_v17 = vpack.c.bf16 %v1636_v10, %v1632_v7  ;;  %v5933_v18 = vpack.c.bf16 %v1638_v0, %v1634_v9  ;;  %v1295_v14 = vpop.f32.mrb[80].mxu0  ;;  %v1488_v15 = vpop.f32.mrb[112].mxu1  ;;  %2388 = vmatpush1.bf16.msra.mxu0 %v5064_v60 }
 0x430   :  { %v1296_v21 = vadd.f32 %v1295_v14, %v5841_v63  ;;  %v1489_v11 = vadd.f32 %v1488_v15, %v5843_v4  ;;  %v1297_v25 = vpop.f32.mrb[81].mxu0  ;;  %v1490_v19 = vpop.f32.mrb[113].mxu1  ;;  %2389 = vmatprep.subr.bf16.mxu0 %v5069_v1  ;;  %v5076_v15 = vld [vmem:[%s6763_s7 + $0x190] ss:$8 sps:$4 sm:$0xff]  }
 0x431   :  { %v1298_v47 = vadd.f32 %v1297_v25, %v5847_v5  ;;  %v1491_v20 = vadd.f32 %v1490_v19, %v5849_v23  ;;  %v1299_v2 = vpop.f32.mrb[82].mxu0  ;;  %v1492_v26 = vpop.f32.mrb[114].mxu1  ;;  %2246 = vmatprep.mubr.bf16.mxu0 %v1748_v17  ;;  %v5081_v19 = vld [vmem:[%s6763_s7 + $0x1a4] ss:$8 sps:$4 sm:$0xff]  }
 0x432   :  { %v1300_v28 = vadd.f32 %v1299_v2, %v5841_v63  ;;  %v1493_v29 = vadd.f32 %v1492_v26, %v5843_v4  ;;  %v1301_v30 = vpop.f32.mrb[83].mxu0  ;;  %v1494_v31 = vpop.f32.mrb[115].mxu1  ;;  %2247 = vmatmul.mubr.bf16.gmra.mrb[140].mxu0 %v1747_v12  ;;  %v1639_v38 = vmax.f32 %v1296_v21, 0.0  ;;  %v1641_v39 = vmax.f32 %v1489_v11, 0.0 }
 0x433   :  { %v1302_v32 = vadd.f32 %v1301_v30, %v5847_v5  ;;  %v1495_v34 = vadd.f32 %v1494_v31, %v5849_v23  ;;  %2390 = vmatpush1.bf16.msra.mxu0 %v5067_v16  ;;  %v1640_v44 = vmax.f32 %v1298_v47, 0.0  ;;  %v1642_v45 = vmax.f32 %v1491_v20, 0.0 }
 0x434   :  { %v1643_v40 = vmax.f32 %v1300_v28, 0.0  ;;  %v1645_v41 = vmax.f32 %v1493_v29, 0.0  ;;  %2391 = vmatprep.subr.bf16.mxu0 %v5072_v3 }
 0x435   :  { %v1644_v48 = vmax.f32 %v1302_v32, 0.0  ;;  %v1646_v49 = vmax.f32 %v1495_v34, 0.0  ;;  %v5079_v34 = vld [vmem:[%s6763_s7 + $0x1a0] ss:$8 sps:$4 sm:$0xff]  }
 0x436   :  { %v1751_v51 = vpack.c.bf16 %v1643_v40, %v1639_v38  ;;  %v5955_v52 = vpack.c.bf16 %v1645_v41, %v1641_v39  ;;  %v5084_v41 = vld [vmem:[%s6763_s7 + $0x1b4] ss:$8 sps:$4 sm:$0xff]  }
 0x437   :  { %v1752_v53 = vpack.c.bf16 %v1644_v48, %v1640_v44  ;;  %v5957_v54 = vpack.c.bf16 %v1646_v49, %v1642_v45  ;;  %v1305_v55 = vpop.f32.mrb[84].mxu0  ;;  %v1498_v50 = vpop.f32.mrb[116].mxu1  ;;  %2392 = vmatpush1.bf16.msra.mxu0 %v5070_v36 }
 0x438   :  { %v1306_v57 = vadd.f32 %v1305_v55, %v5841_v63  ;;  %v1499_v59 = vadd.f32 %v1498_v50, %v5843_v4  ;;  %v1307_v60 = vpop.f32.mrb[85].mxu0  ;;  %v1500_v62 = vpop.f32.mrb[117].mxu1  ;;  %2393 = vmatprep.subr.bf16.mxu0 %v5075_v42 }
 0x439   :  { %v1308_v8 = vadd.f32 %v1307_v60, %v5847_v5  ;;  %v1501_v43 = vadd.f32 %v1500_v62, %v5849_v23  ;;  %v1309_v1 = vpop.f32.mrb[86].mxu0  ;;  %v1502_v7 = vpop.f32.mrb[118].mxu1  ;;  %2256 = vmatprep.mubr.bf16.mxu0 %v1752_v53 }
 0x43a   :  { %v1310_v9 = vadd.f32 %v1309_v1, %v5841_v63  ;;  %v1503_v10 = vadd.f32 %v1502_v7, %v5843_v4  ;;  %v1311_v0 = vpop.f32.mrb[87].mxu0  ;;  %v1504_v12 = vpop.f32.mrb[119].mxu1  ;;  %2257 = vmatmul.mubr.bf16.gmra.mrb[144].mxu0 %v1751_v51  ;;  %v1647_v16 = vmax.f32 %v1306_v57, 0.0  ;;  %v1649_v21 = vmax.f32 %v1499_v59, 0.0  ;;  %v5082_v57 = vld [vmem:[%s6763_s7 + $0x1b0] ss:$8 sps:$4 sm:$0xff]  }
 0x43b   :  { %v1312_v17 = vadd.f32 %v1311_v0, %v5847_v5  ;;  %v1505_v14 = vadd.f32 %v1504_v12, %v5849_v23  ;;  %2394 = vmatpush1.bf16.msra.mxu0 %v5073_v56  ;;  %v1648_v3 = vmax.f32 %v1308_v8, 0.0  ;;  %v1650_v47 = vmax.f32 %v1501_v43, 0.0  ;;  %v5087_v8 = vld [vmem:[%s6763_s7 + $0x1c4] ss:$8 sps:$4 sm:$0xff]  }
 0x43c   :  { %v1651_v11 = vmax.f32 %v1310_v9, 0.0  ;;  %v1653_v25 = vmax.f32 %v1503_v10, 0.0  ;;  %2395 = vmatprep.subr.bf16.mxu0 %v5078_v22 }
 0x43d   :  { %v1652_v20 = vmax.f32 %v1312_v17, 0.0  ;;  %v1654_v2 = vmax.f32 %v1505_v14, 0.0 }
 0x43e   :  { %v1755_v26 = vpack.c.bf16 %v1651_v11, %v1647_v16  ;;  %v5979_v28 = vpack.c.bf16 %v1653_v25, %v1649_v21  ;;  %v5085_v16 = vld [vmem:[%s6763_s7 + $0x1c0] ss:$8 sps:$4 sm:$0xff]  }
 0x43f   :  { %v1756_v29 = vpack.c.bf16 %v1652_v20, %v1648_v3  ;;  %v5981_v30 = vpack.c.bf16 %v1654_v2, %v1650_v47  ;;  %v1315_v31 = vpop.f32.mrb[88].mxu0  ;;  %v1508_v32 = vpop.f32.mrb[120].mxu1  ;;  %2396 = vmatpush1.bf16.msra.mxu0 %v5076_v15  ;;  %v5090_v3 = vld [vmem:[%s6763_s7 + $0x1d4] ss:$8 sps:$4 sm:$0xff]  }
 0x440   :  { %v1316_v36 = vadd.f32 %v1315_v31, %v5841_v63  ;;  %v1509_v38 = vadd.f32 %v1508_v32, %v5843_v4  ;;  %v1317_v39 = vpop.f32.mrb[89].mxu0  ;;  %v1510_v40 = vpop.f32.mrb[121].mxu1  ;;  %2397 = vmatprep.subr.bf16.mxu0 %v5081_v19 }
 0x441   :  { %v1318_v42 = vadd.f32 %v1317_v39, %v5847_v5  ;;  %v1511_v44 = vadd.f32 %v1510_v40, %v5849_v23  ;;  %v1319_v45 = vpop.f32.mrb[90].mxu0  ;;  %v1512_v48 = vpop.f32.mrb[122].mxu1  ;;  %2266 = vmatprep.mubr.bf16.mxu0 %v1756_v29  ;;  %v5088_v39 = vld [vmem:[%s6763_s7 + $0x1d0] ss:$8 sps:$4 sm:$0xff]  }
 0x442   :  { %v1320_v49 = vadd.f32 %v1319_v45, %v5841_v63  ;;  %v1513_v51 = vadd.f32 %v1512_v48, %v5843_v4  ;;  %v1321_v53 = vpop.f32.mrb[91].mxu0  ;;  %v1514_v55 = vpop.f32.mrb[123].mxu1  ;;  %2267 = vmatmul.mubr.bf16.gmra.mrb[148].mxu0 %v1755_v26  ;;  %v1655_v59 = vmax.f32 %v1316_v36, 0.0  ;;  %v1657_v60 = vmax.f32 %v1509_v38, 0.0  ;;  %v5093_v45 = vld [vmem:[%s6763_s7 + $0x1e4] ss:$8 sps:$4 sm:$0xff]  }
 0x443   :  { %v1322_v50 = vadd.f32 %v1321_v53, %v5847_v5  ;;  %v1515_v56 = vadd.f32 %v1514_v55, %v5849_v23  ;;  %2398 = vmatpush1.bf16.msra.mxu0 %v5079_v34  ;;  %v1656_v43 = vmax.f32 %v1318_v42, 0.0  ;;  %v1658_v1 = vmax.f32 %v1511_v44, 0.0 }
 0x444   :  { %v1659_v62 = vmax.f32 %v1320_v49, 0.0  ;;  %v1661_v22 = vmax.f32 %v1513_v51, 0.0  ;;  %2399 = vmatprep.subr.bf16.mxu0 %v5084_v41 }
 0x445   :  { %v1660_v7 = vmax.f32 %v1322_v50, 0.0  ;;  %v1662_v9 = vmax.f32 %v1515_v56, 0.0 }
 0x446   :  { %v1759_v10 = vpack.c.bf16 %v1659_v62, %v1655_v59  ;;  %v6003_v0 = vpack.c.bf16 %v1661_v22, %v1657_v60  ;;  %v5091_v62 = vld [vmem:[%s6763_s7 + $0x1e0] ss:$8 sps:$4 sm:$0xff]  }
 0x447   :  { %v1760_v12 = vpack.c.bf16 %v1660_v7, %v1656_v43  ;;  %v6005_v17 = vpack.c.bf16 %v1662_v9, %v1658_v1  ;;  %v1325_v14 = vpop.f32.mrb[92].mxu0  ;;  %v1518_v15 = vpop.f32.mrb[124].mxu1  ;;  %2400 = vmatpush1.bf16.msra.mxu0 %v5082_v57  ;;  %v5096_v7 = vld [vmem:[%s6763_s7 + $0x1f4] ss:$8 sps:$4 sm:$0xff]  }
 0x448   :  { %v1326_v21 = vadd.f32 %v1325_v14, %v5841_v63  ;;  %v1519_v11 = vadd.f32 %v1518_v15, %v5843_v4  ;;  %v1327_v25 = vpop.f32.mrb[93].mxu0  ;;  %v1520_v19 = vpop.f32.mrb[125].mxu1  ;;  %2401 = vmatprep.subr.bf16.mxu0 %v5087_v8 }
 0x449   :  { %v1328_v47 = vadd.f32 %v1327_v25, %v5847_v5  ;;  %v1521_v20 = vadd.f32 %v1520_v19, %v5849_v23  ;;  %v1329_v2 = vpop.f32.mrb[94].mxu0  ;;  %v1522_v26 = vpop.f32.mrb[126].mxu1  ;;  %2276 = vmatprep.mubr.bf16.mxu0 %v1760_v12 }
 0x44a   :  { %v1330_v29 = vadd.f32 %v1329_v2, %v5841_v63  ;;  %v1523_v31 = vadd.f32 %v1522_v26, %v5843_v4  ;;  %v1331_v32 = vpop.f32.mrb[95].mxu0  ;;  %v1524_v34 = vpop.f32.mrb[127].mxu1  ;;  %2277 = vmatmul.mubr.bf16.gmra.mrb[152].mxu0 %v1759_v10  ;;  %v1663_v40 = vmax.f32 %v1326_v21, 0.0  ;;  %v1665_v41 = vmax.f32 %v1519_v11, 0.0 }
 0x44b   :  { %v1332_v36 = vadd.f32 %v1331_v32, %v5847_v5  ;;  %v1525_v38 = vadd.f32 %v1524_v34, %v5849_v23  ;;  %2402 = vmatpush1.bf16.msra.mxu0 %v5085_v16  ;;  %v1664_v48 = vmax.f32 %v1328_v47, 0.0  ;;  %v1666_v49 = vmax.f32 %v1521_v20, 0.0 }
 0x44c   :  { %v1667_v42 = vmax.f32 %v1330_v29, 0.0  ;;  %v1669_v44 = vmax.f32 %v1523_v31, 0.0  ;;  %2403 = vmatprep.subr.bf16.mxu0 %v5090_v3  ;;  %v5094_v3 = vld [vmem:[%s6763_s7 + $0x1f0] ss:$8 sps:$4 sm:$0xff]  }
 0x44d   :  { %v1668_v51 = vmax.f32 %v1332_v36, 0.0  ;;  %v1670_v53 = vmax.f32 %v1525_v38, 0.0 }
 0x44e   :  { %v1763_v55 = vpack.c.bf16 %v1667_v42, %v1663_v40  ;;  %v6027_v50 = vpack.c.bf16 %v1669_v44, %v1665_v41 }
 0x44f   :  { %v1764_v56 = vpack.c.bf16 %v1668_v51, %v1664_v48  ;;  %v6029_v57 = vpack.c.bf16 %v1670_v53, %v1666_v49  ;;  %v1335_v59 = vpop.f32.mrb[96].mxu0  ;;  %v1528_v60 = vpop.f32.mrb[128].mxu1  ;;  %2404 = vmatpush1.bf16.msra.mxu0 %v5088_v39 }
 0x450   :  { %v1336_v22 = vadd.f32 %v1335_v59, %v5841_v63  ;;  %v1529_v8 = vadd.f32 %v1528_v60, %v5843_v4  ;;  %v1337_v43 = vpop.f32.mrb[97].mxu0  ;;  %v1530_v1 = vpop.f32.mrb[129].mxu1  ;;  %2405 = vmatprep.subr.bf16.mxu0 %v5093_v45 }
 0x451   :  { %v1338_v9 = vadd.f32 %v1337_v43, %v5847_v5  ;;  %v1531_v10 = vadd.f32 %v1530_v1, %v5849_v23  ;;  %v1339_v12 = vpop.f32.mrb[98].mxu0  ;;  %v1532_v14 = vpop.f32.mrb[130].mxu1  ;;  %2286 = vmatprep.mubr.bf16.mxu0 %v1764_v56 }
 0x452   :  { %v1340_v15 = vadd.f32 %v1339_v12, %v5841_v63  ;;  %v1533_v16 = vadd.f32 %v1532_v14, %v5843_v4  ;;  %v1341_v21 = vpop.f32.mrb[99].mxu0  ;;  %v1534_v11 = vpop.f32.mrb[131].mxu1  ;;  %2287 = vmatmul.mubr.bf16.gmra.mrb[156].mxu0 %v1763_v55  ;;  %v1671_v47 = vmax.f32 %v1336_v22, 0.0  ;;  %v1673_v20 = vmax.f32 %v1529_v8, 0.0 }
 0x453   :  { %v1342_v25 = vadd.f32 %v1341_v21, %v5847_v5  ;;  %v1535_v19 = vadd.f32 %v1534_v11, %v5849_v23  ;;  %2406 = vmatpush1.bf16.msra.mxu0 %v5091_v62  ;;  %v1672_v29 = vmax.f32 %v1338_v9, 0.0  ;;  %v1674_v31 = vmax.f32 %v1531_v10, 0.0 }
 0x454   :  { %v1675_v2 = vmax.f32 %v1340_v15, 0.0  ;;  %v1677_v26 = vmax.f32 %v1533_v16, 0.0  ;;  %2407 = vmatprep.subr.bf16.mxu0 %v5096_v7 }
 0x455   :  { %v1676_v32 = vmax.f32 %v1342_v25, 0.0  ;;  %v1678_v34 = vmax.f32 %v1535_v19, 0.0 }
 0x456   :  { %v1767_v36 = vpack.c.bf16 %v1675_v2, %v1671_v47  ;;  %v6048_v38 = vpack.c.bf16 %v1677_v26, %v1673_v20 }
 0x457   :  { %v1768_v39 = vpack.c.bf16 %v1676_v32, %v1672_v29  ;;  %v6050_v40 = vpack.c.bf16 %v1678_v34, %v1674_v31  ;;  %v1345_v41 = vpop.f32.mrb[100].mxu0  ;;  %v1538_v42 = vpop.f32.mrb[132].mxu1  ;;  %2408 = vmatpush1.bf16.msra.mxu0 %v5094_v3 }
 0x458   :  { %v1346_v44 = vadd.f32 %v1345_v41, %v5841_v63  ;;  %v1539_v45 = vadd.f32 %v1538_v42, %v5843_v4  ;;  %v1347_v48 = vpop.f32.mrb[101].mxu0  ;;  %v1540_v49 = vpop.f32.mrb[133].mxu1 }
 0x459   :  { %v1348_v51 = vadd.f32 %v1347_v48, %v5847_v5  ;;  %v1541_v53 = vadd.f32 %v1540_v49, %v5849_v23  ;;  %v1349_v55 = vpop.f32.mrb[102].mxu0  ;;  %v1542_v56 = vpop.f32.mrb[134].mxu1  ;;  %2296 = vmatprep.mubr.bf16.mxu0 %v1768_v39 }
 0x45a   :  { %v1350_v59 = vadd.f32 %v1349_v55, %v5841_v63  ;;  %v1543_v60 = vadd.f32 %v1542_v56, %v5843_v4  ;;  %v1351_v62 = vpop.f32.mrb[103].mxu0  ;;  %v1544_v22 = vpop.f32.mrb[135].mxu1  ;;  %2297 = vmatmul.mubr.bf16.gmra.mrb[160].mxu0 %v1767_v36  ;;  %v1679_v1 = vmax.f32 %v1346_v44, 0.0  ;;  %v1681_v7 = vmax.f32 %v1539_v45, 0.0 }
 0x45b   :  { %v1352_v8 = vadd.f32 %v1351_v62, %v5847_v5  ;;  %v1545_v43 = vadd.f32 %v1544_v22, %v5849_v23  ;;  %v1680_v12 = vmax.f32 %v1348_v51, 0.0  ;;  %v1682_v14 = vmax.f32 %v1541_v53, 0.0 }
 0x45c   :  { %v1683_v9 = vmax.f32 %v1350_v59, 0.0  ;;  %v1685_v10 = vmax.f32 %v1543_v60, 0.0 }
 0x45d   :  { %v1684_v15 = vmax.f32 %v1352_v8, 0.0  ;;  %v1686_v16 = vmax.f32 %v1545_v43, 0.0 }
 0x45e   :  { %v1771_v21 = vpack.c.bf16 %v1683_v9, %v1679_v1  ;;  %v6060_v11 = vpack.c.bf16 %v1685_v10, %v1681_v7 }
 0x45f   :  { %v1772_v25 = vpack.c.bf16 %v1684_v15, %v1680_v12  ;;  %v6062_v19 = vpack.c.bf16 %v1686_v16, %v1682_v14  ;;  %v1355_v3 = vpop.f32.mrb[104].mxu0  ;;  %v1548_v47 = vpop.f32.mrb[136].mxu1 }
 0x460   :  { %v1356_v20 = vadd.f32 %v1355_v3, %v5841_v63  ;;  %v1549_v2 = vadd.f32 %v1548_v47, %v5843_v4  ;;  %v1357_v26 = vpop.f32.mrb[105].mxu0  ;;  %v1550_v29 = vpop.f32.mrb[137].mxu1 }
 0x461   :  { %v1358_v31 = vadd.f32 %v1357_v26, %v5847_v5  ;;  %v1551_v32 = vadd.f32 %v1550_v29, %v5849_v23  ;;  %v1359_v34 = vpop.f32.mrb[106].mxu0  ;;  %v1552_v36 = vpop.f32.mrb[138].mxu1  ;;  %2306 = vmatprep.mubr.bf16.mxu0 %v1772_v25 }
 0x462   :  { %v1360_v39 = vadd.f32 %v1359_v34, %v5841_v63  ;;  %v1553_v41 = vadd.f32 %v1552_v36, %v5843_v4  ;;  %v1361_v42 = vpop.f32.mrb[107].mxu0  ;;  %v1554_v44 = vpop.f32.mrb[139].mxu1  ;;  %2307 = vmatmul.mubr.bf16.gmra.mrb[164].mxu0 %v1771_v21  ;;  %v1687_v49 = vmax.f32 %v1356_v20, 0.0  ;;  %v1689_v51 = vmax.f32 %v1549_v2, 0.0 }
 0x463   :  { %v1362_v45 = vadd.f32 %v1361_v42, %v5847_v5  ;;  %v1555_v48 = vadd.f32 %v1554_v44, %v5849_v23  ;;  %v1688_v56 = vmax.f32 %v1358_v31, 0.0  ;;  %v1690_v59 = vmax.f32 %v1551_v32, 0.0 }
 0x464   :  { %v1691_v53 = vmax.f32 %v1360_v39, 0.0  ;;  %v1693_v55 = vmax.f32 %v1553_v41, 0.0 }
 0x465   :  { %v1692_v60 = vmax.f32 %v1362_v45, 0.0  ;;  %v1694_v62 = vmax.f32 %v1555_v48, 0.0 }
 0x466   :  { %v1775_v22 = vpack.c.bf16 %v1691_v53, %v1687_v49  ;;  %v6072_v8 = vpack.c.bf16 %v1693_v55, %v1689_v51 }
 0x467   :  { %v1776_v43 = vpack.c.bf16 %v1692_v60, %v1688_v56  ;;  %v6074_v1 = vpack.c.bf16 %v1694_v62, %v1690_v59  ;;  %v1365_v7 = vpop.f32.mrb[108].mxu0  ;;  %v1558_v9 = vpop.f32.mrb[140].mxu1 }
 0x468   :  { %v1366_v10 = vadd.f32 %v1365_v7, %v5841_v63  ;;  %v1559_v12 = vadd.f32 %v1558_v9, %v5843_v4  ;;  %v1367_v14 = vpop.f32.mrb[109].mxu0  ;;  %v1560_v15 = vpop.f32.mrb[141].mxu1 }
 0x469   :  { %v1368_v16 = vadd.f32 %v1367_v14, %v5847_v5  ;;  %v1561_v21 = vadd.f32 %v1560_v15, %v5849_v23  ;;  %v1369_v25 = vpop.f32.mrb[110].mxu0  ;;  %v1562_v3 = vpop.f32.mrb[142].mxu1  ;;  %2316 = vmatprep.mubr.bf16.mxu0 %v1776_v43 }
 0x46a   :  { %v1370_v47 = vadd.f32 %v1369_v25, %v5841_v63  ;;  %v1563_v20 = vadd.f32 %v1562_v3, %v5843_v4  ;;  %v1371_v2 = vpop.f32.mrb[111].mxu0  ;;  %v1564_v26 = vpop.f32.mrb[143].mxu1  ;;  %2317 = vmatmul.mubr.bf16.gmra.mrb[168].mxu0 %v1775_v22  ;;  %v1695_v32 = vmax.f32 %v1366_v10, 0.0  ;;  %v1697_v34 = vmax.f32 %v1559_v12, 0.0 }
 0x46b   :  { %v1372_v29 = vadd.f32 %v1371_v2, %v5847_v5  ;;  %v1565_v31 = vadd.f32 %v1564_v26, %v5849_v23  ;;  %v1696_v41 = vmax.f32 %v1368_v16, 0.0  ;;  %v1698_v42 = vmax.f32 %v1561_v21, 0.0 }
 0x46c   :  { %v1699_v36 = vmax.f32 %v1370_v47, 0.0  ;;  %v1701_v39 = vmax.f32 %v1563_v20, 0.0 }
 0x46d   :  { %v1700_v44 = vmax.f32 %v1372_v29, 0.0  ;;  %v1702_v45 = vmax.f32 %v1565_v31, 0.0 }
 0x46e   :  { %v1779_v48 = vpack.c.bf16 %v1699_v36, %v1695_v32  ;;  %v6084_v49 = vpack.c.bf16 %v1701_v39, %v1697_v34 }
 0x46f   :  { %v1780_v51 = vpack.c.bf16 %v1700_v44, %v1696_v41  ;;  %v6086_v53 = vpack.c.bf16 %v1702_v45, %v1698_v42  ;;  %v1375_v55 = vpop.f32.mrb[112].mxu0  ;;  %v1568_v56 = vpop.f32.mrb[144].mxu1 }
 0x470   :  { %v1376_v59 = vadd.f32 %v1375_v55, %v5841_v63  ;;  %v1569_v60 = vadd.f32 %v1568_v56, %v5843_v4  ;;  %v1377_v62 = vpop.f32.mrb[113].mxu0  ;;  %v1570_v22 = vpop.f32.mrb[145].mxu1 }
 0x471   :  { %v1378_v43 = vadd.f32 %v1377_v62, %v5847_v5  ;;  %v1571_v7 = vadd.f32 %v1570_v22, %v5849_v23  ;;  %v1379_v9 = vpop.f32.mrb[114].mxu0  ;;  %v1572_v10 = vpop.f32.mrb[146].mxu1  ;;  %2326 = vmatprep.mubr.bf16.mxu0 %v1780_v51 }
 0x472   :  { %v1380_v12 = vadd.f32 %v1379_v9, %v5841_v63  ;;  %v1573_v14 = vadd.f32 %v1572_v10, %v5843_v4  ;;  %v1381_v15 = vpop.f32.mrb[115].mxu0  ;;  %v1574_v16 = vpop.f32.mrb[147].mxu1  ;;  %2327 = vmatmul.mubr.bf16.gmra.mrb[172].mxu0 %v1779_v48  ;;  %v1703_v3 = vmax.f32 %v1376_v59, 0.0  ;;  %v1705_v47 = vmax.f32 %v1569_v60, 0.0 }
 0x473   :  { %v1382_v21 = vadd.f32 %v1381_v15, %v5847_v5  ;;  %v1575_v25 = vadd.f32 %v1574_v16, %v5849_v23  ;;  %v1704_v26 = vmax.f32 %v1378_v43, 0.0  ;;  %v1706_v29 = vmax.f32 %v1571_v7, 0.0 }
 0x474   :  { %v1707_v20 = vmax.f32 %v1380_v12, 0.0  ;;  %v1709_v2 = vmax.f32 %v1573_v14, 0.0 }
 0x475   :  { %v1708_v31 = vmax.f32 %v1382_v21, 0.0  ;;  %v1710_v32 = vmax.f32 %v1575_v25, 0.0 }
 0x476   :  { %v1783_v34 = vpack.c.bf16 %v1707_v20, %v1703_v3  ;;  %v6096_v36 = vpack.c.bf16 %v1709_v2, %v1705_v47 }
 0x477   :  { %v1784_v39 = vpack.c.bf16 %v1708_v31, %v1704_v26  ;;  %v6098_v41 = vpack.c.bf16 %v1710_v32, %v1706_v29  ;;  %v1385_v42 = vpop.f32.mrb[116].mxu0  ;;  %v1578_v44 = vpop.f32.mrb[148].mxu1 }
 0x478   :  { %v1386_v45 = vadd.f32 %v1385_v42, %v5841_v63  ;;  %v1579_v48 = vadd.f32 %v1578_v44, %v5843_v4  ;;  %v1387_v51 = vpop.f32.mrb[117].mxu0  ;;  %v1580_v55 = vpop.f32.mrb[149].mxu1 }
 0x479   :  { %v1388_v56 = vadd.f32 %v1387_v51, %v5847_v5  ;;  %v1581_v59 = vadd.f32 %v1580_v55, %v5849_v23  ;;  %v1389_v60 = vpop.f32.mrb[118].mxu0  ;;  %v1582_v62 = vpop.f32.mrb[150].mxu1  ;;  %2336 = vmatprep.mubr.bf16.mxu0 %v1784_v39 }
 0x47a   :  { %v1390_v22 = vadd.f32 %v1389_v60, %v5841_v63  ;;  %v1583_v43 = vadd.f32 %v1582_v62, %v5843_v4  ;;  %v1391_v7 = vpop.f32.mrb[119].mxu0  ;;  %v1584_v9 = vpop.f32.mrb[151].mxu1  ;;  %2337 = vmatmul.mubr.bf16.gmra.mrb[176].mxu0 %v1783_v34  ;;  %v1711_v14 = vmax.f32 %v1386_v45, 0.0  ;;  %v1713_v15 = vmax.f32 %v1579_v48, 0.0 }
 0x47b   :  { %v1392_v10 = vadd.f32 %v1391_v7, %v5847_v5  ;;  %v1585_v12 = vadd.f32 %v1584_v9, %v5849_v23  ;;  %v1712_v25 = vmax.f32 %v1388_v56, 0.0  ;;  %v1714_v3 = vmax.f32 %v1581_v59, 0.0 }
 0x47c   :  { %v1715_v16 = vmax.f32 %v1390_v22, 0.0  ;;  %v1717_v21 = vmax.f32 %v1583_v43, 0.0 }
 0x47d   :  { %v1716_v47 = vmax.f32 %v1392_v10, 0.0  ;;  %v1718_v20 = vmax.f32 %v1585_v12, 0.0 }
 0x47e   :  { %v1787_v2 = vpack.c.bf16 %v1715_v16, %v1711_v14  ;;  %v6108_v26 = vpack.c.bf16 %v1717_v21, %v1713_v15 }
 0x47f   :  { %v1788_v29 = vpack.c.bf16 %v1716_v47, %v1712_v25  ;;  %v6110_v31 = vpack.c.bf16 %v1718_v20, %v1714_v3  ;;  %v1395_v32 = vpop.f32.mrb[120].mxu0  ;;  %v1588_v34 = vpop.f32.mrb[152].mxu1 }
 0x480   :  { %v1396_v39 = vadd.f32 %v1395_v32, %v5841_v63  ;;  %v1589_v42 = vadd.f32 %v1588_v34, %v5843_v4  ;;  %v1397_v44 = vpop.f32.mrb[121].mxu0  ;;  %v1590_v45 = vpop.f32.mrb[153].mxu1 }
 0x481   :  { %v1398_v48 = vadd.f32 %v1397_v44, %v5847_v5  ;;  %v1591_v51 = vadd.f32 %v1590_v45, %v5849_v23  ;;  %v1399_v55 = vpop.f32.mrb[122].mxu0  ;;  %v1592_v56 = vpop.f32.mrb[154].mxu1  ;;  %2346 = vmatprep.mubr.bf16.mxu0 %v1788_v29 }
 0x482   :  { %v1400_v59 = vadd.f32 %v1399_v55, %v5841_v63  ;;  %v1593_v60 = vadd.f32 %v1592_v56, %v5843_v4  ;;  %v1401_v62 = vpop.f32.mrb[123].mxu0  ;;  %v1594_v22 = vpop.f32.mrb[155].mxu1  ;;  %2347 = vmatmul.mubr.bf16.gmra.mrb[180].mxu0 %v1787_v2  ;;  %v1719_v9 = vmax.f32 %v1396_v39, 0.0  ;;  %v1721_v10 = vmax.f32 %v1589_v42, 0.0 }
 0x483   :  { %v1402_v43 = vadd.f32 %v1401_v62, %v5847_v5  ;;  %v1595_v7 = vadd.f32 %v1594_v22, %v5849_v23  ;;  %v1720_v15 = vmax.f32 %v1398_v48, 0.0  ;;  %v1722_v16 = vmax.f32 %v1591_v51, 0.0 }
 0x484   :  { %v1723_v12 = vmax.f32 %v1400_v59, 0.0  ;;  %v1725_v14 = vmax.f32 %v1593_v60, 0.0 }
 0x485   :  { %v1724_v21 = vmax.f32 %v1402_v43, 0.0  ;;  %v1726_v25 = vmax.f32 %v1595_v7, 0.0 }
 0x486   :  { %v1791_v3 = vpack.c.bf16 %v1723_v12, %v1719_v9  ;;  %v6120_v47 = vpack.c.bf16 %v1725_v14, %v1721_v10 }
 0x487   :  { %v1792_v20 = vpack.c.bf16 %v1724_v21, %v1720_v15  ;;  %v1794_v29 = vpack.c.bf16 %v1726_v25, %v1722_v16  ;;  %v1405_v32 = vpop.f32.mrb[124].mxu0  ;;  %v1598_v34 = vpop.f32.mrb[156].mxu1 }
 0x488   :  { %v1406_v2 = vadd.f32 %v1405_v32, %v5841_v63  ;;  %v1599_v44 = vadd.f32 %v1598_v34, %v5843_v4  ;;  %v1407_v45 = vpop.f32.mrb[125].mxu0  ;;  %v1600_v39 = vpop.f32.mrb[157].mxu1 }
 0x489   :  { %v1408_v42 = vadd.f32 %v1407_v45, %v5847_v5  ;;  %v1601_v48 = vadd.f32 %v1600_v39, %v5849_v23  ;;  %v1409_v51 = vpop.f32.mrb[126].mxu0  ;;  %v1602_v55 = vpop.f32.mrb[158].mxu1  ;;  %2356 = vmatprep.mubr.bf16.mxu0 %v1792_v20 }
 0x48a   :  { %v1410_v56 = vadd.f32 %v1409_v51, %v5841_v63  ;;  %v1603_v59 = vadd.f32 %v1602_v55, %v5843_v4  ;;  %v1411_v60 = vpop.f32.mrb[127].mxu0  ;;  %v1604_v62 = vpop.f32.mrb[159].mxu1  ;;  %2357 = vmatmul.mubr.bf16.gmra.mrb[184].mxu0 %v1791_v3  ;;  %v1727_v7 = vmax.f32 %v1406_v2, 0.0  ;;  %v1729_v9 = vmax.f32 %v1599_v44, 0.0  ;;  %v5132_v4 = vld [vmem:[%s6759_s0 + $0x4] ss:$8 sps:$4 sm:$0xff]  }
 0x48b   :  { %v1412_v22 = vadd.f32 %v1411_v60, %v5847_v5  ;;  %v1605_v43 = vadd.f32 %v1604_v62, %v5849_v23  ;;  %v1728_v14 = vmax.f32 %v1408_v42, 0.0  ;;  %v1730_v15 = vmax.f32 %v1601_v48, 0.0 }
 0x48c   :  { %v1731_v10 = vmax.f32 %v1410_v56, 0.0  ;;  %v1733_v12 = vmax.f32 %v1603_v59, 0.0 }
 0x48d   :  { %v1732_v16 = vmax.f32 %v1412_v22, 0.0  ;;  %v1734_v21 = vmax.f32 %v1605_v43, 0.0 }
 0x48e   :  { %v1795_v25 = vpack.c.bf16 %v1731_v10, %v1727_v7  ;;  %v1797_v20 = vpack.c.bf16 %v1733_v12, %v1729_v9 }
 0x48f   :  { %v1796_v63 = vpack.c.bf16 %v1732_v16, %v1728_v14  ;;  %v1798_v32 = vpack.c.bf16 %v1734_v21, %v1730_v15 }
 0x491   :  { %2366 = vmatprep.mubr.bf16.mxu0 %v1796_v63 }
 0x492   :  { %2367 = vmatmul.mubr.bf16.gmra.mrb[188].mxu0 %v1795_v25 }
 0x493   :  { %2409 = vmatprep.mubr.bf16.mxu0 %v5861_v27 }
 0x49a   :  { %2410 = vmatmul.mubr.bf16.vlgmr.msra.gmra.mrb[128].mxu0 %v5859_v24 }
 0x49b   :  { %2419 = vmatprep.mubr.bf16.mxu0 %v5885_v46 }
 0x4a2   :  { %2420 = vmatmul.mubr.bf16.gmra.mrb[132].mxu0 %v5883_v6 }
 0x4a3   :  { %2429 = vmatprep.mubr.bf16.mxu0 %v5909_v37 }
 0x4aa   :  { %2430 = vmatmul.mubr.bf16.gmra.mrb[136].mxu0 %v5907_v35 }
 0x4ab   :  { %2439 = vmatprep.mubr.bf16.mxu0 %v5933_v18 }
 0x4b2   :  { %2440 = vmatmul.mubr.bf16.gmra.mrb[140].mxu0 %v5931_v13 }
 0x4b3   :  { %2449 = vmatprep.mubr.bf16.mxu0 %v5957_v54 }
 0x4ba   :  { %2450 = vmatmul.mubr.bf16.gmra.mrb[144].mxu0 %v5955_v52 }
 0x4bb   :  { %2459 = vmatprep.mubr.bf16.mxu0 %v5981_v30 }
 0x4c2   :  { %2460 = vmatmul.mubr.bf16.gmra.mrb[148].mxu0 %v5979_v28 }
 0x4c3   :  { %2469 = vmatprep.mubr.bf16.mxu0 %v6005_v17 }
 0x4ca   :  { %2470 = vmatmul.mubr.bf16.gmra.mrb[152].mxu0 %v6003_v0 }
 0x4cb   :  { %2479 = vmatprep.mubr.bf16.mxu0 %v6029_v57 }
 0x4d2   :  { %2480 = vmatmul.mubr.bf16.gmra.mrb[156].mxu0 %v6027_v50 }
 0x4d3   :  { %2489 = vmatprep.mubr.bf16.mxu0 %v6050_v40 }
 0x4da   :  { %2490 = vmatmul.mubr.bf16.gmra.mrb[160].mxu0 %v6048_v38 }
 0x4db   :  { %2499 = vmatprep.mubr.bf16.mxu0 %v6062_v19 }
 0x4e2   :  { %2500 = vmatmul.mubr.bf16.gmra.mrb[164].mxu0 %v6060_v11 }
 0x4e3   :  { %2509 = vmatprep.mubr.bf16.mxu0 %v6074_v1 }
 0x4ea   :  { %2510 = vmatmul.mubr.bf16.gmra.mrb[168].mxu0 %v6072_v8 }
 0x4eb   :  { %2519 = vmatprep.mubr.bf16.mxu0 %v6086_v53 }
 0x4f2   :  { %2520 = vmatmul.mubr.bf16.gmra.mrb[172].mxu0 %v6084_v49 }
 0x4f3   :  { %2529 = vmatprep.mubr.bf16.mxu0 %v6098_v41 }
 0x4fa   :  { %2530 = vmatmul.mubr.bf16.gmra.mrb[176].mxu0 %v6096_v36 }
 0x4fb   :  { %2539 = vmatprep.mubr.bf16.mxu0 %v6110_v31 }
 0x502   :  { %2540 = vmatmul.mubr.bf16.gmra.mrb[180].mxu0 %v6108_v26 }
 0x503   :  { %2549 = vmatprep.mubr.bf16.mxu0 %v1794_v29 }
 0x50a   :  { %2550 = vmatmul.mubr.bf16.gmra.mrb[184].mxu0 %v6120_v47 }
 0x50b   :  { %2559 = vmatprep.mubr.bf16.mxu0 %v1798_v32 }
 0x512   :  { %2560 = vmatmul.mubr.bf16.gmra.mrb[188].mxu0 %v1797_v20 }
 0x513   :  { %3246 = vmatprep.mubr.bf16.mxu0 %v5132_v4 }
 0x56d   :  { %v2411_v5 = vpop.f32.mrb[128].mxu0 }
 0x56e   :  { %v2413_v23 = vpop.f32.mrb[129].mxu0 }
 0x56f   :  { %v2415_v24 = vpop.f32.mrb[130].mxu0 }
 0x570   :  { %v2570_v27 = vpack.c.bf16 %v2415_v24, %v2411_v5  ;;  %v2417_v6 = vpop.f32.mrb[131].mxu0 }
 0x571   :  { %v2571_v46 = vpack.c.bf16 %v2417_v6, %v2413_v23 }
 0x573   :  { %2613 = vmatprep.subr.bf16.mxu1 %v2571_v46 }
 0x574   :  { %2614 = vmatpush1.bf16.msra.mxu1 %v2570_v27 }
 0x575   :  { %v2421_v35 = vpop.f32.mrb[132].mxu0 }
 0x576   :  { %v2423_v37 = vpop.f32.mrb[133].mxu0 }
 0x577   :  { %v2425_v13 = vpop.f32.mrb[134].mxu0 }
 0x578   :  { %v2572_v18 = vpack.c.bf16 %v2425_v13, %v2421_v35  ;;  %v2427_v52 = vpop.f32.mrb[135].mxu0 }
 0x579   :  { %v2573_v54 = vpack.c.bf16 %v2427_v52, %v2423_v37 }
 0x57b   :  { %2615 = vmatprep.subr.bf16.mxu1 %v2573_v54 }
 0x57c   :  { %2616 = vmatpush1.bf16.msra.mxu1 %v2572_v18 }
 0x57d   :  { %v2431_v28 = vpop.f32.mrb[136].mxu0 }
 0x57e   :  { %v2433_v30 = vpop.f32.mrb[137].mxu0 }
 0x57f   :  { %v2435_v0 = vpop.f32.mrb[138].mxu0 }
 0x580   :  { %v2574_v17 = vpack.c.bf16 %v2435_v0, %v2431_v28  ;;  %v2437_v50 = vpop.f32.mrb[139].mxu0 }
 0x581   :  { %v2575_v57 = vpack.c.bf16 %v2437_v50, %v2433_v30 }
 0x583   :  { %2617 = vmatprep.subr.bf16.mxu1 %v2575_v57 }
 0x584   :  { %2618 = vmatpush1.bf16.msra.mxu1 %v2574_v17 }
 0x585   :  { %v2441_v38 = vpop.f32.mrb[140].mxu0 }
 0x586   :  { %v2443_v40 = vpop.f32.mrb[141].mxu0 }
 0x587   :  { %v2445_v11 = vpop.f32.mrb[142].mxu0 }
 0x588   :  { %v2576_v19 = vpack.c.bf16 %v2445_v11, %v2441_v38  ;;  %v2447_v8 = vpop.f32.mrb[143].mxu0 }
 0x589   :  { %v2577_v1 = vpack.c.bf16 %v2447_v8, %v2443_v40 }
 0x58b   :  { %2619 = vmatprep.subr.bf16.mxu1 %v2577_v1 }
 0x58c   :  { %2620 = vmatpush1.bf16.msra.mxu1 %v2576_v19 }
 0x58d   :  { %v2451_v49 = vpop.f32.mrb[144].mxu0 }
 0x58e   :  { %v2453_v53 = vpop.f32.mrb[145].mxu0 }
 0x58f   :  { %v2455_v36 = vpop.f32.mrb[146].mxu0 }
 0x590   :  { %v2578_v41 = vpack.c.bf16 %v2455_v36, %v2451_v49  ;;  %v2457_v26 = vpop.f32.mrb[147].mxu0 }
 0x591   :  { %v2579_v31 = vpack.c.bf16 %v2457_v26, %v2453_v53 }
 0x593   :  { %2621 = vmatprep.subr.bf16.mxu1 %v2579_v31 }
 0x594   :  { %2622 = vmatpush1.bf16.msra.mxu1 %v2578_v41 }
 0x595   :  { %v2461_v3 = vpop.f32.mrb[148].mxu0 }
 0x596   :  { %v2463_v47 = vpop.f32.mrb[149].mxu0 }
 0x597   :  { %v2465_v29 = vpop.f32.mrb[150].mxu0 }
 0x598   :  { %v2580_v34 = vpack.c.bf16 %v2465_v29, %v2461_v3  ;;  %v2467_v2 = vpop.f32.mrb[151].mxu0 }
 0x599   :  { %v2581_v44 = vpack.c.bf16 %v2467_v2, %v2463_v47 }
 0x59b   :  { %2623 = vmatprep.subr.bf16.mxu1 %v2581_v44  ;;  %v5097_v44 = vld [vmem:[%s6765_s9 + $0x40] sm:$0xff]  }
 0x59c   :  { %2624 = vmatpush1.bf16.msra.mxu1 %v2580_v34 }
 0x59d   :  { %v2471_v45 = vpop.f32.mrb[152].mxu0 }
 0x59e   :  { %v2473_v39 = vpop.f32.mrb[153].mxu0 }
 0x59f   :  { %v2475_v42 = vpop.f32.mrb[154].mxu0 }
 0x5a0   :  { %v2582_v48 = vpack.c.bf16 %v2475_v42, %v2471_v45  ;;  %v2477_v51 = vpop.f32.mrb[155].mxu0  ;;  %v5098_v45 = vld [vmem:[%s6765_s9] sm:$0xff]  }
 0x5a1   :  { %v2583_v55 = vpack.c.bf16 %v2477_v51, %v2473_v39  ;;  %v5099_v39 = vld [vmem:[%s6765_s9 + $0x48] sm:$0xff]  }
 0x5a2   :  { %v6174_v42 = vld [vmem:[%s6759_s0] ss:$8 sps:$4 sm:$0xff]  }
 0x5a3   :  { %2625 = vmatprep.subr.bf16.mxu1 %v2583_v55  ;;  %v5100_v51 = vld [vmem:[%s6765_s9 + $0x8] sm:$0xff]   ;;  %v5101_v55 = vld [vmem:[%s6765_s9 + $0x50] sm:$0xff]  }
 0x5a4   :  { %2626 = vmatpush1.bf16.msra.mxu1 %v2582_v48  ;;  %v6180_v48 = vld [vmem:[%s6759_s0 + $0x14] ss:$8 sps:$4 sm:$0xff]  }
 0x5a5   :  { %v2481_v56 = vpop.f32.mrb[156].mxu0 }
 0x5a6   :  { %v2483_v59 = vpop.f32.mrb[157].mxu0 }
 0x5a7   :  { %v2485_v60 = vpop.f32.mrb[158].mxu0 }
 0x5a8   :  { %v2584_v62 = vpack.c.bf16 %v2485_v60, %v2481_v56  ;;  %v2487_v22 = vpop.f32.mrb[159].mxu0  ;;  %v5102_v56 = vld [vmem:[%s6765_s9 + $0x10] sm:$0xff]  }
 0x5a9   :  { %v2585_v43 = vpack.c.bf16 %v2487_v22, %v2483_v59  ;;  %v5103_v59 = vld [vmem:[%s6765_s9 + $0x58] sm:$0xff]  }
 0x5aa   :  { %v6198_v60 = vld [vmem:[%s6759_s0 + $0x10] ss:$8 sps:$4 sm:$0xff]  }
 0x5ab   :  { %2627 = vmatprep.subr.bf16.mxu1 %v2585_v43  ;;  %v5104_v22 = vld [vmem:[%s6765_s9 + $0x18] sm:$0xff]   ;;  %v5105_v43 = vld [vmem:[%s6765_s9 + $0x60] sm:$0xff]  }
 0x5ac   :  { %2628 = vmatpush1.bf16.msra.mxu1 %v2584_v62  ;;  %v6204_v62 = vld [vmem:[%s6759_s0 + $0x24] ss:$8 sps:$4 sm:$0xff]  }
 0x5ad   :  { %v2491_v7 = vpop.f32.mrb[160].mxu0 }
 0x5ae   :  { %v2493_v9 = vpop.f32.mrb[161].mxu0 }
 0x5af   :  { %v2495_v10 = vpop.f32.mrb[162].mxu0 }
 0x5b0   :  { %v2586_v12 = vpack.c.bf16 %v2495_v10, %v2491_v7  ;;  %v2497_v14 = vpop.f32.mrb[163].mxu0  ;;  %v5106_v7 = vld [vmem:[%s6765_s9 + $0x20] sm:$0xff]  }
 0x5b1   :  { %v2587_v15 = vpack.c.bf16 %v2497_v14, %v2493_v9  ;;  %v5107_v9 = vld [vmem:[%s6765_s9 + $0x68] sm:$0xff]   ;;  %v6234_v14 = vld [vmem:[%s6759_s0 + $0x30] ss:$8 sps:$4 sm:$0xff]  }
 0x5b2   :  { %v6222_v10 = vld [vmem:[%s6759_s0 + $0x20] ss:$8 sps:$4 sm:$0xff]  }
 0x5b3   :  { %2629 = vmatprep.subr.bf16.mxu1 %v2587_v15  ;;  %v6240_v15 = vld [vmem:[%s6759_s0 + $0x44] ss:$8 sps:$4 sm:$0xff]  }
 0x5b4   :  { %2630 = vmatpush1.bf16.msra.mxu1 %v2586_v12  ;;  %v6228_v12 = vld [vmem:[%s6759_s0 + $0x34] ss:$8 sps:$4 sm:$0xff]  }
 0x5b5   :  { %v2501_v16 = vpop.f32.mrb[164].mxu0 }
 0x5b6   :  { %v2503_v21 = vpop.f32.mrb[165].mxu0 }
 0x5b7   :  { %v2505_v25 = vpop.f32.mrb[166].mxu0 }
 0x5b8   :  { %v2588_v20 = vpack.c.bf16 %v2505_v25, %v2501_v16  ;;  %v2507_v63 = vpop.f32.mrb[167].mxu0  ;;  %v6246_v16 = vld [vmem:[%s6759_s0 + $0x40] ss:$8 sps:$4 sm:$0xff]   ;;  %v6258_v25 = vld [vmem:[%s6759_s0 + $0x50] ss:$8 sps:$4 sm:$0xff]  }
 0x5b9   :  { %v2589_v32 = vpack.c.bf16 %v2507_v63, %v2503_v21  ;;  %v6252_v21 = vld [vmem:[%s6759_s0 + $0x54] ss:$8 sps:$4 sm:$0xff]   ;;  %v6270_v63 = vld [vmem:[%s6759_s0 + $0x60] ss:$8 sps:$4 sm:$0xff]  }
 0x5bb   :  { %2631 = vmatprep.subr.bf16.mxu1 %v2589_v32  ;;  %v6276_v32 = vld [vmem:[%s6759_s0 + $0x74] ss:$8 sps:$4 sm:$0xff]  }
 0x5bc   :  { %2632 = vmatpush1.bf16.msra.mxu1 %v2588_v20  ;;  %v6264_v20 = vld [vmem:[%s6759_s0 + $0x64] ss:$8 sps:$4 sm:$0xff]  }
 0x5bd   :  { %v2511_v4 = vpop.f32.mrb[168].mxu0 }
 0x5be   :  { %v2513_v5 = vpop.f32.mrb[169].mxu0 }
 0x5bf   :  { %v2515_v23 = vpop.f32.mrb[170].mxu0 }
 0x5c0   :  { %v2590_v24 = vpack.c.bf16 %v2515_v23, %v2511_v4  ;;  %v2517_v27 = vpop.f32.mrb[171].mxu0  ;;  %v6282_v4 = vld [vmem:[%s6759_s0 + $0x70] ss:$8 sps:$4 sm:$0xff]   ;;  %v6294_v23 = vld [vmem:[%s6759_s0 + $0x80] ss:$8 sps:$4 sm:$0xff]  }
 0x5c1   :  { %v2591_v6 = vpack.c.bf16 %v2517_v27, %v2513_v5  ;;  %v6288_v5 = vld [vmem:[%s6759_s0 + $0x84] ss:$8 sps:$4 sm:$0xff]   ;;  %v6306_v27 = vld [vmem:[%s6759_s0 + $0x90] ss:$8 sps:$4 sm:$0xff]  }
 0x5c3   :  { %2633 = vmatprep.subr.bf16.mxu1 %v2591_v6  ;;  %v6312_v6 = vld [vmem:[%s6759_s0 + $0xa4] ss:$8 sps:$4 sm:$0xff]  }
 0x5c4   :  { %2634 = vmatpush1.bf16.msra.mxu1 %v2590_v24  ;;  %v6300_v24 = vld [vmem:[%s6759_s0 + $0x94] ss:$8 sps:$4 sm:$0xff]  }
 0x5c5   :  { %v2521_v46 = vpop.f32.mrb[172].mxu0 }
 0x5c6   :  { %v2523_v35 = vpop.f32.mrb[173].mxu0 }
 0x5c7   :  { %v2525_v37 = vpop.f32.mrb[174].mxu0 }
 0x5c8   :  { %v2592_v13 = vpack.c.bf16 %v2525_v37, %v2521_v46  ;;  %v2527_v18 = vpop.f32.mrb[175].mxu0  ;;  %v6318_v46 = vld [vmem:[%s6759_s0 + $0xa0] ss:$8 sps:$4 sm:$0xff]  }
 0x5c9   :  { %v2593_v52 = vpack.c.bf16 %v2527_v18, %v2523_v35  ;;  %v6324_v35 = vld [vmem:[%s6759_s0 + $0xb4] ss:$8 sps:$4 sm:$0xff]   ;;  %v5108_v37 = vld [vmem:[%s6765_s9 + $0x28] sm:$0xff]  }
 0x5ca   :  { %v5110_v18 = vld [vmem:[%s6765_s9 + $0x30] sm:$0xff]  }
 0x5cb   :  { %2635 = vmatprep.subr.bf16.mxu1 %v2593_v52  ;;  %v6339_v52 = vld [vmem:[%s6759_s0 + $0xb0] ss:$8 sps:$4 sm:$0xff]  }
 0x5cc   :  { %2636 = vmatpush1.bf16.msra.mxu1 %v2592_v13  ;;  %v5109_v13 = vld [vmem:[%s6765_s9 + $0x70] sm:$0xff]  }
 0x5cd   :  { %v2531_v54 = vpop.f32.mrb[176].mxu0 }
 0x5ce   :  { %v2533_v28 = vpop.f32.mrb[177].mxu0 }
 0x5cf   :  { %v2535_v30 = vpop.f32.mrb[178].mxu0 }
 0x5d0   :  { %v2594_v0 = vpack.c.bf16 %v2535_v30, %v2531_v54  ;;  %v2537_v17 = vpop.f32.mrb[179].mxu0  ;;  %v5111_v54 = vld [vmem:[%s6765_s9 + $0x78] sm:$0xff]  }
 0x5d1   :  { %v2595_v50 = vpack.c.bf16 %v2537_v17, %v2533_v28  ;;  %v6348_v28 = vld [vmem:[%s6759_s0 + $0xc4] ss:$8 sps:$4 sm:$0xff]   ;;  %v5112_v30 = vld [vmem:[%s6765_s9 + $0x38] sm:$0xff]  }
 0x5d2   :  { %v6363_v17 = vld [vmem:[%s6759_s0 + $0xd4] ss:$8 sps:$4 sm:$0xff]  }
 0x5d3   :  { %2637 = vmatprep.subr.bf16.mxu1 %v2595_v50  ;;  %v6369_v50 = vld [vmem:[%s6759_s0 + $0xd0] ss:$8 sps:$4 sm:$0xff]  }
 0x5d4   :  { %2638 = vmatpush1.bf16.msra.mxu1 %v2594_v0  ;;  %v6357_v0 = vld [vmem:[%s6759_s0 + $0xc0] ss:$8 sps:$4 sm:$0xff]  }
 0x5d5   :  { %v2541_v57 = vpop.f32.mrb[180].mxu0 }
 0x5d6   :  { %v2543_v38 = vpop.f32.mrb[181].mxu0 }
 0x5d7   :  { %v2545_v40 = vpop.f32.mrb[182].mxu0 }
 0x5d8   :  { %v2596_v11 = vpack.c.bf16 %v2545_v40, %v2541_v57  ;;  %v2547_v19 = vpop.f32.mrb[183].mxu0  ;;  %v6375_v57 = vld [vmem:[%s6759_s0 + $0xe4] ss:$8 sps:$4 sm:$0xff]   ;;  %v6387_v40 = vld [vmem:[%s6759_s0 + $0xf4] ss:$8 sps:$4 sm:$0xff]  }
 0x5d9   :  { %v2597_v8 = vpack.c.bf16 %v2547_v19, %v2543_v38  ;;  %v6381_v38 = vld [vmem:[%s6759_s0 + $0xe0] ss:$8 sps:$4 sm:$0xff]  }
 0x5da   :  { %v1863_v19 = vld [vmem:[%s6766_s8] sm:$0x3] }
 0x5db   :  { %2639 = vmatprep.subr.bf16.mxu1 %v2597_v8  ;;  %v6401_v8 = vrot.slane %v1863_v19, %v1043_v33 }
 0x5dc   :  { %2640 = vmatpush1.bf16.msra.mxu1 %v2596_v11  ;;  %v6393_v11 = vld [vmem:[%s6759_s0 + $0xf0] ss:$8 sps:$4 sm:$0xff]  }
 0x5dd   :  { %v2551_v1 = vpop.f32.mrb[184].mxu0 }
 0x5de   :  { %v2553_v49 = vpop.f32.mrb[185].mxu0 }
 0x5df   :  { %v2555_v53 = vpop.f32.mrb[186].mxu0 }
 0x5e0   :  { %v2598_v36 = vpack.c.bf16 %v2555_v53, %v2551_v1  ;;  %v2557_v41 = vpop.f32.mrb[187].mxu0  ;;  %v6405_v1 = vrot.slane %v1863_v19, %v1047_v61 }
 0x5e1   :  { %v2599_v26 = vpack.c.bf16 %v2557_v41, %v2553_v49 }
 0x5e3   :  { %2641 = vmatprep.subr.bf16.mxu1 %v2599_v26 }
 0x5e4   :  { %2642 = vmatpush1.bf16.msra.mxu1 %v2598_v36 }
 0x5e5   :  { %v2561_v31 = vpop.f32.mrb[188].mxu0 }
 0x5e6   :  { %v2563_v3 = vpop.f32.mrb[189].mxu0 }
 0x5e7   :  { %v2565_v47 = vpop.f32.mrb[190].mxu0 }
 0x5e8   :  { %v2600_v29 = vpack.c.bf16 %v2565_v47, %v2561_v31  ;;  %v2567_v34 = vpop.f32.mrb[191].mxu0 }
 0x5e9   :  { %v2601_v2 = vpack.c.bf16 %v2567_v34, %v2563_v3 }
 0x5eb   :  { %2643 = vmatprep.subr.bf16.mxu1 %v2601_v2 }
 0x5ec   :  { %2644 = vmatpush1.bf16.msra.mxu1 %v2600_v29 }
 0x5ed   :  { %4462 = vmatprep.subr.bf16.mxu1 %v5097_v44 }
 0x5ef   :  { %2646 = vmatmul.mubr.bf16.vlgmr.msra.gmra.mrb[160].mxu1 %v6174_v42 }
 0x5f0   :  { %2655 = vmatprep.mubr.bf16.mxu1 %v6180_v48  ;;  %4463 = vmatpush3.bf16.msra.mxu1 %v5098_v45 }
 0x5f1   :  { %4464 = vmatprep.subr.bf16.mxu1 %v5099_v39 }
 0x5f4   :  { %4465 = vmatpush3.bf16.msra.mxu1 %v5100_v51 }
 0x5f5   :  { %4466 = vmatprep.subr.bf16.mxu1 %v5101_v55 }
 0x5f7   :  { %2656 = vmatmul.mubr.bf16.gmra.mrb[164].mxu1 %v6198_v60 }
 0x5f8   :  { %2665 = vmatprep.mubr.bf16.mxu1 %v6204_v62  ;;  %4467 = vmatpush3.bf16.msra.mxu1 %v5102_v56 }
 0x5f9   :  { %4468 = vmatprep.subr.bf16.mxu1 %v5103_v59 }
 0x5fc   :  { %4469 = vmatpush3.bf16.msra.mxu1 %v5104_v22 }
 0x5fd   :  { %4470 = vmatprep.subr.bf16.mxu1 %v5105_v43 }
 0x5ff   :  { %2666 = vmatmul.mubr.bf16.gmra.mrb[168].mxu1 %v6222_v10 }
 0x600   :  { %2675 = vmatprep.mubr.bf16.mxu1 %v6228_v12  ;;  %4471 = vmatpush3.bf16.msra.mxu1 %v5106_v7 }
 0x601   :  { %4472 = vmatprep.subr.bf16.mxu1 %v5107_v9 }
 0x604   :  { %4473 = vmatpush3.bf16.msra.mxu1 %v5108_v37 }
 0x605   :  { %4474 = vmatprep.subr.bf16.mxu1 %v5109_v13 }
 0x607   :  { %2676 = vmatmul.mubr.bf16.gmra.mrb[172].mxu1 %v6234_v14 }
 0x608   :  { %2685 = vmatprep.mubr.bf16.mxu1 %v6240_v15  ;;  %4475 = vmatpush3.bf16.msra.mxu1 %v5110_v18 }
 0x609   :  { %4476 = vmatprep.subr.bf16.mxu1 %v5111_v54 }
 0x60c   :  { %4477 = vmatpush3.bf16.msra.mxu1 %v5112_v30 }
 0x60f   :  { %2686 = vmatmul.mubr.bf16.gmra.mrb[176].mxu1 %v6246_v16 }
 0x610   :  { %2695 = vmatprep.mubr.bf16.mxu1 %v6252_v21 }
 0x617   :  { %2696 = vmatmul.mubr.bf16.gmra.mrb[180].mxu1 %v6258_v25 }
 0x618   :  { %2705 = vmatprep.mubr.bf16.mxu1 %v6264_v20 }
 0x61f   :  { %2706 = vmatmul.mubr.bf16.gmra.mrb[184].mxu1 %v6270_v63 }
 0x620   :  { %2715 = vmatprep.mubr.bf16.mxu1 %v6276_v32 }
 0x627   :  { %2716 = vmatmul.mubr.bf16.gmra.mrb[188].mxu1 %v6282_v4 }
 0x628   :  { %2725 = vmatprep.mubr.bf16.mxu1 %v6288_v5 }
 0x62f   :  { %2726 = vmatmul.mubr.bf16.gmra.mrb[192].mxu1 %v6294_v23 }
 0x630   :  { %2735 = vmatprep.mubr.bf16.mxu1 %v6300_v24 }
 0x637   :  { %2736 = vmatmul.mubr.bf16.gmra.mrb[196].mxu1 %v6306_v27 }
 0x638   :  { %2745 = vmatprep.mubr.bf16.mxu1 %v6312_v6 }
 0x63f   :  { %2746 = vmatmul.mubr.bf16.gmra.mrb[200].mxu1 %v6318_v46 }
 0x640   :  { %2755 = vmatprep.mubr.bf16.mxu1 %v6324_v35 }
 0x647   :  { %2756 = vmatmul.mubr.bf16.gmra.mrb[204].mxu1 %v6339_v52 }
 0x648   :  { %2765 = vmatprep.mubr.bf16.mxu1 %v6348_v28 }
 0x64f   :  { %2766 = vmatmul.mubr.bf16.gmra.mrb[208].mxu1 %v6357_v0 }
 0x650   :  { %2775 = vmatprep.mubr.bf16.mxu1 %v6363_v17 }
 0x657   :  { %2776 = vmatmul.mubr.bf16.gmra.mrb[212].mxu1 %v6369_v50 }
 0x658   :  { %2785 = vmatprep.mubr.bf16.mxu1 %v6375_v57 }
 0x65f   :  { %2786 = vmatmul.mubr.bf16.gmra.mrb[216].mxu1 %v6381_v38 }
 0x660   :  { %2795 = vmatprep.mubr.bf16.mxu1 %v6387_v40 }
 0x667   :  { %2796 = vmatmul.mubr.bf16.gmra.mrb[220].mxu1 %v6393_v11 }
 0x6c2   :  { %v2647_v49 = vpop.f32.mrb[160].mxu1 }
 0x6c3   :  { %v2648_v53 = vadd.f32 %v2647_v49, %v6401_v8  ;;  %v2649_v36 = vpop.f32.mrb[161].mxu1 }
 0x6c4   :  { %v2650_v41 = vadd.f32 %v2649_v36, %v6405_v1  ;;  %v2651_v26 = vpop.f32.mrb[162].mxu1 }
 0x6c5   :  { %v2652_v31 = vadd.f32 %v2651_v26, %v6401_v8  ;;  %v2653_v3 = vpop.f32.mrb[163].mxu1  ;;  %v2806_v29 = vmax.f32 %v2648_v53, 0.0 }
 0x6c6   :  { %v2654_v47 = vadd.f32 %v2653_v3, %v6405_v1  ;;  %v2807_v33 = vmax.f32 %v2650_v41, 0.0 }
 0x6c7   :  { %v2808_v34 = vmax.f32 %v2652_v31, 0.0 }
 0x6c8   :  { %v2809_v2 = vmax.f32 %v2654_v47, 0.0 }
 0x6c9   :  { %v2870_v44 = vpack.c.bf16 %v2808_v34, %v2806_v29 }
 0x6ca   :  { %v2871_v58 = vpack.c.bf16 %v2809_v2, %v2807_v33  ;;  %v2657_v61 = vpop.f32.mrb[164].mxu1 }
 0x6cb   :  { %v2658_v45 = vadd.f32 %v2657_v61, %v6401_v8  ;;  %v2659_v39 = vpop.f32.mrb[165].mxu1 }
 0x6cc   :  { %v2660_v51 = vadd.f32 %v2659_v39, %v6405_v1  ;;  %v2661_v55 = vpop.f32.mrb[166].mxu1  ;;  %3063 = vmatprep.mubr.bf16.mxu1 %v2871_v58 }
 0x6cd   :  { %v2662_v56 = vadd.f32 %v2661_v55, %v6401_v8  ;;  %v2663_v59 = vpop.f32.mrb[167].mxu1  ;;  %3064 = vmatmul.mubr.bf16.vlgmr.msra.gmra.mrb[224].mxu1 %v2870_v44  ;;  %v2810_v43 = vmax.f32 %v2658_v45, 0.0 }
 0x6ce   :  { %v2664_v22 = vadd.f32 %v2663_v59, %v6405_v1  ;;  %v2811_v9 = vmax.f32 %v2660_v51, 0.0 }
 0x6cf   :  { %v2812_v7 = vmax.f32 %v2662_v56, 0.0 }
 0x6d0   :  { %v2813_v37 = vmax.f32 %v2664_v22, 0.0 }
 0x6d1   :  { %v2872_v13 = vpack.c.bf16 %v2812_v7, %v2810_v43 }
 0x6d2   :  { %v2873_v18 = vpack.c.bf16 %v2813_v37, %v2811_v9  ;;  %v2667_v54 = vpop.f32.mrb[168].mxu1 }
 0x6d3   :  { %v2668_v30 = vadd.f32 %v2667_v54, %v6401_v8  ;;  %v2669_v19 = vpop.f32.mrb[169].mxu1 }
 0x6d4   :  { %v2670_v49 = vadd.f32 %v2669_v19, %v6405_v1  ;;  %v2671_v53 = vpop.f32.mrb[170].mxu1  ;;  %3071 = vmatprep.mubr.bf16.mxu1 %v2873_v18 }
 0x6d5   :  { %v2672_v36 = vadd.f32 %v2671_v53, %v6401_v8  ;;  %v2673_v41 = vpop.f32.mrb[171].mxu1  ;;  %3072 = vmatmul.mubr.bf16.gmra.mrb[228].mxu1 %v2872_v13  ;;  %v2814_v31 = vmax.f32 %v2668_v30, 0.0 }
 0x6d6   :  { %v2674_v26 = vadd.f32 %v2673_v41, %v6405_v1  ;;  %v2815_v47 = vmax.f32 %v2670_v49, 0.0 }
 0x6d7   :  { %v2816_v3 = vmax.f32 %v2672_v36, 0.0 }
 0x6d8   :  { %v2817_v29 = vmax.f32 %v2674_v26, 0.0 }
 0x6d9   :  { %v2874_v34 = vpack.c.bf16 %v2816_v3, %v2814_v31 }
 0x6da   :  { %v2875_v33 = vpack.c.bf16 %v2817_v29, %v2815_v47  ;;  %v2677_v2 = vpop.f32.mrb[172].mxu1 }
 0x6db   :  { %v2678_v44 = vadd.f32 %v2677_v2, %v6401_v8  ;;  %v2679_v58 = vpop.f32.mrb[173].mxu1 }
 0x6dc   :  { %v2680_v61 = vadd.f32 %v2679_v58, %v6405_v1  ;;  %v2681_v45 = vpop.f32.mrb[174].mxu1  ;;  %3079 = vmatprep.mubr.bf16.mxu1 %v2875_v33 }
 0x6dd   :  { %v2682_v39 = vadd.f32 %v2681_v45, %v6401_v8  ;;  %v2683_v51 = vpop.f32.mrb[175].mxu1  ;;  %3080 = vmatmul.mubr.bf16.gmra.mrb[232].mxu1 %v2874_v34  ;;  %v2818_v56 = vmax.f32 %v2678_v44, 0.0 }
 0x6de   :  { %v2684_v55 = vadd.f32 %v2683_v51, %v6405_v1  ;;  %v2819_v22 = vmax.f32 %v2680_v61, 0.0 }
 0x6df   :  { %v2820_v59 = vmax.f32 %v2682_v39, 0.0 }
 0x6e0   :  { %v2821_v43 = vmax.f32 %v2684_v55, 0.0 }
 0x6e1   :  { %v2876_v7 = vpack.c.bf16 %v2820_v59, %v2818_v56 }
 0x6e2   :  { %v2877_v9 = vpack.c.bf16 %v2821_v43, %v2819_v22  ;;  %v2687_v37 = vpop.f32.mrb[176].mxu1 }
 0x6e3   :  { %v2688_v13 = vadd.f32 %v2687_v37, %v6401_v8  ;;  %v2689_v18 = vpop.f32.mrb[177].mxu1 }
 0x6e4   :  { %v2690_v54 = vadd.f32 %v2689_v18, %v6405_v1  ;;  %v2691_v30 = vpop.f32.mrb[178].mxu1  ;;  %3087 = vmatprep.mubr.bf16.mxu1 %v2877_v9 }
 0x6e5   :  { %v2692_v19 = vadd.f32 %v2691_v30, %v6401_v8  ;;  %v2693_v49 = vpop.f32.mrb[179].mxu1  ;;  %3088 = vmatmul.mubr.bf16.gmra.mrb[236].mxu1 %v2876_v7  ;;  %v2822_v36 = vmax.f32 %v2688_v13, 0.0 }
 0x6e6   :  { %v2694_v53 = vadd.f32 %v2693_v49, %v6405_v1  ;;  %v2823_v26 = vmax.f32 %v2690_v54, 0.0 }
 0x6e7   :  { %v2824_v41 = vmax.f32 %v2692_v19, 0.0 }
 0x6e8   :  { %v2825_v31 = vmax.f32 %v2694_v53, 0.0 }
 0x6e9   :  { %v2878_v3 = vpack.c.bf16 %v2824_v41, %v2822_v36 }
 0x6ea   :  { %v2879_v47 = vpack.c.bf16 %v2825_v31, %v2823_v26  ;;  %v2697_v29 = vpop.f32.mrb[180].mxu1 }
 0x6eb   :  { %v2698_v34 = vadd.f32 %v2697_v29, %v6401_v8  ;;  %v2699_v33 = vpop.f32.mrb[181].mxu1 }
 0x6ec   :  { %v2700_v2 = vadd.f32 %v2699_v33, %v6405_v1  ;;  %v2701_v44 = vpop.f32.mrb[182].mxu1  ;;  %3095 = vmatprep.mubr.bf16.mxu1 %v2879_v47 }
 0x6ed   :  { %v2702_v58 = vadd.f32 %v2701_v44, %v6401_v8  ;;  %v2703_v61 = vpop.f32.mrb[183].mxu1  ;;  %3096 = vmatmul.mubr.bf16.gmra.mrb[240].mxu1 %v2878_v3  ;;  %v2826_v39 = vmax.f32 %v2698_v34, 0.0 }
 0x6ee   :  { %v2704_v45 = vadd.f32 %v2703_v61, %v6405_v1  ;;  %v2827_v55 = vmax.f32 %v2700_v2, 0.0 }
 0x6ef   :  { %v2828_v51 = vmax.f32 %v2702_v58, 0.0 }
 0x6f0   :  { %v2829_v56 = vmax.f32 %v2704_v45, 0.0 }
 0x6f1   :  { %v2880_v59 = vpack.c.bf16 %v2828_v51, %v2826_v39 }
 0x6f2   :  { %v2881_v22 = vpack.c.bf16 %v2829_v56, %v2827_v55  ;;  %v2707_v43 = vpop.f32.mrb[184].mxu1 }
 0x6f3   :  { %v2708_v7 = vadd.f32 %v2707_v43, %v6401_v8  ;;  %v2709_v9 = vpop.f32.mrb[185].mxu1 }
 0x6f4   :  { %v2710_v37 = vadd.f32 %v2709_v9, %v6405_v1  ;;  %v2711_v13 = vpop.f32.mrb[186].mxu1  ;;  %3103 = vmatprep.mubr.bf16.mxu1 %v2881_v22 }
 0x6f5   :  { %v2712_v18 = vadd.f32 %v2711_v13, %v6401_v8  ;;  %v2713_v54 = vpop.f32.mrb[187].mxu1  ;;  %3104 = vmatmul.mubr.bf16.gmra.mrb[244].mxu1 %v2880_v59  ;;  %v2830_v19 = vmax.f32 %v2708_v7, 0.0 }
 0x6f6   :  { %v2714_v30 = vadd.f32 %v2713_v54, %v6405_v1  ;;  %v2831_v53 = vmax.f32 %v2710_v37, 0.0 }
 0x6f7   :  { %v2832_v49 = vmax.f32 %v2712_v18, 0.0 }
 0x6f8   :  { %v2833_v36 = vmax.f32 %v2714_v30, 0.0 }
 0x6f9   :  { %v2882_v41 = vpack.c.bf16 %v2832_v49, %v2830_v19 }
 0x6fa   :  { %v2883_v26 = vpack.c.bf16 %v2833_v36, %v2831_v53  ;;  %v2717_v31 = vpop.f32.mrb[188].mxu1 }
 0x6fb   :  { %v2718_v3 = vadd.f32 %v2717_v31, %v6401_v8  ;;  %v2719_v47 = vpop.f32.mrb[189].mxu1 }
 0x6fc   :  { %v2720_v29 = vadd.f32 %v2719_v47, %v6405_v1  ;;  %v2721_v34 = vpop.f32.mrb[190].mxu1  ;;  %3111 = vmatprep.mubr.bf16.mxu1 %v2883_v26 }
 0x6fd   :  { %v2722_v33 = vadd.f32 %v2721_v34, %v6401_v8  ;;  %v2723_v2 = vpop.f32.mrb[191].mxu1  ;;  %3112 = vmatmul.mubr.bf16.gmra.mrb[248].mxu1 %v2882_v41  ;;  %v2834_v58 = vmax.f32 %v2718_v3, 0.0 }
 0x6fe   :  { %v2724_v44 = vadd.f32 %v2723_v2, %v6405_v1  ;;  %v2835_v45 = vmax.f32 %v2720_v29, 0.0 }
 0x6ff   :  { %v2836_v61 = vmax.f32 %v2722_v33, 0.0 }
 0x700   :  { %v2837_v39 = vmax.f32 %v2724_v44, 0.0 }
 0x701   :  { %v2884_v51 = vpack.c.bf16 %v2836_v61, %v2834_v58 }
 0x702   :  { %v2885_v55 = vpack.c.bf16 %v2837_v39, %v2835_v45  ;;  %v2727_v56 = vpop.f32.mrb[192].mxu1 }
 0x703   :  { %v2728_v59 = vadd.f32 %v2727_v56, %v6401_v8  ;;  %v2729_v22 = vpop.f32.mrb[193].mxu1 }
 0x704   :  { %v2730_v43 = vadd.f32 %v2729_v22, %v6405_v1  ;;  %v2731_v7 = vpop.f32.mrb[194].mxu1  ;;  %3119 = vmatprep.mubr.bf16.mxu1 %v2885_v55 }
 0x705   :  { %v2732_v9 = vadd.f32 %v2731_v7, %v6401_v8  ;;  %v2733_v37 = vpop.f32.mrb[195].mxu1  ;;  %3120 = vmatmul.mubr.bf16.gmra.mrb[252].mxu1 %v2884_v51  ;;  %v2838_v18 = vmax.f32 %v2728_v59, 0.0 }
 0x706   :  { %v2734_v13 = vadd.f32 %v2733_v37, %v6405_v1  ;;  %v2839_v30 = vmax.f32 %v2730_v43, 0.0 }
 0x707   :  { %v2840_v54 = vmax.f32 %v2732_v9, 0.0 }
 0x708   :  { %v2841_v19 = vmax.f32 %v2734_v13, 0.0 }
 0x709   :  { %v2886_v49 = vpack.c.bf16 %v2840_v54, %v2838_v18 }
 0x70a   :  { %v2887_v53 = vpack.c.bf16 %v2841_v19, %v2839_v30  ;;  %v2737_v36 = vpop.f32.mrb[196].mxu1 }
 0x70b   :  { %v2738_v41 = vadd.f32 %v2737_v36, %v6401_v8  ;;  %v2739_v26 = vpop.f32.mrb[197].mxu1 }
 0x70c   :  { %v2740_v31 = vadd.f32 %v2739_v26, %v6405_v1  ;;  %v2741_v3 = vpop.f32.mrb[198].mxu1  ;;  %3127 = vmatprep.mubr.bf16.mxu1 %v2887_v53 }
 0x70d   :  { %v2742_v47 = vadd.f32 %v2741_v3, %v6401_v8  ;;  %v2743_v29 = vpop.f32.mrb[199].mxu1  ;;  %3128 = vmatmul.mubr.bf16.gmra.mrb[0].mxu1 %v2886_v49  ;;  %v2842_v33 = vmax.f32 %v2738_v41, 0.0 }
 0x70e   :  { %v2744_v34 = vadd.f32 %v2743_v29, %v6405_v1  ;;  %v2843_v44 = vmax.f32 %v2740_v31, 0.0 }
 0x70f   :  { %v2844_v2 = vmax.f32 %v2742_v47, 0.0 }
 0x710   :  { %v2845_v58 = vmax.f32 %v2744_v34, 0.0 }
 0x711   :  { %v2888_v61 = vpack.c.bf16 %v2844_v2, %v2842_v33 }
 0x712   :  { %v2889_v45 = vpack.c.bf16 %v2845_v58, %v2843_v44  ;;  %v2747_v39 = vpop.f32.mrb[200].mxu1 }
 0x713   :  { %v2748_v51 = vadd.f32 %v2747_v39, %v6401_v8  ;;  %v2749_v55 = vpop.f32.mrb[201].mxu1 }
 0x714   :  { %v2750_v56 = vadd.f32 %v2749_v55, %v6405_v1  ;;  %v2751_v59 = vpop.f32.mrb[202].mxu1  ;;  %3135 = vmatprep.mubr.bf16.mxu1 %v2889_v45 }
 0x715   :  { %v2752_v22 = vadd.f32 %v2751_v59, %v6401_v8  ;;  %v2753_v43 = vpop.f32.mrb[203].mxu1  ;;  %3136 = vmatmul.mubr.bf16.gmra.mrb[4].mxu1 %v2888_v61  ;;  %v2846_v9 = vmax.f32 %v2748_v51, 0.0 }
 0x716   :  { %v2754_v7 = vadd.f32 %v2753_v43, %v6405_v1  ;;  %v2847_v13 = vmax.f32 %v2750_v56, 0.0 }
 0x717   :  { %v2848_v37 = vmax.f32 %v2752_v22, 0.0 }
 0x718   :  { %v2849_v18 = vmax.f32 %v2754_v7, 0.0 }
 0x719   :  { %v2890_v54 = vpack.c.bf16 %v2848_v37, %v2846_v9 }
 0x71a   :  { %v2891_v30 = vpack.c.bf16 %v2849_v18, %v2847_v13  ;;  %v2757_v19 = vpop.f32.mrb[204].mxu1 }
 0x71b   :  { %v2758_v49 = vadd.f32 %v2757_v19, %v6401_v8  ;;  %v2759_v53 = vpop.f32.mrb[205].mxu1 }
 0x71c   :  { %v2760_v36 = vadd.f32 %v2759_v53, %v6405_v1  ;;  %v2761_v41 = vpop.f32.mrb[206].mxu1  ;;  %3143 = vmatprep.mubr.bf16.mxu1 %v2891_v30 }
 0x71d   :  { %v2762_v26 = vadd.f32 %v2761_v41, %v6401_v8  ;;  %v2763_v31 = vpop.f32.mrb[207].mxu1  ;;  %3144 = vmatmul.mubr.bf16.gmra.mrb[8].mxu1 %v2890_v54  ;;  %v2850_v47 = vmax.f32 %v2758_v49, 0.0 }
 0x71e   :  { %v2764_v3 = vadd.f32 %v2763_v31, %v6405_v1  ;;  %v2851_v34 = vmax.f32 %v2760_v36, 0.0 }
 0x71f   :  { %v2852_v29 = vmax.f32 %v2762_v26, 0.0 }
 0x720   :  { %v2853_v33 = vmax.f32 %v2764_v3, 0.0 }
 0x721   :  { %v2892_v2 = vpack.c.bf16 %v2852_v29, %v2850_v47 }
 0x722   :  { %v2893_v44 = vpack.c.bf16 %v2853_v33, %v2851_v34  ;;  %v2767_v58 = vpop.f32.mrb[208].mxu1 }
 0x723   :  { %v2768_v61 = vadd.f32 %v2767_v58, %v6401_v8  ;;  %v2769_v45 = vpop.f32.mrb[209].mxu1 }
 0x724   :  { %v2770_v39 = vadd.f32 %v2769_v45, %v6405_v1  ;;  %v2771_v51 = vpop.f32.mrb[210].mxu1  ;;  %3151 = vmatprep.mubr.bf16.mxu1 %v2893_v44 }
 0x725   :  { %v2772_v55 = vadd.f32 %v2771_v51, %v6401_v8  ;;  %v2773_v56 = vpop.f32.mrb[211].mxu1  ;;  %3152 = vmatmul.mubr.bf16.gmra.mrb[12].mxu1 %v2892_v2  ;;  %v2854_v22 = vmax.f32 %v2768_v61, 0.0 }
 0x726   :  { %v2774_v59 = vadd.f32 %v2773_v56, %v6405_v1  ;;  %v2855_v7 = vmax.f32 %v2770_v39, 0.0 }
 0x727   :  { %v2856_v43 = vmax.f32 %v2772_v55, 0.0 }
 0x728   :  { %v2857_v9 = vmax.f32 %v2774_v59, 0.0 }
 0x729   :  { %v2894_v37 = vpack.c.bf16 %v2856_v43, %v2854_v22 }
 0x72a   :  { %v2895_v13 = vpack.c.bf16 %v2857_v9, %v2855_v7  ;;  %v2777_v18 = vpop.f32.mrb[212].mxu1 }
 0x72b   :  { %v2778_v54 = vadd.f32 %v2777_v18, %v6401_v8  ;;  %v2779_v30 = vpop.f32.mrb[213].mxu1 }
 0x72c   :  { %v2780_v19 = vadd.f32 %v2779_v30, %v6405_v1  ;;  %v2781_v49 = vpop.f32.mrb[214].mxu1  ;;  %3159 = vmatprep.mubr.bf16.mxu1 %v2895_v13 }
 0x72d   :  { %v2782_v53 = vadd.f32 %v2781_v49, %v6401_v8  ;;  %v2783_v36 = vpop.f32.mrb[215].mxu1  ;;  %3160 = vmatmul.mubr.bf16.gmra.mrb[16].mxu1 %v2894_v37  ;;  %v2858_v26 = vmax.f32 %v2778_v54, 0.0 }
 0x72e   :  { %v2784_v41 = vadd.f32 %v2783_v36, %v6405_v1  ;;  %v2859_v3 = vmax.f32 %v2780_v19, 0.0 }
 0x72f   :  { %v2860_v31 = vmax.f32 %v2782_v53, 0.0 }
 0x730   :  { %v2861_v47 = vmax.f32 %v2784_v41, 0.0 }
 0x731   :  { %v2896_v29 = vpack.c.bf16 %v2860_v31, %v2858_v26 }
 0x732   :  { %v2897_v34 = vpack.c.bf16 %v2861_v47, %v2859_v3  ;;  %v2787_v33 = vpop.f32.mrb[216].mxu1 }
 0x733   :  { %v2788_v2 = vadd.f32 %v2787_v33, %v6401_v8  ;;  %v2789_v44 = vpop.f32.mrb[217].mxu1 }
 0x734   :  { %v2790_v58 = vadd.f32 %v2789_v44, %v6405_v1  ;;  %v2791_v61 = vpop.f32.mrb[218].mxu1  ;;  %3167 = vmatprep.mubr.bf16.mxu1 %v2897_v34 }
 0x735   :  { %v2792_v45 = vadd.f32 %v2791_v61, %v6401_v8  ;;  %v2793_v39 = vpop.f32.mrb[219].mxu1  ;;  %3168 = vmatmul.mubr.bf16.gmra.mrb[20].mxu1 %v2896_v29  ;;  %v2862_v55 = vmax.f32 %v2788_v2, 0.0 }
 0x736   :  { %v2794_v51 = vadd.f32 %v2793_v39, %v6405_v1  ;;  %v2863_v59 = vmax.f32 %v2790_v58, 0.0 }
 0x737   :  { %v2864_v56 = vmax.f32 %v2792_v45, 0.0 }
 0x738   :  { %v2865_v22 = vmax.f32 %v2794_v51, 0.0 }
 0x739   :  { %v2898_v43 = vpack.c.bf16 %v2864_v56, %v2862_v55 }
 0x73a   :  { %v2899_v7 = vpack.c.bf16 %v2865_v22, %v2863_v59  ;;  %v2797_v9 = vpop.f32.mrb[220].mxu1 }
 0x73b   :  { %v2798_v37 = vadd.f32 %v2797_v9, %v6401_v8  ;;  %v2799_v13 = vpop.f32.mrb[221].mxu1 }
 0x73c   :  { %v2800_v18 = vadd.f32 %v2799_v13, %v6405_v1  ;;  %v2801_v54 = vpop.f32.mrb[222].mxu1  ;;  %3175 = vmatprep.mubr.bf16.mxu1 %v2899_v7 }
 0x73d   :  { %v2802_v30 = vadd.f32 %v2801_v54, %v6401_v8  ;;  %v2803_v19 = vpop.f32.mrb[223].mxu1  ;;  %3176 = vmatmul.mubr.bf16.gmra.mrb[24].mxu1 %v2898_v43  ;;  %v2866_v53 = vmax.f32 %v2798_v37, 0.0 }
 0x73e   :  { %v2804_v49 = vadd.f32 %v2803_v19, %v6405_v1  ;;  %v2867_v41 = vmax.f32 %v2800_v18, 0.0 }
 0x73f   :  { %v2868_v36 = vmax.f32 %v2802_v30, 0.0 }
 0x740   :  { %v2869_v26 = vmax.f32 %v2804_v49, 0.0 }
 0x741   :  { %v2900_v31 = vpack.c.bf16 %v2868_v36, %v2866_v53 }
 0x742   :  { %v2901_v3 = vpack.c.bf16 %v2869_v26, %v2867_v41 }
 0x744   :  { %3183 = vmatprep.mubr.bf16.mxu1 %v2901_v3 }
 0x745   :  { %3184 = vmatmul.mubr.bf16.gmra.mrb[28].mxu1 %v2900_v31 }
 0x7a0   :  { %v4478_v47 = vpop.f32.mrb[224].mxu1 }
 0x7a1   :  { %v4479_v29 = vpop.f32.mrb[225].mxu1 }
 0x7a2   :  { %v6471_v34 = vadd.f32 %v4479_v29, %v4478_v47  ;;  %v4481_v33 = vpop.f32.mrb[226].mxu1 }
 0x7a3   :  { %v4482_v2 = vpop.f32.mrb[227].mxu1 }
 0x7a4   :  { %v4483_v44 = vadd.f32 %v4482_v2, %v4481_v33 }
 0x7a6   :  { %v3192_v8 = vpack.c.bf16 %v4483_v44, %v6471_v34 }
 0x7a8   :  { %v4484_v58 = vpop.f32.mrb[228].mxu1 }
 0x7a9   :  { %v4485_v61 = vpop.f32.mrb[229].mxu1 }
 0x7aa   :  { %v6474_v1 = vadd.f32 %v4485_v61, %v4484_v58  ;;  %v4487_v45 = vpop.f32.mrb[230].mxu1 }
 0x7ab   :  { %v4488_v39 = vpop.f32.mrb[231].mxu1 }
 0x7ac   :  { %v6476_v51 = vadd.f32 %v4488_v39, %v4487_v45 }
 0x7ae   :  { %v3193_v55 = vpack.c.bf16 %v6476_v51, %v6474_v1 }
 0x7b0   :  { %v4490_v56 = vpop.f32.mrb[232].mxu1 }
 0x7b1   :  { %v4491_v59 = vpop.f32.mrb[233].mxu1 }
 0x7b2   :  { %v6480_v22 = vadd.f32 %v4491_v59, %v4490_v56  ;;  %v4493_v43 = vpop.f32.mrb[234].mxu1 }
 0x7b3   :  { %v4494_v7 = vpop.f32.mrb[235].mxu1 }
 0x7b4   :  { %v6482_v9 = vadd.f32 %v4494_v7, %v4493_v43 }
 0x7b8   :  { %v4496_v13 = vpop.f32.mrb[236].mxu1 }
 0x7b9   :  { %v4497_v18 = vpop.f32.mrb[237].mxu1 }
 0x7ba   :  { %v6486_v54 = vadd.f32 %v4497_v18, %v4496_v13  ;;  %v4499_v30 = vpop.f32.mrb[238].mxu1 }
 0x7bb   :  { %v4500_v19 = vpop.f32.mrb[239].mxu1 }
 0x7bc   :  { %v6488_v49 = vadd.f32 %v4500_v19, %v4499_v30 }
 0x7c0   :  { %v4502_v36 = vpop.f32.mrb[240].mxu1 }
 0x7c1   :  { %v4503_v41 = vpop.f32.mrb[241].mxu1 }
 0x7c2   :  { %v6492_v26 = vadd.f32 %v4503_v41, %v4502_v36  ;;  %v4505_v31 = vpop.f32.mrb[242].mxu1 }
 0x7c3   :  { %v4506_v3 = vpop.f32.mrb[243].mxu1 }
 0x7c4   :  { %v6494_v47 = vadd.f32 %v4506_v3, %v4505_v31 }
 0x7c8   :  { %v4508_v34 = vpop.f32.mrb[244].mxu1 }
 0x7c9   :  { %v4509_v33 = vpop.f32.mrb[245].mxu1 }
 0x7ca   :  { %v6498_v2 = vadd.f32 %v4509_v33, %v4508_v34  ;;  %v4511_v44 = vpop.f32.mrb[246].mxu1 }
 0x7cb   :  { %v4512_v58 = vpop.f32.mrb[247].mxu1 }
 0x7cc   :  { %v6500_v61 = vadd.f32 %v4512_v58, %v4511_v44 }
 0x7d0   :  { %v4514_v45 = vpop.f32.mrb[248].mxu1 }
 0x7d1   :  { %v4515_v39 = vpop.f32.mrb[249].mxu1 }
 0x7d2   :  { %v6504_v51 = vadd.f32 %v4515_v39, %v4514_v45  ;;  %v4517_v56 = vpop.f32.mrb[250].mxu1 }
 0x7d3   :  { %v4518_v59 = vpop.f32.mrb[251].mxu1 }
 0x7d4   :  { %v6506_v43 = vadd.f32 %v4518_v59, %v4517_v56 }
 0x7d8   :  { %v4520_v13 = vpop.f32.mrb[252].mxu1 }
 0x7d9   :  { %v4521_v18 = vpop.f32.mrb[253].mxu1 }
 0x7da   :  { %v6510_v30 = vadd.f32 %v4521_v18, %v4520_v13  ;;  %v4523_v19 = vpop.f32.mrb[254].mxu1 }
 0x7db   :  { %v4524_v36 = vpop.f32.mrb[255].mxu1 }
 0x7dc   :  { %v6512_v41 = vadd.f32 %v4524_v36, %v4523_v19 }
 0x7e0   :  { %v4526_v3 = vpop.f32.mrb[0].mxu1 }
 0x7e1   :  { %v4527_v34 = vpop.f32.mrb[1].mxu1 }
 0x7e2   :  { %v4528_v33 = vadd.f32 %v4527_v34, %v4526_v3  ;;  %v4529_v44 = vpop.f32.mrb[2].mxu1 }
 0x7e3   :  { %v4530_v58 = vpop.f32.mrb[3].mxu1 }
 0x7e4   :  { %v4531_v45 = vadd.f32 %v4530_v58, %v4529_v44 }
 0x7e6   :  { %v3200_v39 = vpack.c.bf16 %v4531_v45, %v4528_v33 }
 0x7e8   :  { %v4532_v56 = vpop.f32.mrb[4].mxu1  ;;  %4574 = vmatprep.subr.bf16.mxu0 %v3200_v39 }
 0x7e9   :  { %v4533_v59 = vpop.f32.mrb[5].mxu1  ;;  %4575 = vmatpush3.bf16.msra.mxu0 %v3192_v8  ;;  %v6778_v8 = vpack.c.bf16 %v6482_v9, %v6480_v22  ;;  %v6780_v9 = vpack.c.bf16 %v6494_v47, %v6492_v26  ;;  %v6782_v47 = vpack.c.bf16 %v6506_v43, %v6504_v51 }
 0x7ea   :  { %v4534_v13 = vadd.f32 %v4533_v59, %v4532_v56  ;;  %v4535_v18 = vpop.f32.mrb[6].mxu1 }
 0x7eb   :  { %v4536_v7 = vpop.f32.mrb[7].mxu1 }
 0x7ec   :  { %v4537_v1 = vadd.f32 %v4536_v7, %v4535_v18 }
 0x7ee   :  { %v3201_v19 = vpack.c.bf16 %v4537_v1, %v4534_v13 }
 0x7f0   :  { %v4538_v36 = vpop.f32.mrb[8].mxu1  ;;  %4576 = vmatprep.subr.bf16.mxu0 %v3201_v19 }
 0x7f1   :  { %v4539_v29 = vpop.f32.mrb[9].mxu1  ;;  %4577 = vmatpush3.bf16.msra.mxu0 %v3193_v55 }
 0x7f2   :  { %v4540_v31 = vadd.f32 %v4539_v29, %v4538_v36  ;;  %v4541_v53 = vpop.f32.mrb[10].mxu1  ;;  %v6779_v29 = vpack.c.bf16 %v6488_v49, %v6486_v54  ;;  %v6781_v49 = vpack.c.bf16 %v6500_v61, %v6498_v2  ;;  %v6783_v2 = vpack.c.bf16 %v6512_v41, %v6510_v30 }
 0x7f3   :  { %v4542_v3 = vpop.f32.mrb[11].mxu1 }
 0x7f4   :  { %v4543_v34 = vadd.f32 %v4542_v3, %v4541_v53 }
 0x7f6   :  { %v3202_v37 = vpack.c.bf16 %v4543_v34, %v4540_v31 }
 0x7f8   :  { %v4544_v44 = vpop.f32.mrb[12].mxu1  ;;  %4578 = vmatprep.subr.bf16.mxu0 %v3202_v37 }
 0x7f9   :  { %v4545_v33 = vpop.f32.mrb[13].mxu1  ;;  %4579 = vmatpush3.bf16.msra.mxu0 %v6778_v8 }
 0x7fa   :  { %v4546_v58 = vadd.f32 %v4545_v33, %v4544_v44  ;;  %v4547_v45 = vpop.f32.mrb[14].mxu1 }
 0x7fb   :  { %v4548_v7 = vpop.f32.mrb[15].mxu1 }
 0x7fc   :  { %v4549_v1 = vadd.f32 %v4548_v7, %v4547_v45 }
 0x7fe   :  { %v3203_v39 = vpack.c.bf16 %v4549_v1, %v4546_v58 }
 0x800   :  { %v4550_v56 = vpop.f32.mrb[16].mxu1  ;;  %4580 = vmatprep.subr.bf16.mxu0 %v3203_v39 }
 0x801   :  { %v4551_v55 = vpop.f32.mrb[17].mxu1  ;;  %4581 = vmatpush3.bf16.msra.mxu0 %v6779_v29 }
 0x802   :  { %v4552_v53 = vadd.f32 %v4551_v55, %v4550_v56  ;;  %v4553_v31 = vpop.f32.mrb[18].mxu1 }
 0x803   :  { %v4554_v37 = vpop.f32.mrb[19].mxu1 }
 0x804   :  { %v4555_v59 = vadd.f32 %v4554_v37, %v4553_v31 }
 0x806   :  { %v3204_v13 = vpack.c.bf16 %v4555_v59, %v4552_v53 }
 0x808   :  { %v4556_v18 = vpop.f32.mrb[20].mxu1  ;;  %4582 = vmatprep.subr.bf16.mxu0 %v3204_v13 }
 0x809   :  { %v4557_v22 = vpop.f32.mrb[21].mxu1  ;;  %4583 = vmatpush3.bf16.msra.mxu0 %v6780_v9 }
 0x80a   :  { %v4558_v19 = vadd.f32 %v4557_v22, %v4556_v18  ;;  %v4559_v36 = vpop.f32.mrb[22].mxu1 }
 0x80b   :  { %v4560_v3 = vpop.f32.mrb[23].mxu1 }
 0x80c   :  { %v4561_v34 = vadd.f32 %v4560_v3, %v4559_v36 }
 0x80e   :  { %v3205_v44 = vpack.c.bf16 %v4561_v34, %v4558_v19 }
 0x810   :  { %v4562_v33 = vpop.f32.mrb[24].mxu1  ;;  %4584 = vmatprep.subr.bf16.mxu0 %v3205_v44 }
 0x811   :  { %v4563_v54 = vpop.f32.mrb[25].mxu1  ;;  %4585 = vmatpush3.bf16.msra.mxu0 %v6781_v49 }
 0x812   :  { %v4564_v8 = vadd.f32 %v4563_v54, %v4562_v33  ;;  %v4565_v58 = vpop.f32.mrb[26].mxu1 }
 0x813   :  { %v4566_v45 = vpop.f32.mrb[27].mxu1 }
 0x814   :  { %v4567_v7 = vadd.f32 %v4566_v45, %v4565_v58 }
 0x816   :  { %v3206_v1 = vpack.c.bf16 %v4567_v7, %v4564_v8 }
 0x818   :  { %v4568_v39 = vpop.f32.mrb[28].mxu1  ;;  %4586 = vmatprep.subr.bf16.mxu0 %v3206_v1 }
 0x819   :  { %v4569_v26 = vpop.f32.mrb[29].mxu1  ;;  %4587 = vmatpush3.bf16.msra.mxu0 %v6782_v47 }
 0x81a   :  { %v4570_v56 = vadd.f32 %v4569_v26, %v4568_v39  ;;  %v4571_v55 = vpop.f32.mrb[30].mxu1 }
 0x81b   :  { %v4572_v29 = vpop.f32.mrb[31].mxu1 }
 0x81c   :  { %v4573_v53 = vadd.f32 %v4572_v29, %v4571_v55 }
 0x81e   :  { %v3207_v31 = vpack.c.bf16 %v4573_v53, %v4570_v56 }
 0x820   :  { %4588 = vmatprep.subr.bf16.mxu0 %v3207_v31 }
 0x821   :  { %4589 = vmatpush3.bf16.msra.mxu0 %v6783_v2 }
 0x824   :  { %3247 = vmatmul.mubr.bf16.vlgmr.msra.gmra.mrb[192].mxu0 %v6174_v42 }
 0x825   :  { %3254 = vmatprep.mubr.bf16.mxu0 %v6180_v48  ;;  %v6568_v48 = vld [vmem:[%s6767_s10] ss:$0 sm:$0xff] }
 0x82c   :  { %3255 = vmatmul.mubr.bf16.gmra.mrb[196].mxu0 %v6198_v60 }
 0x82d   :  { %3262 = vmatprep.mubr.bf16.mxu0 %v6204_v62 }
 0x834   :  { %3263 = vmatmul.mubr.bf16.gmra.mrb[200].mxu0 %v6222_v10 }
 0x835   :  { %3270 = vmatprep.mubr.bf16.mxu0 %v6228_v12 }
 0x83c   :  { %3271 = vmatmul.mubr.bf16.gmra.mrb[204].mxu0 %v6234_v14 }
 0x83d   :  { %3278 = vmatprep.mubr.bf16.mxu0 %v6240_v15 }
 0x844   :  { %3279 = vmatmul.mubr.bf16.gmra.mrb[208].mxu0 %v6246_v16  ;;  %v6574_v16 = vld [vmem:[%s6768_s2] sm:$0xff] }
 0x845   :  { %3286 = vmatprep.mubr.bf16.mxu0 %v6252_v21  ;;  %v4068_v21 = vcombine.high %v6574_v16, %v6574_v16 }
 0x847   :  { %3623 = vmatprep.mubr.bf16.mxu1 %v4068_v21 }
 0x84c   :  { %3287 = vmatmul.mubr.bf16.gmra.mrb[212].mxu0 %v6258_v25 }
 0x84d   :  { %3294 = vmatprep.mubr.bf16.mxu0 %v6264_v20 }
 0x854   :  { %3295 = vmatmul.mubr.bf16.gmra.mrb[216].mxu0 %v6270_v63 }
 0x855   :  { %3302 = vmatprep.mubr.bf16.mxu0 %v6276_v32 }
 0x85c   :  { %3303 = vmatmul.mubr.bf16.gmra.mrb[220].mxu0 %v6282_v4 }
 0x85d   :  { %3310 = vmatprep.mubr.bf16.mxu0 %v6288_v5 }
 0x864   :  { %3311 = vmatmul.mubr.bf16.gmra.mrb[224].mxu0 %v6294_v23  ;;  %v5165_v23 = vmov 0.0  }
 0x865   :  { %3318 = vmatprep.mubr.bf16.mxu0 %v6300_v24  ;;  %4794 = vmatprep.subr.bf16.mxu0 %v5165_v23 }
 0x86c   :  { %3319 = vmatmul.mubr.bf16.gmra.mrb[228].mxu0 %v6306_v27 }
 0x86d   :  { %3326 = vmatprep.mubr.bf16.mxu0 %v6312_v6 }
 0x874   :  { %3327 = vmatmul.mubr.bf16.gmra.mrb[232].mxu0 %v6318_v46 }
 0x875   :  { %3334 = vmatprep.mubr.bf16.mxu0 %v6324_v35 }
 0x87c   :  { %3335 = vmatmul.mubr.bf16.gmra.mrb[236].mxu0 %v6339_v52 }
 0x87d   :  { %3342 = vmatprep.mubr.bf16.mxu0 %v6348_v28 }
 0x884   :  { %3343 = vmatmul.mubr.bf16.gmra.mrb[240].mxu0 %v6357_v0 }
 0x885   :  { %3350 = vmatprep.mubr.bf16.mxu0 %v6363_v17 }
 0x88c   :  { %3351 = vmatmul.mubr.bf16.gmra.mrb[244].mxu0 %v6369_v50 }
 0x88d   :  { %3358 = vmatprep.mubr.bf16.mxu0 %v6375_v57 }
 0x894   :  { %3359 = vmatmul.mubr.bf16.gmra.mrb[248].mxu0 %v6381_v38 }
 0x895   :  { %3366 = vmatprep.mubr.bf16.mxu0 %v6387_v40 }
 0x89c   :  { %3367 = vmatmul.mubr.bf16.gmra.mrb[252].mxu0 %v6393_v11 }
 0x89d   :  { %4810 = vmatprep.mubr.msk.bf16.mxu0 %vm5166_vm0, %v5165_v23 }
 0x8f7   :  { %v4590_v42 = vpop.f32.mrb[192].mxu0 }
 0x8f8   :  { %v4591_v60 = vpop.f32.mrb[193].mxu0 }
 0x8f9   :  { %v4592_v62 = vadd.f32 %v4591_v60, %v4590_v42  ;;  %v4593_v10 = vpop.f32.mrb[194].mxu0 }
 0x8fa   :  { %v4594_v12 = vpop.f32.mrb[195].mxu0 }
 0x8fb   :  { %v3249_v14 = vadd.f32 %v4592_v62, %v6568_v48  ;;  %v4595_v15 = vadd.f32 %v4594_v12, %v4593_v10 }
 0x8fd   :  { %v3252_v25 = vadd.f32 %v4595_v15, %v6568_v48  ;;  %v3535_v20 = vmax.f32 %v3249_v14, 0.0 }
 0x8ff   :  { %v4122_v63 = vpack.c.bf16 %v3252_v25, %v3249_v14  ;;  %v3536_v32 = vmax.f32 %v3252_v25, 0.0  ;;  %v4596_v4 = vpop.f32.mrb[196].mxu0 }
 0x900   :  { %v4597_v5 = vpop.f32.mrb[197].mxu0 }
 0x901   :  { %4123 = vst [vmem:[%s6769_s15] sm:$0xff] %v4122_v63   ;;  %v6583_v24 = vpack.c.bf16 %v3536_v32, %v3535_v20  ;;  %v4598_v27 = vadd.f32 %v4597_v5, %v4596_v4  ;;  %v4599_v6 = vpop.f32.mrb[198].mxu0 }
 0x902   :  { %v4600_v46 = vpop.f32.mrb[199].mxu0 }
 0x903   :  { %v3257_v35 = vadd.f32 %v4598_v27, %v6568_v48  ;;  %v4601_v52 = vadd.f32 %v4600_v46, %v4599_v6 }
 0x905   :  { %v3260_v28 = vadd.f32 %v4601_v52, %v6568_v48  ;;  %v3537_v0 = vmax.f32 %v3257_v35, 0.0 }
 0x907   :  { %v4127_v17 = vpack.c.bf16 %v3260_v28, %v3257_v35  ;;  %v3538_v50 = vmax.f32 %v3260_v28, 0.0  ;;  %v4602_v57 = vpop.f32.mrb[200].mxu0 }
 0x908   :  { %v4603_v38 = vpop.f32.mrb[201].mxu0 }
 0x909   :  { %4199 = vst [vmem:[%s6769_s15 + $0x8] sm:$0xff] %v4127_v17   ;;  %v6590_v40 = vpack.c.bf16 %v3538_v50, %v3537_v0  ;;  %v4604_v11 = vadd.f32 %v4603_v38, %v4602_v57  ;;  %v4605_v61 = vpop.f32.mrb[202].mxu0 }
 0x90a   :  { %v4606_v51 = vpop.f32.mrb[203].mxu0 }
 0x90b   :  { %v3265_v43 = vadd.f32 %v4604_v11, %v6568_v48  ;;  %v4607_v30 = vadd.f32 %v4606_v51, %v4605_v61 }
 0x90d   :  { %v3268_v41 = vadd.f32 %v4607_v30, %v6568_v48  ;;  %v3539_v37 = vmax.f32 %v3265_v43, 0.0 }
 0x90f   :  { %v4132_v59 = vpack.c.bf16 %v3268_v41, %v3265_v43  ;;  %v3540_v13 = vmax.f32 %v3268_v41, 0.0  ;;  %v4608_v18 = vpop.f32.mrb[204].mxu0 }
 0x910   :  { %v4609_v22 = vpop.f32.mrb[205].mxu0 }
 0x911   :  { %4200 = vst [vmem:[%s6769_s15 + $0x10] sm:$0xff] %v4132_v59   ;;  %v6597_v9 = vpack.c.bf16 %v3540_v13, %v3539_v37  ;;  %v4610_v19 = vadd.f32 %v4609_v22, %v4608_v18  ;;  %v4611_v36 = vpop.f32.mrb[206].mxu0 }
 0x912   :  { %v4612_v3 = vpop.f32.mrb[207].mxu0 }
 0x913   :  { %v3273_v34 = vadd.f32 %v4610_v19, %v6568_v48  ;;  %v4613_v44 = vadd.f32 %v4612_v3, %v4611_v36 }
 0x915   :  { %v3276_v33 = vadd.f32 %v4613_v44, %v6568_v48  ;;  %v3541_v54 = vmax.f32 %v3273_v34, 0.0 }
 0x917   :  { %v4137_v49 = vpack.c.bf16 %v3276_v33, %v3273_v34  ;;  %v3542_v8 = vmax.f32 %v3276_v33, 0.0  ;;  %v4614_v58 = vpop.f32.mrb[208].mxu0 }
 0x918   :  { %v4615_v45 = vpop.f32.mrb[209].mxu0 }
 0x919   :  { %4201 = vst [vmem:[%s6769_s15 + $0x18] sm:$0xff] %v4137_v49   ;;  %v6604_v7 = vpack.c.bf16 %v3542_v8, %v3541_v54  ;;  %v4616_v1 = vadd.f32 %v4615_v45, %v4614_v58  ;;  %v4617_v39 = vpop.f32.mrb[210].mxu0 }
 0x91a   :  { %v4618_v26 = vpop.f32.mrb[211].mxu0 }
 0x91b   :  { %v3281_v47 = vadd.f32 %v4616_v1, %v6568_v48  ;;  %v4619_v56 = vadd.f32 %v4618_v26, %v4617_v39 }
 0x91d   :  { %v3284_v55 = vadd.f32 %v4619_v56, %v6568_v48  ;;  %v3543_v29 = vmax.f32 %v3281_v47, 0.0 }
 0x91f   :  { %v4142_v53 = vpack.c.bf16 %v3284_v55, %v3281_v47  ;;  %v3544_v31 = vmax.f32 %v3284_v55, 0.0  ;;  %v4620_v2 = vpop.f32.mrb[212].mxu0 }
 0x920   :  { %v4621_v42 = vpop.f32.mrb[213].mxu0 }
 0x921   :  { %4202 = vst [vmem:[%s6769_s15 + $0x20] sm:$0xff] %v4142_v53   ;;  %v6611_v60 = vpack.c.bf16 %v3544_v31, %v3543_v29  ;;  %v4622_v62 = vadd.f32 %v4621_v42, %v4620_v2  ;;  %v4623_v10 = vpop.f32.mrb[214].mxu0 }
 0x922   :  { %v4624_v12 = vpop.f32.mrb[215].mxu0 }
 0x923   :  { %v3289_v14 = vadd.f32 %v4622_v62, %v6568_v48  ;;  %v4625_v15 = vadd.f32 %v4624_v12, %v4623_v10 }
 0x925   :  { %v3292_v21 = vadd.f32 %v4625_v15, %v6568_v48  ;;  %v3545_v25 = vmax.f32 %v3289_v14, 0.0 }
 0x927   :  { %v4147_v20 = vpack.c.bf16 %v3292_v21, %v3289_v14  ;;  %v3546_v63 = vmax.f32 %v3292_v21, 0.0  ;;  %v4626_v32 = vpop.f32.mrb[216].mxu0 }
 0x928   :  { %v4627_v4 = vpop.f32.mrb[217].mxu0 }
 0x929   :  { %4203 = vst [vmem:[%s6769_s15 + $0x28] sm:$0xff] %v4147_v20   ;;  %v6618_v5 = vpack.c.bf16 %v3546_v63, %v3545_v25  ;;  %v4628_v27 = vadd.f32 %v4627_v4, %v4626_v32  ;;  %v4629_v6 = vpop.f32.mrb[218].mxu0 }
 0x92a   :  { %v4630_v46 = vpop.f32.mrb[219].mxu0 }
 0x92b   :  { %v3297_v35 = vadd.f32 %v4628_v27, %v6568_v48  ;;  %v4631_v52 = vadd.f32 %v4630_v46, %v4629_v6 }
 0x92d   :  { %v3300_v28 = vadd.f32 %v4631_v52, %v6568_v48  ;;  %v3547_v0 = vmax.f32 %v3297_v35, 0.0 }
 0x92f   :  { %v4152_v17 = vpack.c.bf16 %v3300_v28, %v3297_v35  ;;  %v3548_v50 = vmax.f32 %v3300_v28, 0.0  ;;  %v4632_v57 = vpop.f32.mrb[220].mxu0 }
 0x930   :  { %v4633_v38 = vpop.f32.mrb[221].mxu0 }
 0x931   :  { %4204 = vst [vmem:[%s6769_s15 + $0x30] sm:$0xff] %v4152_v17   ;;  %v6625_v11 = vpack.c.bf16 %v3548_v50, %v3547_v0  ;;  %v4634_v61 = vadd.f32 %v4633_v38, %v4632_v57  ;;  %v4635_v51 = vpop.f32.mrb[222].mxu0 }
 0x932   :  { %v4636_v43 = vpop.f32.mrb[223].mxu0 }
 0x933   :  { %v3305_v30 = vadd.f32 %v4634_v61, %v6568_v48  ;;  %v4637_v41 = vadd.f32 %v4636_v43, %v4635_v51 }
 0x935   :  { %v3308_v37 = vadd.f32 %v4637_v41, %v6568_v48  ;;  %v3549_v59 = vmax.f32 %v3305_v30, 0.0 }
 0x937   :  { %v4157_v13 = vpack.c.bf16 %v3308_v37, %v3305_v30  ;;  %v3550_v18 = vmax.f32 %v3308_v37, 0.0  ;;  %v4638_v22 = vpop.f32.mrb[224].mxu0 }
 0x938   :  { %v4639_v19 = vpop.f32.mrb[225].mxu0 }
 0x939   :  { %4205 = vst [vmem:[%s6769_s15 + $0x38] sm:$0xff] %v4157_v13   ;;  %v6632_v36 = vpack.c.bf16 %v3550_v18, %v3549_v59  ;;  %v4640_v3 = vadd.f32 %v4639_v19, %v4638_v22  ;;  %v4641_v34 = vpop.f32.mrb[226].mxu0 }
 0x93a   :  { %v4642_v44 = vpop.f32.mrb[227].mxu0 }
 0x93b   :  { %v3313_v33 = vadd.f32 %v4640_v3, %v6568_v48  ;;  %v4643_v54 = vadd.f32 %v4642_v44, %v4641_v34 }
 0x93d   :  { %v3316_v49 = vadd.f32 %v4643_v54, %v6568_v48  ;;  %v3551_v8 = vmax.f32 %v3313_v33, 0.0 }
 0x93f   :  { %v4162_v58 = vpack.c.bf16 %v3316_v49, %v3313_v33  ;;  %v3552_v45 = vmax.f32 %v3316_v49, 0.0  ;;  %v4644_v1 = vpop.f32.mrb[228].mxu0 }
 0x940   :  { %v4645_v39 = vpop.f32.mrb[229].mxu0 }
 0x941   :  { %4206 = vst [vmem:[%s6769_s15 + $0x40] sm:$0xff] %v4162_v58   ;;  %v4646_v26 = vadd.f32 %v4645_v39, %v4644_v1  ;;  %v4647_v47 = vpop.f32.mrb[230].mxu0  ;;  %v3575_v56 = vpack.c.bf16 %v3552_v45, %v3551_v8 }
 0x942   :  { %v4648_v55 = vpop.f32.mrb[231].mxu0 }
 0x943   :  { %v3321_v29 = vadd.f32 %v4646_v26, %v6568_v48  ;;  %v4649_v53 = vadd.f32 %v4648_v55, %v4647_v47  ;;  %4686 = vmatprep.subr.bf16.mxu1 %v3575_v56 }
 0x944   :  { %4687 = vmatpush3.bf16.msra.mxu1 %v6583_v24 }
 0x945   :  { %v3324_v31 = vadd.f32 %v4649_v53, %v6568_v48  ;;  %v3553_v2 = vmax.f32 %v3321_v29, 0.0 }
 0x947   :  { %v4167_v42 = vpack.c.bf16 %v3324_v31, %v3321_v29  ;;  %v3554_v62 = vmax.f32 %v3324_v31, 0.0  ;;  %v4650_v10 = vpop.f32.mrb[232].mxu0 }
 0x948   :  { %v4651_v12 = vpop.f32.mrb[233].mxu0 }
 0x949   :  { %4207 = vst [vmem:[%s6769_s15 + $0x48] sm:$0xff] %v4167_v42   ;;  %v4652_v14 = vadd.f32 %v4651_v12, %v4650_v10  ;;  %v4653_v15 = vpop.f32.mrb[234].mxu0  ;;  %v3576_v21 = vpack.c.bf16 %v3554_v62, %v3553_v2 }
 0x94a   :  { %v4654_v25 = vpop.f32.mrb[235].mxu0 }
 0x94b   :  { %v3329_v20 = vadd.f32 %v4652_v14, %v6568_v48  ;;  %v4655_v63 = vadd.f32 %v4654_v25, %v4653_v15  ;;  %4688 = vmatprep.subr.bf16.mxu1 %v3576_v21 }
 0x94c   :  { %4689 = vmatpush3.bf16.msra.mxu1 %v6590_v40 }
 0x94d   :  { %v3332_v24 = vadd.f32 %v4655_v63, %v6568_v48  ;;  %v3555_v32 = vmax.f32 %v3329_v20, 0.0 }
 0x94f   :  { %v4172_v4 = vpack.c.bf16 %v3332_v24, %v3329_v20  ;;  %v3556_v27 = vmax.f32 %v3332_v24, 0.0  ;;  %v4656_v6 = vpop.f32.mrb[236].mxu0 }
 0x950   :  { %v4657_v46 = vpop.f32.mrb[237].mxu0 }
 0x951   :  { %4208 = vst [vmem:[%s6769_s15 + $0x50] sm:$0xff] %v4172_v4   ;;  %v4658_v35 = vadd.f32 %v4657_v46, %v4656_v6  ;;  %v4659_v52 = vpop.f32.mrb[238].mxu0  ;;  %v3577_v28 = vpack.c.bf16 %v3556_v27, %v3555_v32 }
 0x952   :  { %v4660_v0 = vpop.f32.mrb[239].mxu0 }
 0x953   :  { %v3337_v17 = vadd.f32 %v4658_v35, %v6568_v48  ;;  %v4661_v50 = vadd.f32 %v4660_v0, %v4659_v52  ;;  %4690 = vmatprep.subr.bf16.mxu1 %v3577_v28  ;;  %v4067_v35 = vcombine.low %v6574_v16, %v6574_v16  ;;  %v5117_v16 = vld [vmem:[%s6770_s11 + $0x10] sm:$0xff]   ;;  %v5119_v52 = vld [vmem:[%s6770_s11 + $0x20] sm:$0xff]   ;;  %v5120_v28 = vld [vmem:[%s6770_s11 + $0x28] sm:$0xff]  }
 0x954   :  { %4691 = vmatpush3.bf16.msra.mxu1 %v6597_v9  ;;  %v5121_v0 = vld [vmem:[%s6770_s11 + $0x30] sm:$0xff]  }
 0x955   :  { %v3340_v40 = vadd.f32 %v4661_v50, %v6568_v48  ;;  %v3557_v57 = vmax.f32 %v3337_v17, 0.0  ;;  %v5123_v50 = vld [vmem:[%s6771_s13] sm:$0xff]  }
 0x956   :  { %4795 = vmatpush3.bf16.msra.mxu0 %v5123_v50 }
 0x957   :  { %v4177_v38 = vpack.c.bf16 %v3340_v40, %v3337_v17  ;;  %v3558_v61 = vmax.f32 %v3340_v40, 0.0  ;;  %v4662_v51 = vpop.f32.mrb[240].mxu0  ;;  %v5122_v17 = vld [vmem:[%s6770_s11 + $0x38] sm:$0xff]   ;;  %v5124_v40 = vld [vmem:[%s6771_s13 + $0x8] sm:$0xff]   ;;  %4796 = vmatprep.subr.bf16.mxu0 %v5165_v23 }
 0x958   :  { %v4663_v43 = vpop.f32.mrb[241].mxu0 }
 0x959   :  { %4209 = vst [vmem:[%s6769_s15 + $0x58] sm:$0xff] %v4177_v38   ;;  %v4664_v30 = vadd.f32 %v4663_v43, %v4662_v51  ;;  %v4665_v41 = vpop.f32.mrb[242].mxu0  ;;  %v3578_v37 = vpack.c.bf16 %v3558_v61, %v3557_v57  ;;  %v5125_v57 = vld [vmem:[%s6771_s13 + $0x10] sm:$0xff]   ;;  %v5126_v38 = vld [vmem:[%s6771_s13 + $0x18] sm:$0xff]   ;;  %v5127_v61 = vld [vmem:[%s6771_s13 + $0x20] sm:$0xff]  }
 0x95a   :  { %v4666_v59 = vpop.f32.mrb[243].mxu0  ;;  %4797 = vmatpush3.bf16.msra.mxu0 %v5124_v40  ;;  %v5128_v51 = vld [vmem:[%s6771_s13 + $0x28] sm:$0xff]   ;;  %v5129_v43 = vld [vmem:[%s6771_s13 + $0x30] sm:$0xff]  }
 0x95b   :  { %v3345_v13 = vadd.f32 %v4664_v30, %v6568_v48  ;;  %v4667_v18 = vadd.f32 %v4666_v59, %v4665_v41  ;;  %4692 = vmatprep.subr.bf16.mxu1 %v3578_v37  ;;  %4798 = vmatprep.subr.bf16.mxu0 %v5165_v23  ;;  %v5130_v30 = vld [vmem:[%s6771_s13 + $0x38] sm:$0xff]  }
 0x95c   :  { %4693 = vmatpush3.bf16.msra.mxu1 %v6604_v7 }
 0x95d   :  { %v3348_v9 = vadd.f32 %v4667_v18, %v6568_v48  ;;  %v3559_v22 = vmax.f32 %v3345_v13, 0.0 }
 0x95e   :  { %4799 = vmatpush3.bf16.msra.mxu0 %v5125_v57 }
 0x95f   :  { %v4182_v19 = vpack.c.bf16 %v3348_v9, %v3345_v13  ;;  %v3560_v3 = vmax.f32 %v3348_v9, 0.0  ;;  %v4668_v34 = vpop.f32.mrb[244].mxu0  ;;  %4800 = vmatprep.subr.bf16.mxu0 %v5165_v23 }
 0x960   :  { %v4669_v44 = vpop.f32.mrb[245].mxu0 }
 0x961   :  { %4210 = vst [vmem:[%s6769_s15 + $0x60] sm:$0xff] %v4182_v19   ;;  %v4670_v33 = vadd.f32 %v4669_v44, %v4668_v34  ;;  %v4671_v54 = vpop.f32.mrb[246].mxu0  ;;  %v3579_v49 = vpack.c.bf16 %v3560_v3, %v3559_v22  ;;  %v4069_v22 = vld [vmem:[%s6772_s12] ss:$0 sm:$0xff] }
 0x962   :  { %v4672_v8 = vpop.f32.mrb[247].mxu0  ;;  %4801 = vmatpush3.bf16.msra.mxu0 %v5126_v38 }
 0x963   :  { %v3353_v58 = vadd.f32 %v4670_v33, %v6568_v48  ;;  %v4673_v45 = vadd.f32 %v4672_v8, %v4671_v54  ;;  %4694 = vmatprep.subr.bf16.mxu1 %v3579_v49  ;;  %4802 = vmatprep.subr.bf16.mxu0 %v5165_v23 }
 0x964   :  { %4695 = vmatpush3.bf16.msra.mxu1 %v6611_v60 }
 0x965   :  { %v3356_v7 = vadd.f32 %v4673_v45, %v6568_v48  ;;  %v3561_v1 = vmax.f32 %v3353_v58, 0.0 }
 0x966   :  { %4803 = vmatpush3.bf16.msra.mxu0 %v5127_v61 }
 0x967   :  { %v4187_v39 = vpack.c.bf16 %v3356_v7, %v3353_v58  ;;  %v3562_v26 = vmax.f32 %v3356_v7, 0.0  ;;  %v4674_v47 = vpop.f32.mrb[248].mxu0  ;;  %4804 = vmatprep.subr.bf16.mxu0 %v5165_v23 }
 0x968   :  { %v4675_v56 = vpop.f32.mrb[249].mxu0 }
 0x969   :  { %4211 = vst [vmem:[%s6769_s15 + $0x68] sm:$0xff] %v4187_v39   ;;  %v4676_v55 = vadd.f32 %v4675_v56, %v4674_v47  ;;  %v4677_v29 = vpop.f32.mrb[250].mxu0  ;;  %v3580_v53 = vpack.c.bf16 %v3562_v26, %v3561_v1 }
 0x96a   :  { %v4678_v31 = vpop.f32.mrb[251].mxu0  ;;  %4805 = vmatpush3.bf16.msra.mxu0 %v5128_v51 }
 0x96b   :  { %v3361_v2 = vadd.f32 %v4676_v55, %v6568_v48  ;;  %v4679_v42 = vadd.f32 %v4678_v31, %v4677_v29  ;;  %4696 = vmatprep.subr.bf16.mxu1 %v3580_v53  ;;  %4806 = vmatprep.subr.bf16.mxu0 %v5165_v23 }
 0x96c   :  { %4697 = vmatpush3.bf16.msra.mxu1 %v6618_v5 }
 0x96d   :  { %v3364_v60 = vadd.f32 %v4679_v42, %v6568_v48  ;;  %v3563_v62 = vmax.f32 %v3361_v2, 0.0 }
 0x96e   :  { %4807 = vmatpush3.bf16.msra.mxu0 %v5129_v43 }
 0x96f   :  { %v4192_v10 = vpack.c.bf16 %v3364_v60, %v3361_v2  ;;  %v3564_v12 = vmax.f32 %v3364_v60, 0.0  ;;  %v4680_v14 = vpop.f32.mrb[252].mxu0  ;;  %4808 = vmatprep.subr.bf16.mxu0 %v5165_v23 }
 0x970   :  { %v4681_v15 = vpop.f32.mrb[253].mxu0 }
 0x971   :  { %4212 = vst [vmem:[%s6769_s15 + $0x70] sm:$0xff] %v4192_v10   ;;  %v4682_v21 = vadd.f32 %v4681_v15, %v4680_v14  ;;  %v4683_v25 = vpop.f32.mrb[254].mxu0  ;;  %v3581_v20 = vpack.c.bf16 %v3564_v12, %v3563_v62 }
 0x972   :  { %v4684_v63 = vpop.f32.mrb[255].mxu0  ;;  %4809 = vmatpush3.bf16.msra.mxu0 %v5130_v30 }
 0x973   :  { %v3369_v24 = vadd.f32 %v4682_v21, %v6568_v48  ;;  %v4685_v32 = vadd.f32 %v4684_v63, %v4683_v25  ;;  %4698 = vmatprep.subr.bf16.mxu1 %v3581_v20 }
 0x974   :  { %4699 = vmatpush3.bf16.msra.mxu1 %v6625_v11  ;;  %v5115_v11 = vld [vmem:[%s6770_s11] sm:$0xff]  }
 0x975   :  { %v3372_v5 = vadd.f32 %v4685_v32, %v6568_v48  ;;  %v3565_v4 = vmax.f32 %v3369_v24, 0.0  ;;  %v5116_v48 = vld [vmem:[%s6770_s11 + $0x8] sm:$0xff]  }
 0x977   :  { %v4197_v27 = vpack.c.bf16 %v3372_v5, %v3369_v24  ;;  %v3566_v6 = vmax.f32 %v3372_v5, 0.0 }
 0x979   :  { %4213 = vst [vmem:[%s6769_s15 + $0x78] sm:$0xff] %v4197_v27   ;;  %v3582_v46 = vpack.c.bf16 %v3566_v6, %v3565_v4 }
 0x97b   :  { %4700 = vmatprep.subr.bf16.mxu1 %v3582_v46 }
 0x97c   :  { %4701 = vmatpush3.bf16.msra.mxu1 %v6632_v36  ;;  %v5118_v36 = vld [vmem:[%s6770_s11 + $0x18] sm:$0xff]  }
 0x97d   :  { %4774 = vmatprep.subr.bf16.mxu1 %v5165_v23 }
 0x97f   :  { %3624 = vmatmul.mubr.bf16.vlgmr.msra.gmra.mrb[32].mxu1 %v4067_v35 }
 0x980   :  { %4775 = vmatpush3.bf16.msra.mxu1 %v5115_v11  ;;  %4790 = vmatprep.mubr.msk.bf16.mxu1 %vm5166_vm0, %v5165_v23 }
 0x981   :  { %4776 = vmatprep.subr.bf16.mxu1 %v5165_v23 }
 0x984   :  { %4777 = vmatpush3.bf16.msra.mxu1 %v5116_v48 }
 0x985   :  { %4778 = vmatprep.subr.bf16.mxu1 %v5165_v23 }
 0x988   :  { %4779 = vmatpush3.bf16.msra.mxu1 %v5117_v16 }
 0x989   :  { %4780 = vmatprep.subr.bf16.mxu1 %v5165_v23 }
 0x98c   :  { %4781 = vmatpush3.bf16.msra.mxu1 %v5118_v36 }
 0x98d   :  { %4782 = vmatprep.subr.bf16.mxu1 %v5165_v23 }
 0x990   :  { %4783 = vmatpush3.bf16.msra.mxu1 %v5119_v52 }
 0x991   :  { %4784 = vmatprep.subr.bf16.mxu1 %v5165_v23 }
 0x994   :  { %4785 = vmatpush3.bf16.msra.mxu1 %v5120_v28 }
 0x995   :  { %4786 = vmatprep.subr.bf16.mxu1 %v5165_v23 }
 0x998   :  { %4787 = vmatpush3.bf16.msra.mxu1 %v5121_v0 }
 0x999   :  { %4788 = vmatprep.subr.bf16.mxu1 %v5165_v23  ;;  %v4078_v23 = vld [vmem:[%s6773_s14] ss:$0 sm:$0xff] }
 0x99c   :  { %4789 = vmatpush3.bf16.msra.mxu1 %v5122_v17 }
 0xa52   :  { %v4702_v41 = vpop.f32.mrb[32].mxu1 }
 0xa53   :  { %v4703_v37 = vpop.f32.mrb[33].mxu1 }
 0xa54   :  { %v4704_v59 = vadd.f32 %v4703_v37, %v4702_v41  ;;  %v4705_v13 = vpop.f32.mrb[34].mxu1 }
 0xa55   :  { %v4706_v18 = vpop.f32.mrb[35].mxu1 }
 0xa56   :  { %v3631_v9 = vpack.c.bf16 %v4704_v59, %v4704_v59 }
 0xa58   :  { %4791 = vmatmul.mubr.bf16.vlgmr.msra.gmra.mrb[36].mxu1 %v3631_v9 }
 0xb2b   :  { %v3737_v19 = vpop.f32.mrb[36].mxu1 }
 0xb2c   :  { %v3738_v3 = vadd.f32 %v4069_v22, %v3737_v19  ;;  %v4792_v34 = vpop.f32.mrb[37].mxu1 }
 0xb2d   :  { %v3740_v44 = vpop.f32.mrb[38].mxu1 }
 0xb2e   :  { %v3743_v33 = vmax.f32 %v3738_v3, 0.0  ;;  %v4793_v54 = vpop.f32.mrb[39].mxu1 }
 0xb30   :  { %v3744_v49 = vpack.c.bf16 %v3743_v33, %v3743_v33 }
 0xb32   :  { %4811 = vmatmul.mubr.bf16.vlgmr.msra.gmra.mrb[0].mxu0 %v3744_v49 }
 0xc05   :  { %v3850_v8 = vpop.f32.mrb[0].mxu0 }
 0xc06   :  { %v3851_v58 = vadd.f32 %v4078_v23, %v3850_v8  ;;  %v4812_v45 = vpop.f32.mrb[1].mxu0 }
 0xc07   :  { %v3853_v7 = vpop.f32.mrb[2].mxu0 }
 0xc08   :  { %3856 = vst [vmem:[%s6774_s16] sm:$0xff] %v3851_v58  ;;  %v4813_v1 = vpop.f32.mrb[3].mxu0 }

</bundles_post_ra>
